<compile_context>
chip_gen: v6e
topology: v6e:2x2x1
jax: 0.10.0
libtpu: 0.0.40
codegen_flags: <defaults>
</compile_context>

<pallas_src>
import jax
import jax.numpy as jnp
from jax.experimental import pallas as pl
from jax.experimental.pallas import tpu as pltpu

HIDDEN = 400
LATENT = 20
HID_P = 512      # HIDDEN padded to a lane multiple
LAT_P = 128      # LATENT padded to a lane multiple


def _round_up(n, m):
    return (n + m - 1) // m * m


def _vae_kernel(x_ref, eps_ref,
                w1_ref, b1_ref,
                w2_ref, b2_ref,          # fused mu||logvar projection
                w3_ref, b3_ref,
                w4_ref, b4_ref,
                recon_ref, mu_ref, logvar_ref):
    x = x_ref[...]                                             # (TB, Dp) bf16

    # ---- encode: h1 = relu(x @ W1 + b1) ----
    h1 = jnp.dot(x, w1_ref[...],
                 preferred_element_type=jnp.float32) + b1_ref[...]
    h1 = jnp.maximum(h1, 0.0).astype(jnp.bfloat16)             # bf16 into next dot

    # ---- fused mu / logvar projection (one MXU pass, lane-aligned slices) ----
    ml = jnp.dot(h1, w2_ref[...],
                 preferred_element_type=jnp.float32) + b2_ref[...]
    mu = ml[:, :LAT_P]                                         # (TB, LAT_P) f32
    logvar = ml[:, LAT_P:]                                     # (TB, LAT_P) f32

    # ---- reparameterize (training): z = eps * exp(0.5*logvar) + mu ----
    std = jnp.exp(0.5 * logvar)
    z = eps_ref[...] * std + mu                                # (TB, LAT_P) f32

    # ---- decode ----
    h3 = jnp.dot(z.astype(jnp.bfloat16), w3_ref[...],
                 preferred_element_type=jnp.float32) + b3_ref[...]
    h3 = jnp.maximum(h3, 0.0).astype(jnp.bfloat16)             # (TB, HID_P)

    logits = jnp.dot(h3, w4_ref[...],
                     preferred_element_type=jnp.float32) + b4_ref[...]
    # Exact sigmoid via a single EUP op: sigmoid(x) = 0.5 * (tanh(0.5*x) + 1).
    recon = 0.5 * (jnp.tanh(0.5 * logits) + 1.0)

    recon_ref[...] = recon.astype(recon_ref.dtype)             # bf16 writeback
    mu_ref[...] = mu
    logvar_ref[...] = logvar


def prepare_params(params, input_dim):
    """One-time prep: transpose torch (out,in) weights to (in,out), zero-pad to
    lane-dense shapes, fuse fc21/fc22, and cast weights to bf16."""
    (w1, b1), (w21, b21), (w22, b22), (w3, b3), (w4, b4) = params
    d_p = _round_up(input_dim, 128)

    def pad2(a, shape):
        return jnp.zeros(shape, jnp.float32).at[:a.shape[0], :a.shape[1]].set(a)

    def pad_bias(b, n):
        return jnp.zeros((1, n), jnp.float32).at[0, :b.shape[0]].set(b)

    w1p = pad2(w1.T, (d_p, HID_P)).astype(jnp.bfloat16)        # (Dp, 512)
    b1p = pad_bias(b1, HID_P)

    w2p = jnp.zeros((HID_P, 2 * LAT_P), jnp.float32)
    w2p = w2p.at[:HIDDEN, :LATENT].set(w21.T)
    w2p = w2p.at[:HIDDEN, LAT_P:LAT_P + LATENT].set(w22.T)
    w2p = w2p.astype(jnp.bfloat16)                             # (512, 256)
    b2p = (jnp.zeros((1, 2 * LAT_P), jnp.float32)
           .at[0, :LATENT].set(b21)
           .at[0, LAT_P:LAT_P + LATENT].set(b22))

    w3p = pad2(w3.T, (LAT_P, HID_P)).astype(jnp.bfloat16)      # (128, 512)
    b3p = pad_bias(b3, HID_P)

    w4p = pad2(w4.T, (HID_P, d_p)).astype(jnp.bfloat16)        # (512, Dp)
    b4p = pad_bias(b4, d_p)

    return (w1p, b1p, w2p, b2p, w3p, b3p, w4p, b4p)


def _target_batch_tile():
    kind = jax.devices()[0].device_kind.lower()
    # v5e MXU is 4x 128x128 -> M=128 fills it; v6e/v7x are 256-wide.
    return 128 if "v5" in kind else 256


def vae_forward(x, eps, prepped, *, out_dtype=jnp.float32):
    """x: (B, input_dim) f32; eps: (B, LATENT) f32; prepped from prepare_params."""
    B, D = x.shape
    d_p = _round_up(D, 128)

    target_tb = _target_batch_tile()
    # Small batch: one tile sized to the 8-aligned batch.  Large batch: pad the
    # batch up to the target tile so every grid step runs a full-width MXU
    # matmul (never the degenerate M=8 / hundreds-of-steps case).
    tb = min(target_tb, _round_up(B, 8))
    b_p = _round_up(B, tb)

    # x is DMA'd as bf16 (it is cast to bf16 for the MXU anyway) -> 2x less
    # input HBM traffic.  eps stays f32 (tiny; keeps reparameterization in f32).
    x_p = jnp.zeros((b_p, d_p), jnp.bfloat16).at[:B, :D].set(x.astype(jnp.bfloat16))
    # Padded latent columns of eps are zero by construction; together with the
    # zero-padded w3 rows this keeps the latent padding inert through decode.
    eps_p = jnp.zeros((b_p, LAT_P), jnp.float32).at[:B, :LATENT].set(eps)

    w1p, b1p, w2p, b2p, w3p, b3p, w4p, b4p = prepped
    weights = (w1p, b1p, w2p, b2p, w3p, b3p, w4p, b4p)
    weight_bytes = sum(int(a.size) * a.dtype.itemsize for a in weights)

    # Weights use a constant block index (fetched once, VMEM-resident), but the
    # pipeline double-buffers them by default.  For very large input_dim
    # (w1/w4 grow with d_p) request single buffering so the doubled footprint
    # cannot overrun v7x's 64 MiB physical VMEM; the blocks are fetched once,
    # so single buffering costs nothing.
    weight_mode = pl.Buffered(1) if 2 * weight_bytes > (24 << 20) else None

    def batch_spec(cols):
        return pl.BlockSpec((tb, cols), lambda i: (i, 0))

    def full_spec(shape):
        if weight_mode is None:
            return pl.BlockSpec(shape, lambda i: (0,) * len(shape))
        return pl.BlockSpec(shape, lambda i: (0,) * len(shape),
                            pipeline_mode=weight_mode)

    in_specs = [
        batch_spec(d_p),                       # x (bf16)
        batch_spec(LAT_P),                     # eps (f32)
        full_spec(w1p.shape), full_spec(b1p.shape),
        full_spec(w2p.shape), full_spec(b2p.shape),
        full_spec(w3p.shape), full_spec(b3p.shape),
        full_spec(w4p.shape), full_spec(b4p.shape),
    ]
    out_shape = (
        jax.ShapeDtypeStruct((b_p, d_p), jnp.bfloat16),   # recon (padded, bf16)
        jax.ShapeDtypeStruct((b_p, LAT_P), jnp.float32),  # mu (padded)
        jax.ShapeDtypeStruct((b_p, LAT_P), jnp.float32),  # logvar (padded)
    )
    out_specs = (batch_spec(d_p), batch_spec(LAT_P), batch_spec(LAT_P))

    flops = 2 * b_p * (d_p * HID_P + HID_P * 2 * LAT_P
                       + LAT_P * HID_P + HID_P * d_p)
    transcendentals = b_p * (d_p + LAT_P)          # tanh (recon) + exp (std)
    act_bytes = (x_p.size * 2 + eps_p.size * 4     # bf16 x, f32 eps
                 + b_p * d_p * 2                   # bf16 recon
                 + 2 * b_p * LAT_P * 4)            # f32 mu, logvar
    cost = pl.CostEstimate(flops=flops, transcendentals=transcendentals,
                           bytes_accessed=weight_bytes + act_bytes)

    recon_p, mu_p, logvar_p = pl.pallas_call(
        _vae_kernel,
        out_shape=out_shape,
        grid=(b_p // tb,),
        in_specs=in_specs,
        out_specs=out_specs,
        compiler_params=pltpu.CompilerParams(
            dimension_semantics=("parallel",),
            vmem_limit_bytes=48 << 20),       # under v7x's 64 MiB physical VMEM
        cost_estimate=cost,
    )(x_p, eps_p, *weights)

    recon = recon_p[:B, :D].astype(out_dtype)
    return (recon, mu_p[:B, :LATENT], logvar_p[:B, :LATENT])


def init_linear(key, out_dim, in_dim):
    # PyTorch nn.Linear default init: U(-1/sqrt(fan_in), 1/sqrt(fan_in))
    kw, kb = jax.random.split(key)
    bound = 1.0 / jnp.sqrt(jnp.float32(in_dim))
    w = jax.random.uniform(kw, (out_dim, in_dim), jnp.float32, -bound, bound)
    b = jax.random.uniform(kb, (out_dim,), jnp.float32, -bound, bound)
    return w, b


if __name__ == "__main__":
    key = jax.random.PRNGKey(0)
    k_x, k_eps, k1, k21, k22, k3, k4 = jax.random.split(key, 7)

    # Input mimics an NCHW tensor that forward() flattens via x.view(-1, indim)
    B, C, H, W = 2, 4, 16, 16
    input_dim = C * H * W                        # 1024
    x_nchw = jax.random.normal(k_x, (B, C, H, W), jnp.float32)
    x = x_nchw.reshape(-1, input_dim)            # (B, input_dim)

    # TODO(synk): torch samples eps inside reparameterize via .normal_(); here
    # it is sampled deterministically in JAX and passed into the kernel.
    eps = jax.random.normal(k_eps, (B, LATENT), jnp.float32)

    params = (
        init_linear(k1, HIDDEN, input_dim),      # fc1
        init_linear(k21, LATENT, HIDDEN),        # fc21
        init_linear(k22, LATENT, HIDDEN),        # fc22
        init_linear(k3, HIDDEN, LATENT),         # fc3
        init_linear(k4, input_dim, HIDDEN),      # fc4
    )
    prepped = prepare_params(params, input_dim)  # one-time weight prep

    recon, mu, logvar = vae_forward(x, eps, prepped)
    jax.block_until_ready((recon, mu, logvar))

    assert recon.shape == (B, input_dim)
    assert mu.shape == (B, LATENT)
    assert logvar.shape == (B, LATENT)
    assert bool(jnp.all(jnp.isfinite(recon)))
    assert bool(jnp.all(recon >= 0.0)) and bool(jnp.all(recon <= 1.0))
    print("KERNEL_OK")
</pallas_src>

<mosaic_0001>
module attributes {stable_mosaic.version = 11 : i64} {
  func.func @_vae_kernel(%arg0: i32, %arg1: memref<8x1024xbf16, #tpu.memory_space<vmem>>, %arg2: memref<8x128xf32, #tpu.memory_space<vmem>>, %arg3: memref<1024x512xbf16, #tpu.memory_space<vmem>>, %arg4: memref<1x512xf32, #tpu.memory_space<vmem>>, %arg5: memref<512x256xbf16, #tpu.memory_space<vmem>>, %arg6: memref<1x256xf32, #tpu.memory_space<vmem>>, %arg7: memref<128x512xbf16, #tpu.memory_space<vmem>>, %arg8: memref<1x512xf32, #tpu.memory_space<vmem>>, %arg9: memref<512x1024xbf16, #tpu.memory_space<vmem>>, %arg10: memref<1x1024xf32, #tpu.memory_space<vmem>>, %arg11: memref<8x1024xbf16, #tpu.memory_space<vmem>>, %arg12: memref<8x128xf32, #tpu.memory_space<vmem>>, %arg13: memref<8x128xf32, #tpu.memory_space<vmem>>) attributes {dimension_semantics = [#tpu.dimension_semantics<parallel>], iteration_bounds = array<i64: 1>, scalar_prefetch = 0 : i64, scratch_operands = 0 : i64, tpu.core_type = #tpu.core_type<tc>, window_params = [{transform_indices = @transform_0, window_bounds = array<i64: 8, 1024>}, {transform_indices = @transform_1, window_bounds = array<i64: 8, 128>}, {pipeline_mode = #tpu.pipeline_mode<synchronous>, transform_indices = @transform_2, window_bounds = array<i64: 1024, 512>}, {pipeline_mode = #tpu.pipeline_mode<synchronous>, transform_indices = @transform_3, window_bounds = array<i64: 1, 512>}, {pipeline_mode = #tpu.pipeline_mode<synchronous>, transform_indices = @transform_4, window_bounds = array<i64: 512, 256>}, {pipeline_mode = #tpu.pipeline_mode<synchronous>, transform_indices = @transform_5, window_bounds = array<i64: 1, 256>}, {pipeline_mode = #tpu.pipeline_mode<synchronous>, transform_indices = @transform_6, window_bounds = array<i64: 128, 512>}, {pipeline_mode = #tpu.pipeline_mode<synchronous>, transform_indices = @transform_7, window_bounds = array<i64: 1, 512>}, {pipeline_mode = #tpu.pipeline_mode<synchronous>, transform_indices = @transform_8, window_bounds = array<i64: 512, 1024>}, {pipeline_mode = #tpu.pipeline_mode<synchronous>, transform_indices = @transform_9, window_bounds = array<i64: 1, 1024>}, {transform_indices = @transform_10, window_bounds = array<i64: 8, 1024>}, {transform_indices = @transform_11, window_bounds = array<i64: 8, 128>}, {transform_indices = @transform_12, window_bounds = array<i64: 8, 128>}]} {
    %c0 = arith.constant 0 : index
    %c0_0 = arith.constant 0 : index
    %0 = vector.load %arg1[%c0, %c0_0] : memref<8x1024xbf16, #tpu.memory_space<vmem>>, vector<8x1024xbf16>
    %c0_1 = arith.constant 0 : index
    %c0_2 = arith.constant 0 : index
    %1 = vector.load %arg3[%c0_1, %c0_2] : memref<1024x512xbf16, #tpu.memory_space<vmem>>, vector<1024x512xbf16>
    %cst = arith.constant dense<0.000000e+00> : vector<8x512xf32>
    %2 = tpu.matmul %0, %1, %cst {dimension_numbers = #tpu.dot_dimension_numbers<[1], [0], [0], [1], [0, 0, 1, 1], [], []>} : vector<8x1024xbf16>, vector<1024x512xbf16>, vector<8x512xf32> -> vector<8x512xf32>
    %c0_3 = arith.constant 0 : index
    %c0_4 = arith.constant 0 : index
    %3 = vector.load %arg4[%c0_3, %c0_4] : memref<1x512xf32, #tpu.memory_space<vmem>>, vector<1x512xf32>
    %4 = vector.broadcast %3 : vector<1x512xf32> to vector<8x512xf32>
    %5 = arith.addf %2, %4 : vector<8x512xf32>
    %cst_5 = arith.constant 0.000000e+00 : f32
    %6 = vector.broadcast %cst_5 : f32 to vector<8x512xf32>
    %7 = arith.maximumf %5, %6 : vector<8x512xf32>
    %8 = arith.truncf %7 : vector<8x512xf32> to vector<8x512xbf16>
    %c0_6 = arith.constant 0 : index
    %c0_7 = arith.constant 0 : index
    %9 = vector.load %arg5[%c0_6, %c0_7] : memref<512x256xbf16, #tpu.memory_space<vmem>>, vector<512x256xbf16>
    %cst_8 = arith.constant dense<0.000000e+00> : vector<8x256xf32>
    %10 = tpu.matmul %8, %9, %cst_8 {dimension_numbers = #tpu.dot_dimension_numbers<[1], [0], [0], [1], [0, 0, 1, 1], [], []>} : vector<8x512xbf16>, vector<512x256xbf16>, vector<8x256xf32> -> vector<8x256xf32>
    %c0_9 = arith.constant 0 : index
    %c0_10 = arith.constant 0 : index
    %11 = vector.load %arg6[%c0_9, %c0_10] : memref<1x256xf32, #tpu.memory_space<vmem>>, vector<1x256xf32>
    %12 = vector.broadcast %11 : vector<1x256xf32> to vector<8x256xf32>
    %13 = arith.addf %10, %12 : vector<8x256xf32>
    %14 = vector.extract_strided_slice %13 {offsets = [0, 0], sizes = [8, 128], strides = [1, 1]} : vector<8x256xf32> to vector<8x128xf32>
    %15 = vector.extract_strided_slice %13 {offsets = [0, 128], sizes = [8, 128], strides = [1, 1]} : vector<8x256xf32> to vector<8x128xf32>
    %cst_11 = arith.constant 5.000000e-01 : f32
    %16 = vector.broadcast %cst_11 : f32 to vector<8x128xf32>
    %17 = arith.mulf %16, %15 : vector<8x128xf32>
    %18 = math.exp %17 : vector<8x128xf32>
    %c0_12 = arith.constant 0 : index
    %c0_13 = arith.constant 0 : index
    %19 = vector.load %arg2[%c0_12, %c0_13] : memref<8x128xf32, #tpu.memory_space<vmem>>, vector<8x128xf32>
    %20 = arith.mulf %19, %18 : vector<8x128xf32>
    %21 = arith.addf %20, %14 : vector<8x128xf32>
    %22 = arith.truncf %21 : vector<8x128xf32> to vector<8x128xbf16>
    %c0_14 = arith.constant 0 : index
    %c0_15 = arith.constant 0 : index
    %23 = vector.load %arg7[%c0_14, %c0_15] : memref<128x512xbf16, #tpu.memory_space<vmem>>, vector<128x512xbf16>
    %cst_16 = arith.constant dense<0.000000e+00> : vector<8x512xf32>
    %24 = tpu.matmul %22, %23, %cst_16 {dimension_numbers = #tpu.dot_dimension_numbers<[1], [0], [0], [1], [0, 0, 1, 1], [], []>} : vector<8x128xbf16>, vector<128x512xbf16>, vector<8x512xf32> -> vector<8x512xf32>
    %c0_17 = arith.constant 0 : index
    %c0_18 = arith.constant 0 : index
    %25 = vector.load %arg8[%c0_17, %c0_18] : memref<1x512xf32, #tpu.memory_space<vmem>>, vector<1x512xf32>
    %26 = vector.broadcast %25 : vector<1x512xf32> to vector<8x512xf32>
    %27 = arith.addf %24, %26 : vector<8x512xf32>
    %cst_19 = arith.constant 0.000000e+00 : f32
    %28 = vector.broadcast %cst_19 : f32 to vector<8x512xf32>
    %29 = arith.maximumf %27, %28 : vector<8x512xf32>
    %30 = arith.truncf %29 : vector<8x512xf32> to vector<8x512xbf16>
    %c0_20 = arith.constant 0 : index
    %c0_21 = arith.constant 0 : index
    %31 = vector.load %arg9[%c0_20, %c0_21] : memref<512x1024xbf16, #tpu.memory_space<vmem>>, vector<512x1024xbf16>
    %cst_22 = arith.constant dense<0.000000e+00> : vector<8x1024xf32>
    %32 = tpu.matmul %30, %31, %cst_22 {dimension_numbers = #tpu.dot_dimension_numbers<[1], [0], [0], [1], [0, 0, 1, 1], [], []>} : vector<8x512xbf16>, vector<512x1024xbf16>, vector<8x1024xf32> -> vector<8x1024xf32>
    %c0_23 = arith.constant 0 : index
    %c0_24 = arith.constant 0 : index
    %33 = vector.load %arg10[%c0_23, %c0_24] : memref<1x1024xf32, #tpu.memory_space<vmem>>, vector<1x1024xf32>
    %34 = vector.broadcast %33 : vector<1x1024xf32> to vector<8x1024xf32>
    %35 = arith.addf %32, %34 : vector<8x1024xf32>
    %cst_25 = arith.constant 5.000000e-01 : f32
    %36 = vector.broadcast %cst_25 : f32 to vector<8x1024xf32>
    %37 = arith.mulf %36, %35 : vector<8x1024xf32>
    %38 = math.tanh %37 : vector<8x1024xf32>
    %cst_26 = arith.constant 1.000000e+00 : f32
    %39 = vector.broadcast %cst_26 : f32 to vector<8x1024xf32>
    %40 = arith.addf %38, %39 : vector<8x1024xf32>
    %cst_27 = arith.constant 5.000000e-01 : f32
    %41 = vector.broadcast %cst_27 : f32 to vector<8x1024xf32>
    %42 = arith.mulf %41, %40 : vector<8x1024xf32>
    %43 = arith.truncf %42 : vector<8x1024xf32> to vector<8x1024xbf16>
    %c0_28 = arith.constant 0 : index
    %c0_29 = arith.constant 0 : index
    %44 = vector.load %arg11[%c0_28, %c0_29] : memref<8x1024xbf16, #tpu.memory_space<vmem>>, vector<8x1024xbf16>
    tpu.vector_store %arg11[%c0_28, %c0_29], %43 {strides = array<i32>} : memref<8x1024xbf16, #tpu.memory_space<vmem>>, vector<8x1024xbf16>,
    %c0_30 = arith.constant 0 : index
    %c0_31 = arith.constant 0 : index
    %45 = vector.load %arg12[%c0_30, %c0_31] : memref<8x128xf32, #tpu.memory_space<vmem>>, vector<8x128xf32>
    tpu.vector_store %arg12[%c0_30, %c0_31], %14 {strides = array<i32>} : memref<8x128xf32, #tpu.memory_space<vmem>>, vector<8x128xf32>,
    %c0_32 = arith.constant 0 : index
    %c0_33 = arith.constant 0 : index
    %46 = vector.load %arg13[%c0_32, %c0_33] : memref<8x128xf32, #tpu.memory_space<vmem>>, vector<8x128xf32>
    tpu.vector_store %arg13[%c0_32, %c0_33], %15 {strides = array<i32>} : memref<8x128xf32, #tpu.memory_space<vmem>>, vector<8x128xf32>,
    return
  }
  func.func @transform_0(%arg0: i32) -> (i32, i32) {
    %c0_i32 = arith.constant 0 : i32
    %c0_i32_0 = arith.constant 0 : i32
    return %arg0, %c0_i32 : i32, i32
  }
  func.func @transform_1(%arg0: i32) -> (i32, i32) {
    %c0_i32 = arith.constant 0 : i32
    %c0_i32_0 = arith.constant 0 : i32
    return %arg0, %c0_i32 : i32, i32
  }
  func.func @transform_2(%arg0: i32) -> (i32, i32) {
    %c0_i32 = arith.constant 0 : i32
    %c0_i32_0 = arith.constant 0 : i32
    %c0_i32_1 = arith.constant 0 : i32
    return %c0_i32, %c0_i32_0 : i32, i32
  }
  func.func @transform_3(%arg0: i32) -> (i32, i32) {
    %c0_i32 = arith.constant 0 : i32
    %c0_i32_0 = arith.constant 0 : i32
    %c0_i32_1 = arith.constant 0 : i32
    return %c0_i32, %c0_i32_0 : i32, i32
  }
  func.func @transform_4(%arg0: i32) -> (i32, i32) {
    %c0_i32 = arith.constant 0 : i32
    %c0_i32_0 = arith.constant 0 : i32
    %c0_i32_1 = arith.constant 0 : i32
    return %c0_i32, %c0_i32_0 : i32, i32
  }
  func.func @transform_5(%arg0: i32) -> (i32, i32) {
    %c0_i32 = arith.constant 0 : i32
    %c0_i32_0 = arith.constant 0 : i32
    %c0_i32_1 = arith.constant 0 : i32
    return %c0_i32, %c0_i32_0 : i32, i32
  }
  func.func @transform_6(%arg0: i32) -> (i32, i32) {
    %c0_i32 = arith.constant 0 : i32
    %c0_i32_0 = arith.constant 0 : i32
    %c0_i32_1 = arith.constant 0 : i32
    return %c0_i32, %c0_i32_0 : i32, i32
  }
  func.func @transform_7(%arg0: i32) -> (i32, i32) {
    %c0_i32 = arith.constant 0 : i32
    %c0_i32_0 = arith.constant 0 : i32
    %c0_i32_1 = arith.constant 0 : i32
    return %c0_i32, %c0_i32_0 : i32, i32
  }
  func.func @transform_8(%arg0: i32) -> (i32, i32) {
    %c0_i32 = arith.constant 0 : i32
    %c0_i32_0 = arith.constant 0 : i32
    %c0_i32_1 = arith.constant 0 : i32
    return %c0_i32, %c0_i32_0 : i32, i32
  }
  func.func @transform_9(%arg0: i32) -> (i32, i32) {
    %c0_i32 = arith.constant 0 : i32
    %c0_i32_0 = arith.constant 0 : i32
    %c0_i32_1 = arith.constant 0 : i32
    return %c0_i32, %c0_i32_0 : i32, i32
  }
  func.func @transform_10(%arg0: i32) -> (i32, i32) {
    %c0_i32 = arith.constant 0 : i32
    %c0_i32_0 = arith.constant 0 : i32
    return %arg0, %c0_i32 : i32, i32
  }
  func.func @transform_11(%arg0: i32) -> (i32, i32) {
    %c0_i32 = arith.constant 0 : i32
    %c0_i32_0 = arith.constant 0 : i32
    return %arg0, %c0_i32 : i32, i32
  }
  func.func @transform_12(%arg0: i32) -> (i32, i32) {
    %c0_i32 = arith.constant 0 : i32
    %c0_i32_0 = arith.constant 0 : i32
    return %arg0, %c0_i32 : i32, i32
  }
}

</mosaic_0001>

<bundles_post_ra>
// kernel: tpu_custom_call.1
= control target key start
LH: loop header
LB: loop body
LE: loop exit
PB: predicated region body
PF: predicated region fallthrough
CT: control target
= control target key end

     0   :  { %18 = vsyncpa [#allocation3], 0  ;;  %s6528_s0 = inlined_call_operand.hbm [shape: bf16[8,1024], index: 0, kind: input, shape index: {}]   ;;  %s6529_s1 = inlined_call_operand.hbm [shape: f32[8,128], index: 1, kind: input, shape index: {}]   ;;  %s6530_s2 = inlined_call_operand.hbm [shape: bf16[1024,512], index: 2, kind: input, shape index: {}]   ;;  %s6531_s3 = inlined_call_operand.vmem [shape: f32[1,512], index: 3, kind: input, shape index: {}]   ;;  %s6532_s4 = inlined_call_operand.hbm [shape: bf16[512,256], index: 4, kind: input, shape index: {}]   ;;  %s6533_s5 = inlined_call_operand.hbm [shape: f32[1,256], index: 5, kind: input, shape index: {}]   ;;  %s6534_s6 = inlined_call_operand.hbm [shape: bf16[128,512], index: 6, kind: input, shape index: {}]   ;;  %s6535_s7 = inlined_call_operand.vmem [shape: f32[1,512], index: 7, kind: input, shape index: {}]   ;;  %s6536_s8 = inlined_call_operand.hbm [shape: bf16[512,1024], index: 8, kind: input, shape index: {}]   ;;  %s6537_s9 = inlined_call_operand.vmem [shape: f32[1,1024], index: 9, kind: input, shape index: {}]   ;;  %s6538_s10 = inlined_call_operand.hbm [shape: bf16[8,1024], index: 10, kind: output, shape index: {0}]   ;;  %s6539_s11 = inlined_call_operand.hbm [shape: f32[8,128], index: 11, kind: output, shape index: {1}]   ;;  %s6540_s12 = inlined_call_operand.hbm [shape: f32[8,128], index: 12, kind: output, shape index: {2}]  }
   0x1   :  { %19 = vsyncpa [#allocation6], 0 }
   0x2   :  { %20 = vsyncpa [#allocation9], 0 }
   0x3   :  { %21 = vsyncpa [#allocation12], 0 }
   0x4   :  { %22 = vsyncpa [#allocation4], 0 }
   0x5   :  { %23 = vsyncpa [#allocation16], 0  ;;  %s6273_s21 = smov [#allocation5]   ;;  %s6274_s23 = smov [#allocation8]  }
   0x6   :  { %s40_s22 = sshll.u32 %s6273_s21, 4  ;;  %s63_s24 = sshll.u32 %s6274_s23, 4  ;;  %s41_s22 = int_to_ptr.vmem [resolvable:$true] %s40_s22  ;;  %s64_s24 = int_to_ptr.vmem [resolvable:$true] %s63_s24 }
   0x7   :  { %s6069_s25 = scalar_lea.vmem %s41_s22, 128  ;;  %p6074_p1 = scmp.lt.s32.totalorder %s41_s22, %s41_s22 }
   0x8   :  { %p6070_p0 = scmp.ne.s32.totalorder %s41_s22, %s6069_s25  ;;  %p6075_p2 = scmp.lt.s32.totalorder %s6069_s25, %s6069_s25 }
   0xa   :  { %p6076_p3 = por %p6075_p2, %p6074_p1 }
   0xc   :  { %p6077_p4 = pnand %p6076_p3, %p6070_p0 }
   0xe   :  { %6080 = shalt.err (!%p6077_p4)
}
   0xf   :  { %43 = dma.hbm_to_vmem [thread:$0]  %s6529_s1, 128, %s41_s22, [#allocation6]  }
  0x10   :  { %s6089_s28 = scalar_lea.vmem %s64_s24, 8192  ;;  %p6094_p6 = scmp.lt.s32.totalorder %s64_s24, %s64_s24 }
  0x11   :  { %p6090_p5 = scmp.ne.s32.totalorder %s64_s24, %s6089_s28  ;;  %p6095_p7 = scmp.lt.s32.totalorder %s6089_s28, %s6089_s28 }
  0x13   :  { %p6096_p8 = por %p6095_p7, %p6094_p6 }
  0x15   :  { %p6097_p9 = pnand %p6096_p8, %p6090_p5 }
  0x17   :  { %6100 = shalt.err (!%p6097_p9)
}
  0x18   :  { %s6275_s29 = smov 128   ;;  %s6276_s30 = smov 8  }
  0x19   :  { %69 = dma.hbm_to_vmem [thread:$0]  %s6532_s4, 8192, %s64_s24, [#allocation9], %s6275_s29, %s6275_s29, %s6276_s30  }
  0x1a   :  { %s6277_s15 = smov [#allocation11]   ;;  %s6278_s17 = smov [#allocation2]  }
  0x1b   :  { %s85_s16 = sshll.u32 %s6277_s15, 4  ;;  %s30_s18 = sshll.u32 %s6278_s17, 4  ;;  %s86_s16 = int_to_ptr.vmem [resolvable:$true] %s85_s16  ;;  %s31_s18 = int_to_ptr.vmem [resolvable:$true] %s30_s18 }
  0x1c   :  { %s6109_s1 = scalar_lea.vmem %s86_s16, 4096  ;;  %p6114_p11 = scmp.lt.s32.totalorder %s86_s16, %s86_s16 }
  0x1d   :  { %p6110_p10 = scmp.ne.s32.totalorder %s86_s16, %s6109_s1  ;;  %p6115_p12 = scmp.lt.s32.totalorder %s6109_s1, %s6109_s1 }
  0x1f   :  { %p6116_p13 = por %p6115_p12, %p6114_p11 }
  0x21   :  { %p6117_p0 = pnand %p6116_p13, %p6110_p10 }
  0x23   :  { %6120 = shalt.err (!%p6117_p0)
}
  0x24   :  { %s6279_s19 = smov 256   ;;  %s6280_s20 = smov 16  }
  0x25   :  { %91 = dma.hbm_to_vmem [thread:$0]  %s6534_s6, 4096, %s86_s16, [#allocation12], %s6279_s19, %s6279_s19, %s6280_s20  }
  0x26   :  { %s6129_s4 = scalar_lea.vmem %s31_s18, 512  ;;  %p6134_p2 = scmp.lt.s32.totalorder %s31_s18, %s31_s18 }
  0x27   :  { %p6130_p1 = scmp.ne.s32.totalorder %s31_s18, %s6129_s4  ;;  %p6135_p3 = scmp.lt.s32.totalorder %s6129_s4, %s6129_s4 }
  0x29   :  { %p6136_p4 = por %p6135_p3, %p6134_p2 }
  0x2b   :  { %p6137_p5 = pnand %p6136_p4, %p6130_p1 }
  0x2d   :  { %6140 = shalt.err (!%p6137_p5)
}
  0x2e   :  { %33 = dma.hbm_to_vmem [thread:$0]  %s6528_s0, 512, %s31_s18, [#allocation3]  }
  0x2f   :  { %s6281_s25 = smov [#allocation7]   ;;  %s6282_s27 = smov [#allocation10]  }
  0x30   :  { %s49_s26 = sshll.u32 %s6281_s25, 4  ;;  %s76_s28 = sshll.u32 %s6282_s27, 4  ;;  %s50_s26 = int_to_ptr.vmem [resolvable:$true] %s49_s26  ;;  %s77_s28 = int_to_ptr.vmem [resolvable:$true] %s76_s28 }
  0x31   :  { %s6149_s29 = scalar_lea.vmem %s50_s26, 32768  ;;  %p6154_p7 = scmp.lt.s32.totalorder %s50_s26, %s50_s26 }
  0x32   :  { %p6150_p6 = scmp.ne.s32.totalorder %s50_s26, %s6149_s29  ;;  %p6155_p8 = scmp.lt.s32.totalorder %s6149_s29, %s6149_s29 }
  0x34   :  { %p6156_p9 = por %p6155_p8, %p6154_p7 }
  0x36   :  { %p6157_p10 = pnand %p6156_p9, %p6150_p6 }
  0x38   :  { %6160 = shalt.err (!%p6157_p10)
}
  0x39   :  { %55 = dma.hbm_to_vmem [thread:$0]  %s6530_s2, 32768, %s50_s26, [#allocation6], %s6279_s19, %s6279_s19, %s6280_s20  }
  0x3a   :  { %s6169_s13 = scalar_lea.vmem %s77_s28, 32  ;;  %p6174_p12 = scmp.lt.s32.totalorder %s77_s28, %s77_s28 }
  0x3b   :  { %p6170_p11 = scmp.ne.s32.totalorder %s77_s28, %s6169_s13  ;;  %p6175_p13 = scmp.lt.s32.totalorder %s6169_s13, %s6169_s13 }
  0x3d   :  { %p6176_p0 = por %p6175_p13, %p6174_p12 }
  0x3f   :  { %p6177_p1 = pnand %p6176_p0, %p6170_p11 }
  0x41   :  { %6180 = shalt.err (!%p6177_p1)
}
  0x42   :  { %79 = dma.hbm_to_vmem [thread:$0]  %s6533_s5, 32, %s77_s28, [#allocation9]  }
  0x43   :  { %s6283_s15 = smov [#allocation13]  }
  0x44   :  { %s99_s16 = sshll.u32 %s6283_s15, 4  ;;  %s100_s16 = int_to_ptr.vmem [resolvable:$true] %s99_s16 }
  0x45   :  { %s6189_s17 = scalar_lea.vmem %s100_s16, 32768  ;;  %p6194_p3 = scmp.lt.s32.totalorder %s100_s16, %s100_s16 }
  0x46   :  { %p6190_p2 = scmp.ne.s32.totalorder %s100_s16, %s6189_s17  ;;  %p6195_p4 = scmp.lt.s32.totalorder %s6189_s17, %s6189_s17 }
  0x48   :  { %p6196_p5 = por %p6195_p4, %p6194_p3 }
  0x4a   :  { %p6197_p6 = pnand %p6196_p5, %p6190_p2 }
  0x4c   :  { %6200 = shalt.err (!%p6197_p6)
}
  0x4d   :  { %s6284_s2 = smov 512   ;;  %s6285_s18 = smov 32  }
  0x4e   :  { %105 = dma.hbm_to_vmem [thread:$0]  %s6536_s8, 32768, %s100_s16, [#allocation12], %s6284_s2, %s6284_s2, %s6285_s18  }
  0x4f   :  { %6261 = dma.done.wait [#allocation3], 512  }
  0x50   :  { %6262 = vsyncadd [#allocation3], 4294966784 }
  0x51   :  { %6263 = dma.done.wait [#allocation6], 32896  }
  0x52   :  { %6264 = vsyncadd [#allocation6], 4294934400 }
  0x53   :  { %6265 = dma.done.wait [#allocation9], 8224  }
  0x54   :  { %6266 = vsyncadd [#allocation9], 4294959072 }
  0x55   :  { %6267 = dma.done.wait [#allocation12], 36864  }
  0x56   :  { %6268 = vsyncadd [#allocation12], 4294930432  ;;  %v5507_v0 = vld [vmem:[#allocation7 + $0xe4] ss:$16 sps:$4 sm:$0xff]   ;;  %v5511_v2 = vld [vmem:[#allocation7 + $0xe0] ss:$16 sps:$4 sm:$0xff]  }
  0x57   :  { %v5509_v1 = vld [vmem:[#allocation7 + $0x2e4] ss:$16 sps:$4 sm:$0xff]   ;;  %1720 = vmatprep.subr.bf16.mxu0 %v5507_v0  ;;  %v5512_v3 = vld [vmem:[#allocation7 + $0x2e0] ss:$16 sps:$4 sm:$0xff]   ;;  %v130_v46 = vld [vmem:[#allocation2] sm:$0xff] }
  0x58   :  { %1761 = vmatprep.subr.bf16.mxu1 %v5509_v1  ;;  %v5513_v4 = vld [vmem:[#allocation7 + $0xc4] ss:$16 sps:$4 sm:$0xff]   ;;  %1721 = vmatpush1.bf16.msra.mxu0 %v5511_v2  ;;  %v5517_v6 = vld [vmem:[#allocation7 + $0xc0] ss:$16 sps:$4 sm:$0xff]   ;;  %v6376_v47 = vcombine.high %v130_v46, %v130_v46 }
  0x59   :  { %1762 = vmatpush1.bf16.msra.mxu1 %v5512_v3  ;;  %v5515_v5 = vld [vmem:[#allocation7 + $0x2c4] ss:$16 sps:$4 sm:$0xff]   ;;  %1722 = vmatprep.subr.bf16.mxu0 %v5513_v4  ;;  %v5518_v7 = vld [vmem:[#allocation7 + $0x2c0] ss:$16 sps:$4 sm:$0xff]  }
  0x5a   :  { %1763 = vmatprep.subr.bf16.mxu1 %v5515_v5  ;;  %v5519_v8 = vld [vmem:[#allocation7 + $0xa4] ss:$16 sps:$4 sm:$0xff]   ;;  %v5523_v10 = vld [vmem:[#allocation7 + $0xa0] ss:$16 sps:$4 sm:$0xff]   ;;  %1752 = vmatprep.mubr.bf16.mxu0 %v6376_v47 }
  0x5b   :  { %v5521_v9 = vld [vmem:[#allocation7 + $0x2a4] ss:$16 sps:$4 sm:$0xff]   ;;  %v5524_v11 = vld [vmem:[#allocation7 + $0x2a0] ss:$16 sps:$4 sm:$0xff]  }
  0x5c   :  { %1723 = vmatpush1.bf16.msra.mxu0 %v5517_v6  ;;  %v5525_v12 = vld [vmem:[#allocation7 + $0x84] ss:$16 sps:$4 sm:$0xff]   ;;  %v5529_v14 = vld [vmem:[#allocation7 + $0x80] ss:$16 sps:$4 sm:$0xff]   ;;  %v6382_v6 = vcombine.low %v130_v46, %v130_v46 }
  0x5d   :  { %1764 = vmatpush1.bf16.msra.mxu1 %v5518_v7  ;;  %1724 = vmatprep.subr.bf16.mxu0 %v5519_v8  ;;  %v5527_v13 = vld [vmem:[#allocation7 + $0x284] ss:$16 sps:$4 sm:$0xff]   ;;  %v5530_v15 = vld [vmem:[#allocation7 + $0x280] ss:$16 sps:$4 sm:$0xff]  }
  0x5e   :  { %1765 = vmatprep.subr.bf16.mxu1 %v5521_v9  ;;  %v5531_v16 = vld [vmem:[#allocation7 + $0x64] ss:$16 sps:$4 sm:$0xff]   ;;  %v5535_v18 = vld [vmem:[#allocation7 + $0x60] ss:$16 sps:$4 sm:$0xff]  }
  0x5f   :  { %v5533_v17 = vld [vmem:[#allocation7 + $0x264] ss:$16 sps:$4 sm:$0xff]   ;;  %v5536_v19 = vld [vmem:[#allocation7 + $0x260] ss:$16 sps:$4 sm:$0xff]  }
  0x60   :  { %1725 = vmatpush1.bf16.msra.mxu0 %v5523_v10  ;;  %v5537_v20 = vld [vmem:[#allocation7 + $0x44] ss:$16 sps:$4 sm:$0xff]   ;;  %v5541_v22 = vld [vmem:[#allocation7 + $0x40] ss:$16 sps:$4 sm:$0xff]  }
  0x61   :  { %1766 = vmatpush1.bf16.msra.mxu1 %v5524_v11  ;;  %1726 = vmatprep.subr.bf16.mxu0 %v5525_v12  ;;  %v5539_v21 = vld [vmem:[#allocation7 + $0x244] ss:$16 sps:$4 sm:$0xff]   ;;  %v5542_v23 = vld [vmem:[#allocation7 + $0x240] ss:$16 sps:$4 sm:$0xff]  }
  0x62   :  { %1767 = vmatprep.subr.bf16.mxu1 %v5527_v13  ;;  %v5543_v24 = vld [vmem:[#allocation7 + $0x24] ss:$16 sps:$4 sm:$0xff]   ;;  %v5547_v26 = vld [vmem:[#allocation7 + $0x20] ss:$16 sps:$4 sm:$0xff]  }
  0x63   :  { %v5545_v25 = vld [vmem:[#allocation7 + $0x224] ss:$16 sps:$4 sm:$0xff]   ;;  %v5548_v27 = vld [vmem:[#allocation7 + $0x220] ss:$16 sps:$4 sm:$0xff]  }
  0x64   :  { %1727 = vmatpush1.bf16.msra.mxu0 %v5529_v14  ;;  %v5549_v28 = vld [vmem:[#allocation7 + $0x4] ss:$16 sps:$4 sm:$0xff]   ;;  %v5553_v30 = vld [vmem:[#allocation7] ss:$16 sps:$4 sm:$0xff]  }
  0x65   :  { %1768 = vmatpush1.bf16.msra.mxu1 %v5530_v15  ;;  %1728 = vmatprep.subr.bf16.mxu0 %v5531_v16  ;;  %v5551_v29 = vld [vmem:[#allocation7 + $0x204] ss:$16 sps:$4 sm:$0xff]   ;;  %v5554_v31 = vld [vmem:[#allocation7 + $0x200] ss:$16 sps:$4 sm:$0xff]  }
  0x66   :  { %1769 = vmatprep.subr.bf16.mxu1 %v5533_v17  ;;  %v5555_v32 = vld [vmem:[#allocation7 + $0x1e4] ss:$16 sps:$4 sm:$0xff]   ;;  %v5559_v34 = vld [vmem:[#allocation7 + $0x1e0] ss:$16 sps:$4 sm:$0xff]  }
  0x67   :  { %v5557_v33 = vld [vmem:[#allocation7 + $0x3e4] ss:$16 sps:$4 sm:$0xff]   ;;  %v5560_v35 = vld [vmem:[#allocation7 + $0x3e0] ss:$16 sps:$4 sm:$0xff]  }
  0x68   :  { %1729 = vmatpush1.bf16.msra.mxu0 %v5535_v18  ;;  %v5561_v36 = vld [vmem:[#allocation7 + $0x1c4] ss:$16 sps:$4 sm:$0xff]   ;;  %v5565_v38 = vld [vmem:[#allocation7 + $0x1c0] ss:$16 sps:$4 sm:$0xff]  }
  0x69   :  { %1770 = vmatpush1.bf16.msra.mxu1 %v5536_v19  ;;  %1730 = vmatprep.subr.bf16.mxu0 %v5537_v20  ;;  %v5563_v37 = vld [vmem:[#allocation7 + $0x3c4] ss:$16 sps:$4 sm:$0xff]   ;;  %v5566_v39 = vld [vmem:[#allocation7 + $0x3c0] ss:$16 sps:$4 sm:$0xff]  }
  0x6a   :  { %1771 = vmatprep.subr.bf16.mxu1 %v5539_v21  ;;  %v5567_v40 = vld [vmem:[#allocation7 + $0x1a4] ss:$16 sps:$4 sm:$0xff]   ;;  %v5571_v42 = vld [vmem:[#allocation7 + $0x1a0] ss:$16 sps:$4 sm:$0xff]  }
  0x6b   :  { %v5569_v41 = vld [vmem:[#allocation7 + $0x3a4] ss:$16 sps:$4 sm:$0xff]   ;;  %v5572_v43 = vld [vmem:[#allocation7 + $0x3a0] ss:$16 sps:$4 sm:$0xff]  }
  0x6c   :  { %1731 = vmatpush1.bf16.msra.mxu0 %v5541_v22  ;;  %v5573_v44 = vld [vmem:[#allocation7 + $0x184] ss:$16 sps:$4 sm:$0xff]   ;;  %v5577_v49 = vld [vmem:[#allocation7 + $0x180] ss:$16 sps:$4 sm:$0xff]  }
  0x6d   :  { %1772 = vmatpush1.bf16.msra.mxu1 %v5542_v23  ;;  %1732 = vmatprep.subr.bf16.mxu0 %v5543_v24  ;;  %v5575_v45 = vld [vmem:[#allocation7 + $0x384] ss:$16 sps:$4 sm:$0xff]   ;;  %v5578_v50 = vld [vmem:[#allocation7 + $0x380] ss:$16 sps:$4 sm:$0xff]  }
  0x6e   :  { %1773 = vmatprep.subr.bf16.mxu1 %v5545_v25  ;;  %v131_v48 = vld [vmem:[#allocation2 + $0x8] sm:$0xff] }
  0x6f   :  { %v6378_v51 = vcombine.high %v131_v48, %v131_v48  ;;  %v5579_v52 = vld [vmem:[#allocation7 + $0x164] ss:$16 sps:$4 sm:$0xff]   ;;  %v5583_v54 = vld [vmem:[#allocation7 + $0x160] ss:$16 sps:$4 sm:$0xff]   ;;  %v6384_v7 = vcombine.low %v131_v48, %v131_v48 }
  0x70   :  { %1733 = vmatpush1.bf16.msra.mxu0 %v5547_v26  ;;  %v5581_v53 = vld [vmem:[#allocation7 + $0x364] ss:$16 sps:$4 sm:$0xff]   ;;  %v5584_v55 = vld [vmem:[#allocation7 + $0x360] ss:$16 sps:$4 sm:$0xff]  }
  0x71   :  { %1774 = vmatpush1.bf16.msra.mxu1 %v5548_v27  ;;  %1734 = vmatprep.subr.bf16.mxu0 %v5549_v28  ;;  %v5585_v56 = vld [vmem:[#allocation7 + $0x144] ss:$16 sps:$4 sm:$0xff]   ;;  %v5589_v58 = vld [vmem:[#allocation7 + $0x140] ss:$16 sps:$4 sm:$0xff]  }
  0x72   :  { %1775 = vmatprep.subr.bf16.mxu1 %v5551_v29  ;;  %1793 = vmatprep.mubr.bf16.mxu1 %v6378_v51  ;;  %v5587_v57 = vld [vmem:[#allocation7 + $0x344] ss:$16 sps:$4 sm:$0xff]   ;;  %v5590_v59 = vld [vmem:[#allocation7 + $0x340] ss:$16 sps:$4 sm:$0xff]  }
  0x73   :  { %v5591_v60 = vld [vmem:[#allocation7 + $0x124] ss:$16 sps:$4 sm:$0xff]   ;;  %v5595_v62 = vld [vmem:[#allocation7 + $0x120] ss:$16 sps:$4 sm:$0xff]  }
  0x74   :  { %1735 = vmatpush1.bf16.msra.mxu0 %v5553_v30  ;;  %v5593_v61 = vld [vmem:[#allocation7 + $0x324] ss:$16 sps:$4 sm:$0xff]   ;;  %v5596_v63 = vld [vmem:[#allocation7 + $0x320] ss:$16 sps:$4 sm:$0xff]  }
  0x75   :  { %1776 = vmatpush1.bf16.msra.mxu1 %v5554_v31  ;;  %1736 = vmatprep.subr.bf16.mxu0 %v5555_v32  ;;  %v5597_v0 = vld [vmem:[#allocation7 + $0x104] ss:$16 sps:$4 sm:$0xff]   ;;  %v5601_v2 = vld [vmem:[#allocation7 + $0x100] ss:$16 sps:$4 sm:$0xff]   ;;  %v6388_v32 = vld [vmem:[#allocation2 + $0x10] sm:$0xff] }
  0x76   :  { %1777 = vmatprep.subr.bf16.mxu1 %v5557_v33  ;;  %v5599_v1 = vld [vmem:[#allocation7 + $0x304] ss:$16 sps:$4 sm:$0xff]   ;;  %v5602_v3 = vld [vmem:[#allocation7 + $0x300] ss:$16 sps:$4 sm:$0xff]  }
  0x77   :  { %v5609_v4 = vld [vmem:[#allocation7 + $0x4e4] ss:$16 sps:$4 sm:$0xff]   ;;  %v5607_v8 = vld [vmem:[#allocation7 + $0x4e0] ss:$16 sps:$4 sm:$0xff]  }
  0x78   :  { %1737 = vmatpush2.bf16.msra.mxu0 %v5559_v34  ;;  %v5612_v5 = vld [vmem:[#allocation7 + $0x6e4] ss:$16 sps:$4 sm:$0xff]   ;;  %v5610_v9 = vld [vmem:[#allocation7 + $0x6e0] ss:$16 sps:$4 sm:$0xff]  }
  0x79   :  { %1778 = vmatpush2.bf16.msra.mxu1 %v5560_v35  ;;  %1738 = vmatprep.subr.bf16.mxu0 %v5561_v36  ;;  %v5615_v10 = vld [vmem:[#allocation7 + $0x4c4] ss:$16 sps:$4 sm:$0xff]   ;;  %v5613_v12 = vld [vmem:[#allocation7 + $0x4c0] ss:$16 sps:$4 sm:$0xff]   ;;  %v6394_v36 = vcombine.high %v6388_v32, %v6388_v32 }
  0x7a   :  { %1779 = vmatprep.subr.bf16.mxu1 %v5563_v37  ;;  %v5618_v11 = vld [vmem:[#allocation7 + $0x6c4] ss:$16 sps:$4 sm:$0xff]   ;;  %v5616_v13 = vld [vmem:[#allocation7 + $0x6c0] ss:$16 sps:$4 sm:$0xff]  }
  0x7b   :  { %v5621_v14 = vld [vmem:[#allocation7 + $0x4a4] ss:$16 sps:$4 sm:$0xff]   ;;  %v5619_v16 = vld [vmem:[#allocation7 + $0x4a0] ss:$16 sps:$4 sm:$0xff]  }
  0x7c   :  { %1739 = vmatpush2.bf16.msra.mxu0 %v5565_v38  ;;  %v5624_v15 = vld [vmem:[#allocation7 + $0x6a4] ss:$16 sps:$4 sm:$0xff]   ;;  %v5622_v17 = vld [vmem:[#allocation7 + $0x6a0] ss:$16 sps:$4 sm:$0xff]  }
  0x7d   :  { %1780 = vmatpush2.bf16.msra.mxu1 %v5566_v39  ;;  %1740 = vmatprep.subr.bf16.mxu0 %v5567_v40  ;;  %v5627_v18 = vld [vmem:[#allocation7 + $0x484] ss:$16 sps:$4 sm:$0xff]   ;;  %v5625_v20 = vld [vmem:[#allocation7 + $0x480] ss:$16 sps:$4 sm:$0xff]  }
  0x7e   :  { %1781 = vmatprep.subr.bf16.mxu1 %v5569_v41  ;;  %v5630_v19 = vld [vmem:[#allocation7 + $0x684] ss:$16 sps:$4 sm:$0xff]   ;;  %v5628_v21 = vld [vmem:[#allocation7 + $0x680] ss:$16 sps:$4 sm:$0xff]  }
  0x7f   :  { %v5633_v22 = vld [vmem:[#allocation7 + $0x464] ss:$16 sps:$4 sm:$0xff]   ;;  %v5631_v24 = vld [vmem:[#allocation7 + $0x460] ss:$16 sps:$4 sm:$0xff]  }
  0x80   :  { %1741 = vmatpush2.bf16.msra.mxu0 %v5571_v42  ;;  %v5636_v23 = vld [vmem:[#allocation7 + $0x664] ss:$16 sps:$4 sm:$0xff]   ;;  %v5634_v25 = vld [vmem:[#allocation7 + $0x660] ss:$16 sps:$4 sm:$0xff]  }
  0x81   :  { %1782 = vmatpush2.bf16.msra.mxu1 %v5572_v43  ;;  %1742 = vmatprep.subr.bf16.mxu0 %v5573_v44  ;;  %v5639_v26 = vld [vmem:[#allocation7 + $0x444] ss:$16 sps:$4 sm:$0xff]   ;;  %v5637_v28 = vld [vmem:[#allocation7 + $0x440] ss:$16 sps:$4 sm:$0xff]  }
  0x82   :  { %1783 = vmatprep.subr.bf16.mxu1 %v5575_v45  ;;  %v5642_v27 = vld [vmem:[#allocation7 + $0x644] ss:$16 sps:$4 sm:$0xff]   ;;  %v5640_v29 = vld [vmem:[#allocation7 + $0x640] ss:$16 sps:$4 sm:$0xff]  }
  0x83   :  { %v5645_v30 = vld [vmem:[#allocation7 + $0x424] ss:$16 sps:$4 sm:$0xff]   ;;  %v5643_v34 = vld [vmem:[#allocation7 + $0x420] ss:$16 sps:$4 sm:$0xff]  }
  0x84   :  { %1743 = vmatpush2.bf16.msra.mxu0 %v5577_v49  ;;  %v5648_v31 = vld [vmem:[#allocation7 + $0x624] ss:$16 sps:$4 sm:$0xff]   ;;  %v5646_v35 = vld [vmem:[#allocation7 + $0x620] ss:$16 sps:$4 sm:$0xff]  }
  0x85   :  { %1784 = vmatpush2.bf16.msra.mxu1 %v5578_v50  ;;  %1744 = vmatprep.subr.bf16.mxu0 %v5579_v52  ;;  %v6390_v33 = vld [vmem:[#allocation2 + $0x18] sm:$0xff] }
  0x86   :  { %1785 = vmatprep.subr.bf16.mxu1 %v5581_v53  ;;  %v6398_v37 = vcombine.high %v6390_v33, %v6390_v33  ;;  %v5651_v38 = vld [vmem:[#allocation7 + $0x404] ss:$16 sps:$4 sm:$0xff]   ;;  %v5649_v40 = vld [vmem:[#allocation7 + $0x400] ss:$16 sps:$4 sm:$0xff]  }
  0x87   :  { %v5654_v39 = vld [vmem:[#allocation7 + $0x604] ss:$16 sps:$4 sm:$0xff]   ;;  %v5652_v41 = vld [vmem:[#allocation7 + $0x600] ss:$16 sps:$4 sm:$0xff]  }
  0x88   :  { %1745 = vmatpush2.bf16.msra.mxu0 %v5583_v54  ;;  %v5657_v42 = vld [vmem:[#allocation7 + $0x5e4] ss:$16 sps:$4 sm:$0xff]   ;;  %v5655_v44 = vld [vmem:[#allocation7 + $0x5e0] ss:$16 sps:$4 sm:$0xff]  }
  0x89   :  { %1786 = vmatpush2.bf16.msra.mxu1 %v5584_v55  ;;  %1746 = vmatprep.subr.bf16.mxu0 %v5585_v56  ;;  %v5660_v43 = vld [vmem:[#allocation7 + $0x7e4] ss:$16 sps:$4 sm:$0xff]   ;;  %v5658_v45 = vld [vmem:[#allocation7 + $0x7e0] ss:$16 sps:$4 sm:$0xff]  }
  0x8a   :  { %1787 = vmatprep.subr.bf16.mxu1 %v5587_v57  ;;  %v5663_v46 = vld [vmem:[#allocation7 + $0x5c4] ss:$16 sps:$4 sm:$0xff]   ;;  %v5661_v49 = vld [vmem:[#allocation7 + $0x5c0] ss:$16 sps:$4 sm:$0xff]  }
  0x8b   :  { %v5666_v48 = vld [vmem:[#allocation7 + $0x7c4] ss:$16 sps:$4 sm:$0xff]   ;;  %v5664_v50 = vld [vmem:[#allocation7 + $0x7c0] ss:$16 sps:$4 sm:$0xff]  }
  0x8c   :  { %1747 = vmatpush2.bf16.msra.mxu0 %v5589_v58  ;;  %v5669_v52 = vld [vmem:[#allocation7 + $0x5a4] ss:$16 sps:$4 sm:$0xff]   ;;  %v5667_v54 = vld [vmem:[#allocation7 + $0x5a0] ss:$16 sps:$4 sm:$0xff]  }
  0x8d   :  { %1788 = vmatpush2.bf16.msra.mxu1 %v5590_v59  ;;  %1748 = vmatprep.subr.bf16.mxu0 %v5591_v60  ;;  %v5672_v53 = vld [vmem:[#allocation7 + $0x7a4] ss:$16 sps:$4 sm:$0xff]   ;;  %v5670_v55 = vld [vmem:[#allocation7 + $0x7a0] ss:$16 sps:$4 sm:$0xff]  }
  0x8e   :  { %1789 = vmatprep.subr.bf16.mxu1 %v5593_v61  ;;  %v5675_v56 = vld [vmem:[#allocation7 + $0x584] ss:$16 sps:$4 sm:$0xff]   ;;  %v5673_v58 = vld [vmem:[#allocation7 + $0x580] ss:$16 sps:$4 sm:$0xff]  }
  0x8f   :  { %v5678_v57 = vld [vmem:[#allocation7 + $0x784] ss:$16 sps:$4 sm:$0xff]   ;;  %v5676_v59 = vld [vmem:[#allocation7 + $0x780] ss:$16 sps:$4 sm:$0xff]  }
  0x90   :  { %1749 = vmatpush2.bf16.msra.mxu0 %v5595_v62  ;;  %v5681_v60 = vld [vmem:[#allocation7 + $0x564] ss:$16 sps:$4 sm:$0xff]   ;;  %v5679_v62 = vld [vmem:[#allocation7 + $0x560] ss:$16 sps:$4 sm:$0xff]  }
  0x91   :  { %1790 = vmatpush2.bf16.msra.mxu1 %v5596_v63  ;;  %1750 = vmatprep.subr.bf16.mxu0 %v5597_v0  ;;  %v5684_v61 = vld [vmem:[#allocation7 + $0x764] ss:$16 sps:$4 sm:$0xff]   ;;  %v5682_v63 = vld [vmem:[#allocation7 + $0x760] ss:$16 sps:$4 sm:$0xff]  }
  0x92   :  { %1791 = vmatprep.subr.bf16.mxu1 %v5599_v1  ;;  %v5687_v0 = vld [vmem:[#allocation7 + $0x544] ss:$16 sps:$4 sm:$0xff]  }
  0x93   :  { %v5690_v1 = vld [vmem:[#allocation7 + $0x744] ss:$16 sps:$4 sm:$0xff]  }
  0x94   :  { %1751 = vmatpush2.bf16.msra.mxu0 %v5601_v2  ;;  %v5685_v2 = vld [vmem:[#allocation7 + $0x540] ss:$16 sps:$4 sm:$0xff]  }
  0x95   :  { %1792 = vmatpush2.bf16.msra.mxu1 %v5602_v3  ;;  %1802 = vmatprep.subr.bf16.mxu0 %v5609_v4  ;;  %v5688_v3 = vld [vmem:[#allocation7 + $0x740] ss:$16 sps:$4 sm:$0xff]   ;;  %v5693_v4 = vld [vmem:[#allocation7 + $0x524] ss:$16 sps:$4 sm:$0xff]  }
  0x96   :  { %1843 = vmatprep.subr.bf16.mxu1 %v5612_v5  ;;  %v5696_v5 = vld [vmem:[#allocation7 + $0x724] ss:$16 sps:$4 sm:$0xff]  }
  0x97   :  { %1753 = vmatmul.mubr.bf16.vlgmr.msra.gmra.mxu0 %v6382_v6 }
  0x98   :  { %1794 = vmatmul.mubr.bf16.vlgmr.msra.gmra.mxu1 %v6384_v7  ;;  %1803 = vmatpush1.bf16.msra.mxu0 %v5607_v8  ;;  %v5691_v8 = vld [vmem:[#allocation7 + $0x520] ss:$16 sps:$4 sm:$0xff]  }
  0x99   :  { %1844 = vmatpush1.bf16.msra.mxu1 %v5610_v9  ;;  %1804 = vmatprep.subr.bf16.mxu0 %v5615_v10  ;;  %v5694_v9 = vld [vmem:[#allocation7 + $0x720] ss:$16 sps:$4 sm:$0xff]   ;;  %v5699_v10 = vld [vmem:[#allocation7 + $0x504] ss:$16 sps:$4 sm:$0xff]  }
  0x9a   :  { %1845 = vmatprep.subr.bf16.mxu1 %v5618_v11  ;;  %1834 = vmatprep.mubr.bf16.mxu0 %v6394_v36  ;;  %v5702_v11 = vld [vmem:[#allocation7 + $0x704] ss:$16 sps:$4 sm:$0xff]  }
  0x9b   :  { %1875 = vmatprep.mubr.bf16.mxu1 %v6398_v37 }
  0x9c   :  { %1805 = vmatpush1.bf16.msra.mxu0 %v5613_v12  ;;  %v5697_v12 = vld [vmem:[#allocation7 + $0x500] ss:$16 sps:$4 sm:$0xff]  }
  0x9d   :  { %1846 = vmatpush1.bf16.msra.mxu1 %v5616_v13  ;;  %1806 = vmatprep.subr.bf16.mxu0 %v5621_v14  ;;  %v5700_v13 = vld [vmem:[#allocation7 + $0x700] ss:$16 sps:$4 sm:$0xff]   ;;  %v5709_v14 = vld [vmem:[#allocation7 + $0xec] ss:$16 sps:$4 sm:$0xff]  }
  0x9e   :  { %1847 = vmatprep.subr.bf16.mxu1 %v5624_v15  ;;  %v5712_v15 = vld [vmem:[#allocation7 + $0x2ec] ss:$16 sps:$4 sm:$0xff]  }
  0xa0   :  { %1807 = vmatpush1.bf16.msra.mxu0 %v5619_v16  ;;  %v6404_v16 = vcombine.low %v6388_v32, %v6388_v32  ;;  %v5733_v32 = vld [vmem:[#allocation7 + $0x6c] ss:$16 sps:$4 sm:$0xff]  }
  0xa1   :  { %1848 = vmatpush1.bf16.msra.mxu1 %v5622_v17  ;;  %1808 = vmatprep.subr.bf16.mxu0 %v5627_v18  ;;  %v6408_v17 = vcombine.low %v6390_v33, %v6390_v33  ;;  %v5707_v18 = vld [vmem:[#allocation7 + $0xe8] ss:$16 sps:$4 sm:$0xff]   ;;  %v5736_v33 = vld [vmem:[#allocation7 + $0x26c] ss:$16 sps:$4 sm:$0xff]  }
  0xa2   :  { %1849 = vmatprep.subr.bf16.mxu1 %v5630_v19  ;;  %v5710_v19 = vld [vmem:[#allocation7 + $0x2e8] ss:$16 sps:$4 sm:$0xff]  }
  0xa4   :  { %1809 = vmatpush1.bf16.msra.mxu0 %v5625_v20  ;;  %v5715_v20 = vld [vmem:[#allocation7 + $0xcc] ss:$16 sps:$4 sm:$0xff]  }
  0xa5   :  { %1850 = vmatpush1.bf16.msra.mxu1 %v5628_v21  ;;  %1810 = vmatprep.subr.bf16.mxu0 %v5633_v22  ;;  %v5718_v21 = vld [vmem:[#allocation7 + $0x2cc] ss:$16 sps:$4 sm:$0xff]   ;;  %v5713_v22 = vld [vmem:[#allocation7 + $0xc8] ss:$16 sps:$4 sm:$0xff]  }
  0xa6   :  { %1851 = vmatprep.subr.bf16.mxu1 %v5636_v23  ;;  %v5716_v23 = vld [vmem:[#allocation7 + $0x2c8] ss:$16 sps:$4 sm:$0xff]  }
  0xa8   :  { %1811 = vmatpush1.bf16.msra.mxu0 %v5631_v24  ;;  %v5721_v24 = vld [vmem:[#allocation7 + $0xac] ss:$16 sps:$4 sm:$0xff]  }
  0xa9   :  { %1852 = vmatpush1.bf16.msra.mxu1 %v5634_v25  ;;  %1812 = vmatprep.subr.bf16.mxu0 %v5639_v26  ;;  %v5724_v25 = vld [vmem:[#allocation7 + $0x2ac] ss:$16 sps:$4 sm:$0xff]   ;;  %v5719_v26 = vld [vmem:[#allocation7 + $0xa8] ss:$16 sps:$4 sm:$0xff]  }
  0xaa   :  { %1853 = vmatprep.subr.bf16.mxu1 %v5642_v27  ;;  %v5722_v27 = vld [vmem:[#allocation7 + $0x2a8] ss:$16 sps:$4 sm:$0xff]  }
  0xac   :  { %1813 = vmatpush1.bf16.msra.mxu0 %v5637_v28  ;;  %v5727_v28 = vld [vmem:[#allocation7 + $0x8c] ss:$16 sps:$4 sm:$0xff]  }
  0xad   :  { %1854 = vmatpush1.bf16.msra.mxu1 %v5640_v29  ;;  %1814 = vmatprep.subr.bf16.mxu0 %v5645_v30  ;;  %v5730_v29 = vld [vmem:[#allocation7 + $0x28c] ss:$16 sps:$4 sm:$0xff]   ;;  %v5725_v30 = vld [vmem:[#allocation7 + $0x88] ss:$16 sps:$4 sm:$0xff]  }
  0xae   :  { %1855 = vmatprep.subr.bf16.mxu1 %v5648_v31  ;;  %v5728_v31 = vld [vmem:[#allocation7 + $0x288] ss:$16 sps:$4 sm:$0xff]  }
  0xb0   :  { %1815 = vmatpush1.bf16.msra.mxu0 %v5643_v34  ;;  %v5731_v34 = vld [vmem:[#allocation7 + $0x68] ss:$16 sps:$4 sm:$0xff]  }
  0xb1   :  { %1856 = vmatpush1.bf16.msra.mxu1 %v5646_v35  ;;  %1816 = vmatprep.subr.bf16.mxu0 %v5651_v38  ;;  %v5742_v35 = vld [vmem:[#allocation7 + $0x24c] ss:$16 sps:$4 sm:$0xff]   ;;  %v5737_v38 = vld [vmem:[#allocation7 + $0x48] ss:$16 sps:$4 sm:$0xff]  }
  0xb2   :  { %1857 = vmatprep.subr.bf16.mxu1 %v5654_v39  ;;  %v5740_v39 = vld [vmem:[#allocation7 + $0x248] ss:$16 sps:$4 sm:$0xff]  }
  0xb4   :  { %1817 = vmatpush1.bf16.msra.mxu0 %v5649_v40  ;;  %v5745_v40 = vld [vmem:[#allocation7 + $0x2c] ss:$16 sps:$4 sm:$0xff]  }
  0xb5   :  { %1858 = vmatpush1.bf16.msra.mxu1 %v5652_v41  ;;  %1818 = vmatprep.subr.bf16.mxu0 %v5657_v42  ;;  %v5748_v41 = vld [vmem:[#allocation7 + $0x22c] ss:$16 sps:$4 sm:$0xff]   ;;  %v5743_v42 = vld [vmem:[#allocation7 + $0x28] ss:$16 sps:$4 sm:$0xff]  }
  0xb6   :  { %1859 = vmatprep.subr.bf16.mxu1 %v5660_v43  ;;  %v5746_v43 = vld [vmem:[#allocation7 + $0x228] ss:$16 sps:$4 sm:$0xff]  }
  0xb8   :  { %1819 = vmatpush2.bf16.msra.mxu0 %v5655_v44  ;;  %v5751_v44 = vld [vmem:[#allocation7 + $0xc] ss:$16 sps:$4 sm:$0xff]  }
  0xb9   :  { %1860 = vmatpush2.bf16.msra.mxu1 %v5658_v45  ;;  %1820 = vmatprep.subr.bf16.mxu0 %v5663_v46  ;;  %v5754_v45 = vld [vmem:[#allocation7 + $0x20c] ss:$16 sps:$4 sm:$0xff]   ;;  %v5749_v46 = vld [vmem:[#allocation7 + $0x8] ss:$16 sps:$4 sm:$0xff]  }
  0xba   :  { %1861 = vmatprep.subr.bf16.mxu1 %v5666_v48  ;;  %v5752_v48 = vld [vmem:[#allocation7 + $0x208] ss:$16 sps:$4 sm:$0xff]  }
  0xbc   :  { %1821 = vmatpush2.bf16.msra.mxu0 %v5661_v49  ;;  %v5757_v49 = vld [vmem:[#allocation7 + $0x1ec] ss:$16 sps:$4 sm:$0xff]  }
  0xbd   :  { %1862 = vmatpush2.bf16.msra.mxu1 %v5664_v50  ;;  %1822 = vmatprep.subr.bf16.mxu0 %v5669_v52  ;;  %v5760_v50 = vld [vmem:[#allocation7 + $0x3ec] ss:$16 sps:$4 sm:$0xff]   ;;  %v5755_v52 = vld [vmem:[#allocation7 + $0x1e8] ss:$16 sps:$4 sm:$0xff]  }
  0xbe   :  { %1863 = vmatprep.subr.bf16.mxu1 %v5672_v53  ;;  %v5758_v53 = vld [vmem:[#allocation7 + $0x3e8] ss:$16 sps:$4 sm:$0xff]  }
  0xc0   :  { %1823 = vmatpush2.bf16.msra.mxu0 %v5667_v54  ;;  %v5763_v54 = vld [vmem:[#allocation7 + $0x1cc] ss:$16 sps:$4 sm:$0xff]  }
  0xc1   :  { %1864 = vmatpush2.bf16.msra.mxu1 %v5670_v55  ;;  %1824 = vmatprep.subr.bf16.mxu0 %v5675_v56  ;;  %v5766_v55 = vld [vmem:[#allocation7 + $0x3cc] ss:$16 sps:$4 sm:$0xff]   ;;  %v5761_v56 = vld [vmem:[#allocation7 + $0x1c8] ss:$16 sps:$4 sm:$0xff]  }
  0xc2   :  { %1865 = vmatprep.subr.bf16.mxu1 %v5678_v57  ;;  %v5764_v57 = vld [vmem:[#allocation7 + $0x3c8] ss:$16 sps:$4 sm:$0xff]  }
  0xc4   :  { %1825 = vmatpush2.bf16.msra.mxu0 %v5673_v58  ;;  %v5769_v58 = vld [vmem:[#allocation7 + $0x1ac] ss:$16 sps:$4 sm:$0xff]  }
  0xc5   :  { %1866 = vmatpush2.bf16.msra.mxu1 %v5676_v59  ;;  %1826 = vmatprep.subr.bf16.mxu0 %v5681_v60  ;;  %v5772_v59 = vld [vmem:[#allocation7 + $0x3ac] ss:$16 sps:$4 sm:$0xff]   ;;  %v5767_v60 = vld [vmem:[#allocation7 + $0x1a8] ss:$16 sps:$4 sm:$0xff]  }
  0xc6   :  { %1867 = vmatprep.subr.bf16.mxu1 %v5684_v61  ;;  %v5770_v61 = vld [vmem:[#allocation7 + $0x3a8] ss:$16 sps:$4 sm:$0xff]  }
  0xc8   :  { %1827 = vmatpush2.bf16.msra.mxu0 %v5679_v62  ;;  %v5775_v62 = vld [vmem:[#allocation7 + $0x18c] ss:$16 sps:$4 sm:$0xff]  }
  0xc9   :  { %1868 = vmatpush2.bf16.msra.mxu1 %v5682_v63  ;;  %1828 = vmatprep.subr.bf16.mxu0 %v5687_v0  ;;  %v5778_v63 = vld [vmem:[#allocation7 + $0x38c] ss:$16 sps:$4 sm:$0xff]   ;;  %v5773_v0 = vld [vmem:[#allocation7 + $0x188] ss:$16 sps:$4 sm:$0xff]  }
  0xca   :  { %1869 = vmatprep.subr.bf16.mxu1 %v5690_v1  ;;  %v5776_v1 = vld [vmem:[#allocation7 + $0x388] ss:$16 sps:$4 sm:$0xff]  }
  0xcc   :  { %1829 = vmatpush2.bf16.msra.mxu0 %v5685_v2  ;;  %v5781_v2 = vld [vmem:[#allocation7 + $0x16c] ss:$16 sps:$4 sm:$0xff]  }
  0xcd   :  { %1870 = vmatpush2.bf16.msra.mxu1 %v5688_v3  ;;  %1830 = vmatprep.subr.bf16.mxu0 %v5693_v4  ;;  %v5784_v3 = vld [vmem:[#allocation7 + $0x36c] ss:$16 sps:$4 sm:$0xff]   ;;  %v5779_v4 = vld [vmem:[#allocation7 + $0x168] ss:$16 sps:$4 sm:$0xff]  }
  0xce   :  { %1871 = vmatprep.subr.bf16.mxu1 %v5696_v5  ;;  %v5782_v5 = vld [vmem:[#allocation7 + $0x368] ss:$16 sps:$4 sm:$0xff]  }
  0xd0   :  { %1831 = vmatpush2.bf16.msra.mxu0 %v5691_v8  ;;  %v5787_v8 = vld [vmem:[#allocation7 + $0x14c] ss:$16 sps:$4 sm:$0xff]  }
  0xd1   :  { %1872 = vmatpush2.bf16.msra.mxu1 %v5694_v9  ;;  %1832 = vmatprep.subr.bf16.mxu0 %v5699_v10  ;;  %v5790_v9 = vld [vmem:[#allocation7 + $0x34c] ss:$16 sps:$4 sm:$0xff]   ;;  %v5785_v10 = vld [vmem:[#allocation7 + $0x148] ss:$16 sps:$4 sm:$0xff]  }
  0xd2   :  { %1873 = vmatprep.subr.bf16.mxu1 %v5702_v11  ;;  %v5788_v11 = vld [vmem:[#allocation7 + $0x348] ss:$16 sps:$4 sm:$0xff]  }
  0xd4   :  { %1833 = vmatpush2.bf16.msra.mxu0 %v5697_v12  ;;  %v5793_v12 = vld [vmem:[#allocation7 + $0x12c] ss:$16 sps:$4 sm:$0xff]  }
  0xd5   :  { %1874 = vmatpush2.bf16.msra.mxu1 %v5700_v13  ;;  %1884 = vmatprep.subr.bf16.mxu0 %v5709_v14  ;;  %v5796_v13 = vld [vmem:[#allocation7 + $0x32c] ss:$16 sps:$4 sm:$0xff]   ;;  %v5791_v14 = vld [vmem:[#allocation7 + $0x128] ss:$16 sps:$4 sm:$0xff]  }
  0xd6   :  { %1925 = vmatprep.subr.bf16.mxu1 %v5712_v15  ;;  %v5794_v15 = vld [vmem:[#allocation7 + $0x328] ss:$16 sps:$4 sm:$0xff]  }
  0xd7   :  { %1835 = vmatmul.mubr.bf16.vlgmr.msra.gmra.mxu0 %v6404_v16 }
  0xd8   :  { %1876 = vmatmul.mubr.bf16.vlgmr.msra.gmra.mxu1 %v6408_v17  ;;  %1885 = vmatpush1.bf16.msra.mxu0 %v5707_v18  ;;  %v5799_v18 = vld [vmem:[#allocation7 + $0x10c] ss:$16 sps:$4 sm:$0xff]  }
  0xd9   :  { %1926 = vmatpush1.bf16.msra.mxu1 %v5710_v19  ;;  %1886 = vmatprep.subr.bf16.mxu0 %v5715_v20  ;;  %v5802_v19 = vld [vmem:[#allocation7 + $0x30c] ss:$16 sps:$4 sm:$0xff]   ;;  %v5797_v20 = vld [vmem:[#allocation7 + $0x108] ss:$16 sps:$4 sm:$0xff]  }
  0xda   :  { %1927 = vmatprep.subr.bf16.mxu1 %v5718_v21  ;;  %1916 = vmatprep.mubr.bf16.mxu0 %v6376_v47  ;;  %v5734_v47 = vld [vmem:[#allocation7 + $0x268] ss:$16 sps:$4 sm:$0xff]  }
  0xdb   :  { %1957 = vmatprep.mubr.bf16.mxu1 %v6378_v51  ;;  %v5739_v51 = vld [vmem:[#allocation7 + $0x4c] ss:$16 sps:$4 sm:$0xff]   ;;  %v5800_v21 = vld [vmem:[#allocation7 + $0x308] ss:$16 sps:$4 sm:$0xff]  }
  0xdc   :  { %1887 = vmatpush1.bf16.msra.mxu0 %v5713_v22  ;;  %v5805_v22 = vld [vmem:[#allocation7 + $0x4ec] ss:$16 sps:$4 sm:$0xff]  }
  0xdd   :  { %1928 = vmatpush1.bf16.msra.mxu1 %v5716_v23  ;;  %1888 = vmatprep.subr.bf16.mxu0 %v5721_v24  ;;  %v5808_v23 = vld [vmem:[#allocation7 + $0x6ec] ss:$16 sps:$4 sm:$0xff]   ;;  %v5803_v24 = vld [vmem:[#allocation7 + $0x4e8] ss:$16 sps:$4 sm:$0xff]  }
  0xde   :  { %1929 = vmatprep.subr.bf16.mxu1 %v5724_v25  ;;  %v5806_v25 = vld [vmem:[#allocation7 + $0x6e8] ss:$16 sps:$4 sm:$0xff]  }
  0xe0   :  { %1889 = vmatpush1.bf16.msra.mxu0 %v5719_v26  ;;  %v5811_v26 = vld [vmem:[#allocation7 + $0x4cc] ss:$16 sps:$4 sm:$0xff]  }
  0xe1   :  { %1930 = vmatpush1.bf16.msra.mxu1 %v5722_v27  ;;  %1890 = vmatprep.subr.bf16.mxu0 %v5727_v28  ;;  %v5814_v27 = vld [vmem:[#allocation7 + $0x6cc] ss:$16 sps:$4 sm:$0xff]   ;;  %v5809_v28 = vld [vmem:[#allocation7 + $0x4c8] ss:$16 sps:$4 sm:$0xff]  }
  0xe2   :  { %1931 = vmatprep.subr.bf16.mxu1 %v5730_v29  ;;  %v5812_v29 = vld [vmem:[#allocation7 + $0x6c8] ss:$16 sps:$4 sm:$0xff]  }
  0xe4   :  { %1891 = vmatpush1.bf16.msra.mxu0 %v5725_v30  ;;  %v5817_v30 = vld [vmem:[#allocation7 + $0x4ac] ss:$16 sps:$4 sm:$0xff]  }
  0xe5   :  { %1932 = vmatpush1.bf16.msra.mxu1 %v5728_v31  ;;  %1892 = vmatprep.subr.bf16.mxu0 %v5733_v32  ;;  %v5820_v31 = vld [vmem:[#allocation7 + $0x6ac] ss:$16 sps:$4 sm:$0xff]   ;;  %v5815_v32 = vld [vmem:[#allocation7 + $0x4a8] ss:$16 sps:$4 sm:$0xff]  }
  0xe6   :  { %1933 = vmatprep.subr.bf16.mxu1 %v5736_v33  ;;  %v5818_v33 = vld [vmem:[#allocation7 + $0x6a8] ss:$16 sps:$4 sm:$0xff]  }
  0xe8   :  { %1893 = vmatpush1.bf16.msra.mxu0 %v5731_v34  ;;  %v5823_v34 = vld [vmem:[#allocation7 + $0x48c] ss:$16 sps:$4 sm:$0xff]  }
  0xe9   :  { %1934 = vmatpush1.bf16.msra.mxu1 %v5734_v47  ;;  %1894 = vmatprep.subr.bf16.mxu0 %v5739_v51  ;;  %v5821_v47 = vld [vmem:[#allocation7 + $0x488] ss:$16 sps:$4 sm:$0xff]   ;;  %v5829_v51 = vld [vmem:[#allocation7 + $0x46c] ss:$16 sps:$4 sm:$0xff]  }
  0xea   :  { %1935 = vmatprep.subr.bf16.mxu1 %v5742_v35  ;;  %v5832_v35 = vld [vmem:[#allocation7 + $0x66c] ss:$16 sps:$4 sm:$0xff]  }
  0xec   :  { %1895 = vmatpush1.bf16.msra.mxu0 %v5737_v38  ;;  %v5827_v38 = vld [vmem:[#allocation7 + $0x468] ss:$16 sps:$4 sm:$0xff]  }
  0xed   :  { %1936 = vmatpush1.bf16.msra.mxu1 %v5740_v39  ;;  %1896 = vmatprep.subr.bf16.mxu0 %v5745_v40  ;;  %v5830_v39 = vld [vmem:[#allocation7 + $0x668] ss:$16 sps:$4 sm:$0xff]   ;;  %v5835_v40 = vld [vmem:[#allocation7 + $0x44c] ss:$16 sps:$4 sm:$0xff]  }
  0xee   :  { %1937 = vmatprep.subr.bf16.mxu1 %v5748_v41  ;;  %v5836_v41 = vld [vmem:[#allocation7 + $0x648] ss:$16 sps:$4 sm:$0xff]  }
  0xf0   :  { %1897 = vmatpush1.bf16.msra.mxu0 %v5743_v42  ;;  %v5841_v42 = vld [vmem:[#allocation7 + $0x42c] ss:$16 sps:$4 sm:$0xff]  }
  0xf1   :  { %1938 = vmatpush1.bf16.msra.mxu1 %v5746_v43  ;;  %1898 = vmatprep.subr.bf16.mxu0 %v5751_v44  ;;  %v5844_v43 = vld [vmem:[#allocation7 + $0x62c] ss:$16 sps:$4 sm:$0xff]   ;;  %v5839_v44 = vld [vmem:[#allocation7 + $0x428] ss:$16 sps:$4 sm:$0xff]  }
  0xf2   :  { %1939 = vmatprep.subr.bf16.mxu1 %v5754_v45  ;;  %v5842_v45 = vld [vmem:[#allocation7 + $0x628] ss:$16 sps:$4 sm:$0xff]  }
  0xf4   :  { %1899 = vmatpush1.bf16.msra.mxu0 %v5749_v46  ;;  %v5847_v46 = vld [vmem:[#allocation7 + $0x40c] ss:$16 sps:$4 sm:$0xff]  }
  0xf5   :  { %1940 = vmatpush1.bf16.msra.mxu1 %v5752_v48  ;;  %1900 = vmatprep.subr.bf16.mxu0 %v5757_v49  ;;  %v5850_v48 = vld [vmem:[#allocation7 + $0x60c] ss:$16 sps:$4 sm:$0xff]   ;;  %v5845_v49 = vld [vmem:[#allocation7 + $0x408] ss:$16 sps:$4 sm:$0xff]  }
  0xf6   :  { %1941 = vmatprep.subr.bf16.mxu1 %v5760_v50  ;;  %v5848_v50 = vld [vmem:[#allocation7 + $0x608] ss:$16 sps:$4 sm:$0xff]  }
  0xf8   :  { %1901 = vmatpush2.bf16.msra.mxu0 %v5755_v52  ;;  %v5853_v52 = vld [vmem:[#allocation7 + $0x5ec] ss:$16 sps:$4 sm:$0xff]  }
  0xf9   :  { %1942 = vmatpush2.bf16.msra.mxu1 %v5758_v53  ;;  %1902 = vmatprep.subr.bf16.mxu0 %v5763_v54  ;;  %v5856_v53 = vld [vmem:[#allocation7 + $0x7ec] ss:$16 sps:$4 sm:$0xff]   ;;  %v5851_v54 = vld [vmem:[#allocation7 + $0x5e8] ss:$16 sps:$4 sm:$0xff]  }
  0xfa   :  { %1943 = vmatprep.subr.bf16.mxu1 %v5766_v55  ;;  %v5854_v55 = vld [vmem:[#allocation7 + $0x7e8] ss:$16 sps:$4 sm:$0xff]  }
  0xfc   :  { %1903 = vmatpush2.bf16.msra.mxu0 %v5761_v56  ;;  %v5859_v56 = vld [vmem:[#allocation7 + $0x5cc] ss:$16 sps:$4 sm:$0xff]  }
  0xfd   :  { %1944 = vmatpush2.bf16.msra.mxu1 %v5764_v57  ;;  %1904 = vmatprep.subr.bf16.mxu0 %v5769_v58  ;;  %v5862_v57 = vld [vmem:[#allocation7 + $0x7cc] ss:$16 sps:$4 sm:$0xff]   ;;  %v5857_v58 = vld [vmem:[#allocation7 + $0x5c8] ss:$16 sps:$4 sm:$0xff]  }
  0xfe   :  { %1945 = vmatprep.subr.bf16.mxu1 %v5772_v59  ;;  %v5860_v59 = vld [vmem:[#allocation7 + $0x7c8] ss:$16 sps:$4 sm:$0xff]  }
 0x100   :  { %1905 = vmatpush2.bf16.msra.mxu0 %v5767_v60  ;;  %v5865_v60 = vld [vmem:[#allocation7 + $0x5ac] ss:$16 sps:$4 sm:$0xff]  }
 0x101   :  { %1946 = vmatpush2.bf16.msra.mxu1 %v5770_v61  ;;  %1906 = vmatprep.subr.bf16.mxu0 %v5775_v62  ;;  %v5868_v61 = vld [vmem:[#allocation7 + $0x7ac] ss:$16 sps:$4 sm:$0xff]   ;;  %v5863_v62 = vld [vmem:[#allocation7 + $0x5a8] ss:$16 sps:$4 sm:$0xff]  }
 0x102   :  { %1947 = vmatprep.subr.bf16.mxu1 %v5778_v63  ;;  %v5866_v63 = vld [vmem:[#allocation7 + $0x7a8] ss:$16 sps:$4 sm:$0xff]  }
 0x104   :  { %1907 = vmatpush2.bf16.msra.mxu0 %v5773_v0  ;;  %v5871_v0 = vld [vmem:[#allocation7 + $0x58c] ss:$16 sps:$4 sm:$0xff]  }
 0x105   :  { %1948 = vmatpush2.bf16.msra.mxu1 %v5776_v1  ;;  %1908 = vmatprep.subr.bf16.mxu0 %v5781_v2  ;;  %v5874_v1 = vld [vmem:[#allocation7 + $0x78c] ss:$16 sps:$4 sm:$0xff]   ;;  %v5869_v2 = vld [vmem:[#allocation7 + $0x588] ss:$16 sps:$4 sm:$0xff]  }
 0x106   :  { %1949 = vmatprep.subr.bf16.mxu1 %v5784_v3  ;;  %v5872_v3 = vld [vmem:[#allocation7 + $0x788] ss:$16 sps:$4 sm:$0xff]  }
 0x108   :  { %1909 = vmatpush2.bf16.msra.mxu0 %v5779_v4  ;;  %v5877_v4 = vld [vmem:[#allocation7 + $0x56c] ss:$16 sps:$4 sm:$0xff]  }
 0x109   :  { %1950 = vmatpush2.bf16.msra.mxu1 %v5782_v5  ;;  %1910 = vmatprep.subr.bf16.mxu0 %v5787_v8  ;;  %v5880_v5 = vld [vmem:[#allocation7 + $0x76c] ss:$16 sps:$4 sm:$0xff]   ;;  %v5875_v8 = vld [vmem:[#allocation7 + $0x568] ss:$16 sps:$4 sm:$0xff]  }
 0x10a   :  { %1951 = vmatprep.subr.bf16.mxu1 %v5790_v9  ;;  %v5878_v9 = vld [vmem:[#allocation7 + $0x768] ss:$16 sps:$4 sm:$0xff]  }
 0x10c   :  { %1911 = vmatpush2.bf16.msra.mxu0 %v5785_v10  ;;  %v5883_v10 = vld [vmem:[#allocation7 + $0x54c] ss:$16 sps:$4 sm:$0xff]  }
 0x10d   :  { %1952 = vmatpush2.bf16.msra.mxu1 %v5788_v11  ;;  %1912 = vmatprep.subr.bf16.mxu0 %v5793_v12  ;;  %v5886_v11 = vld [vmem:[#allocation7 + $0x74c] ss:$16 sps:$4 sm:$0xff]   ;;  %v5881_v12 = vld [vmem:[#allocation7 + $0x548] ss:$16 sps:$4 sm:$0xff]  }
 0x10e   :  { %1953 = vmatprep.subr.bf16.mxu1 %v5796_v13  ;;  %v5884_v13 = vld [vmem:[#allocation7 + $0x748] ss:$16 sps:$4 sm:$0xff]  }
 0x110   :  { %1913 = vmatpush2.bf16.msra.mxu0 %v5791_v14  ;;  %v5889_v14 = vld [vmem:[#allocation7 + $0x52c] ss:$16 sps:$4 sm:$0xff]  }
 0x111   :  { %1954 = vmatpush2.bf16.msra.mxu1 %v5794_v15  ;;  %1914 = vmatprep.subr.bf16.mxu0 %v5799_v18  ;;  %v5892_v15 = vld [vmem:[#allocation7 + $0x72c] ss:$16 sps:$4 sm:$0xff]   ;;  %v5887_v18 = vld [vmem:[#allocation7 + $0x528] ss:$16 sps:$4 sm:$0xff]  }
 0x112   :  { %1955 = vmatprep.subr.bf16.mxu1 %v5802_v19  ;;  %v5890_v19 = vld [vmem:[#allocation7 + $0x728] ss:$16 sps:$4 sm:$0xff]  }
 0x114   :  { %1915 = vmatpush2.bf16.msra.mxu0 %v5797_v20  ;;  %v5895_v20 = vld [vmem:[#allocation7 + $0x50c] ss:$16 sps:$4 sm:$0xff]  }
 0x115   :  { %1956 = vmatpush2.bf16.msra.mxu1 %v5800_v21  ;;  %1966 = vmatprep.subr.bf16.mxu0 %v5805_v22  ;;  %v5898_v21 = vld [vmem:[#allocation7 + $0x70c] ss:$16 sps:$4 sm:$0xff]   ;;  %v5893_v22 = vld [vmem:[#allocation7 + $0x508] ss:$16 sps:$4 sm:$0xff]  }
 0x116   :  { %2007 = vmatprep.subr.bf16.mxu1 %v5808_v23  ;;  %v5896_v23 = vld [vmem:[#allocation7 + $0x708] ss:$16 sps:$4 sm:$0xff]  }
 0x117   :  { %1917 = vmatmul.mubr.bf16.vlgmr.msra.gmra.mxu0 %v6382_v6  ;;  %v5826_v6 = vld [vmem:[#allocation7 + $0x68c] ss:$16 sps:$4 sm:$0xff]  }
 0x118   :  { %1958 = vmatmul.mubr.bf16.vlgmr.msra.gmra.mxu1 %v6384_v7  ;;  %1967 = vmatpush1.bf16.msra.mxu0 %v5803_v24  ;;  %v5824_v7 = vld [vmem:[#allocation7 + $0x688] ss:$16 sps:$4 sm:$0xff]   ;;  %v5901_v24 = vld [vmem:[#allocation8 + $0x74] ss:$8 sps:$4 sm:$0xff]  }
 0x119   :  { %2008 = vmatpush1.bf16.msra.mxu1 %v5806_v25  ;;  %1968 = vmatprep.subr.bf16.mxu0 %v5811_v26  ;;  %v5899_v25 = vld [vmem:[#allocation8 + $0x70] ss:$8 sps:$4 sm:$0xff]   ;;  %v5904_v26 = vld [vmem:[#allocation8 + $0x64] ss:$8 sps:$4 sm:$0xff]  }
 0x11a   :  { %2009 = vmatprep.subr.bf16.mxu1 %v5814_v27  ;;  %1998 = vmatprep.mubr.bf16.mxu0 %v6394_v36  ;;  %v5838_v36 = vld [vmem:[#allocation7 + $0x64c] ss:$16 sps:$4 sm:$0xff]  }
 0x11b   :  { %2039 = vmatprep.mubr.bf16.mxu1 %v6398_v37  ;;  %v5833_v37 = vld [vmem:[#allocation7 + $0x448] ss:$16 sps:$4 sm:$0xff]  }
 0x11c   :  { %1969 = vmatpush1.bf16.msra.mxu0 %v5809_v28 }
 0x11d   :  { %2010 = vmatpush1.bf16.msra.mxu1 %v5812_v29  ;;  %1970 = vmatprep.subr.bf16.mxu0 %v5817_v30  ;;  %v5902_v29 = vld [vmem:[#allocation8 + $0x60] ss:$8 sps:$4 sm:$0xff]  }
 0x11e   :  { %2011 = vmatprep.subr.bf16.mxu1 %v5820_v31 }
 0x120   :  { %1971 = vmatpush1.bf16.msra.mxu0 %v5815_v32  ;;  %v5907_v32 = vld [vmem:[#allocation8 + $0x54] ss:$8 sps:$4 sm:$0xff]  }
 0x121   :  { %2012 = vmatpush1.bf16.msra.mxu1 %v5818_v33  ;;  %1972 = vmatprep.subr.bf16.mxu0 %v5823_v34 }
 0x122   :  { %2013 = vmatprep.subr.bf16.mxu1 %v5826_v6  ;;  %v5905_v6 = vld [vmem:[#allocation8 + $0x50] ss:$8 sps:$4 sm:$0xff]  }
 0x124   :  { %1973 = vmatpush1.bf16.msra.mxu0 %v5821_v47 }
 0x125   :  { %2014 = vmatpush1.bf16.msra.mxu1 %v5824_v7  ;;  %1974 = vmatprep.subr.bf16.mxu0 %v5829_v51  ;;  %v5910_v51 = vld [vmem:[#allocation8 + $0x44] ss:$8 sps:$4 sm:$0xff]  }
 0x126   :  { %2015 = vmatprep.subr.bf16.mxu1 %v5832_v35  ;;  %v5947_v35 = vld [vmem:[#allocation8 + $0x170] ss:$8 sps:$4 sm:$0xff]  }
 0x128   :  { %1975 = vmatpush1.bf16.msra.mxu0 %v5827_v38  ;;  %v5952_v38 = vld [vmem:[#allocation8 + $0x164] ss:$8 sps:$4 sm:$0xff]  }
 0x129   :  { %2016 = vmatpush1.bf16.msra.mxu1 %v5830_v39  ;;  %1976 = vmatprep.subr.bf16.mxu0 %v5835_v40  ;;  %v5950_v39 = vld [vmem:[#allocation8 + $0x160] ss:$8 sps:$4 sm:$0xff]   ;;  %v5913_v40 = vld [vmem:[#allocation8 + $0x34] ss:$8 sps:$4 sm:$0xff]  }
 0x12a   :  { %2017 = vmatprep.subr.bf16.mxu1 %v5838_v36  ;;  %v5955_v36 = vld [vmem:[#allocation8 + $0x154] ss:$8 sps:$4 sm:$0xff]  }
 0x12c   :  { %1977 = vmatpush1.bf16.msra.mxu0 %v5833_v37  ;;  %v5911_v37 = vld [vmem:[#allocation8 + $0x30] ss:$8 sps:$4 sm:$0xff]  }
 0x12d   :  { %2018 = vmatpush1.bf16.msra.mxu1 %v5836_v41  ;;  %1978 = vmatprep.subr.bf16.mxu0 %v5841_v42  ;;  %v5953_v41 = vld [vmem:[#allocation8 + $0x150] ss:$8 sps:$4 sm:$0xff]   ;;  %v5916_v42 = vld [vmem:[#allocation8 + $0x24] ss:$8 sps:$4 sm:$0xff]  }
 0x12e   :  { %2019 = vmatprep.subr.bf16.mxu1 %v5844_v43  ;;  %v5958_v43 = vld [vmem:[#allocation8 + $0x144] ss:$8 sps:$4 sm:$0xff]  }
 0x130   :  { %1979 = vmatpush1.bf16.msra.mxu0 %v5839_v44  ;;  %v5914_v44 = vld [vmem:[#allocation8 + $0x20] ss:$8 sps:$4 sm:$0xff]  }
 0x131   :  { %2020 = vmatpush1.bf16.msra.mxu1 %v5842_v45  ;;  %1980 = vmatprep.subr.bf16.mxu0 %v5847_v46  ;;  %v5956_v45 = vld [vmem:[#allocation8 + $0x140] ss:$8 sps:$4 sm:$0xff]   ;;  %v5919_v46 = vld [vmem:[#allocation8 + $0x14] ss:$8 sps:$4 sm:$0xff]  }
 0x132   :  { %2021 = vmatprep.subr.bf16.mxu1 %v5850_v48  ;;  %v5961_v48 = vld [vmem:[#allocation8 + $0x134] ss:$8 sps:$4 sm:$0xff]  }
 0x134   :  { %1981 = vmatpush1.bf16.msra.mxu0 %v5845_v49  ;;  %v5917_v49 = vld [vmem:[#allocation8 + $0x10] ss:$8 sps:$4 sm:$0xff]  }
 0x135   :  { %2022 = vmatpush1.bf16.msra.mxu1 %v5848_v50  ;;  %1982 = vmatprep.subr.bf16.mxu0 %v5853_v52  ;;  %v5959_v50 = vld [vmem:[#allocation8 + $0x130] ss:$8 sps:$4 sm:$0xff]   ;;  %v5922_v52 = vld [vmem:[#allocation8 + $0x4] ss:$8 sps:$4 sm:$0xff]  }
 0x136   :  { %2023 = vmatprep.subr.bf16.mxu1 %v5856_v53  ;;  %v5964_v53 = vld [vmem:[#allocation8 + $0x124] ss:$8 sps:$4 sm:$0xff]  }
 0x138   :  { %1983 = vmatpush2.bf16.msra.mxu0 %v5851_v54  ;;  %v5920_v54 = vld [vmem:[#allocation8] ss:$8 sps:$4 sm:$0xff]  }
 0x139   :  { %2024 = vmatpush2.bf16.msra.mxu1 %v5854_v55  ;;  %1984 = vmatprep.subr.bf16.mxu0 %v5859_v56  ;;  %v5962_v55 = vld [vmem:[#allocation8 + $0x120] ss:$8 sps:$4 sm:$0xff]   ;;  %v5925_v56 = vld [vmem:[#allocation8 + $0xf4] ss:$8 sps:$4 sm:$0xff]  }
 0x13a   :  { %2025 = vmatprep.subr.bf16.mxu1 %v5862_v57  ;;  %v5967_v57 = vld [vmem:[#allocation8 + $0x114] ss:$8 sps:$4 sm:$0xff]  }
 0x13c   :  { %1985 = vmatpush2.bf16.msra.mxu0 %v5857_v58  ;;  %v5923_v58 = vld [vmem:[#allocation8 + $0xf0] ss:$8 sps:$4 sm:$0xff]  }
 0x13d   :  { %2026 = vmatpush2.bf16.msra.mxu1 %v5860_v59  ;;  %1986 = vmatprep.subr.bf16.mxu0 %v5865_v60  ;;  %v5965_v59 = vld [vmem:[#allocation8 + $0x110] ss:$8 sps:$4 sm:$0xff]   ;;  %v5928_v60 = vld [vmem:[#allocation8 + $0xe4] ss:$8 sps:$4 sm:$0xff]  }
 0x13e   :  { %2027 = vmatprep.subr.bf16.mxu1 %v5868_v61  ;;  %v5970_v61 = vld [vmem:[#allocation8 + $0x104] ss:$8 sps:$4 sm:$0xff]  }
 0x140   :  { %1987 = vmatpush2.bf16.msra.mxu0 %v5863_v62  ;;  %v5926_v62 = vld [vmem:[#allocation8 + $0xe0] ss:$8 sps:$4 sm:$0xff]  }
 0x141   :  { %2028 = vmatpush2.bf16.msra.mxu1 %v5866_v63  ;;  %1988 = vmatprep.subr.bf16.mxu0 %v5871_v0  ;;  %v5968_v63 = vld [vmem:[#allocation8 + $0x100] ss:$8 sps:$4 sm:$0xff]   ;;  %v5931_v0 = vld [vmem:[#allocation8 + $0xd4] ss:$8 sps:$4 sm:$0xff]  }
 0x142   :  { %2029 = vmatprep.subr.bf16.mxu1 %v5874_v1  ;;  %v5973_v1 = vld [vmem:[#allocation8 + $0x1f4] ss:$8 sps:$4 sm:$0xff]  }
 0x144   :  { %1989 = vmatpush2.bf16.msra.mxu0 %v5869_v2  ;;  %v5929_v2 = vld [vmem:[#allocation8 + $0xd0] ss:$8 sps:$4 sm:$0xff]  }
 0x145   :  { %2030 = vmatpush2.bf16.msra.mxu1 %v5872_v3  ;;  %1990 = vmatprep.subr.bf16.mxu0 %v5877_v4  ;;  %v5971_v3 = vld [vmem:[#allocation8 + $0x1f0] ss:$8 sps:$4 sm:$0xff]   ;;  %v5934_v4 = vld [vmem:[#allocation8 + $0xc4] ss:$8 sps:$4 sm:$0xff]  }
 0x146   :  { %2031 = vmatprep.subr.bf16.mxu1 %v5880_v5  ;;  %v5976_v5 = vld [vmem:[#allocation8 + $0x1e4] ss:$8 sps:$4 sm:$0xff]  }
 0x148   :  { %1991 = vmatpush2.bf16.msra.mxu0 %v5875_v8  ;;  %v5932_v8 = vld [vmem:[#allocation8 + $0xc0] ss:$8 sps:$4 sm:$0xff]  }
 0x149   :  { %2032 = vmatpush2.bf16.msra.mxu1 %v5878_v9  ;;  %1992 = vmatprep.subr.bf16.mxu0 %v5883_v10  ;;  %v5974_v9 = vld [vmem:[#allocation8 + $0x1e0] ss:$8 sps:$4 sm:$0xff]   ;;  %v5937_v10 = vld [vmem:[#allocation8 + $0xb4] ss:$8 sps:$4 sm:$0xff]  }
 0x14a   :  { %2033 = vmatprep.subr.bf16.mxu1 %v5886_v11  ;;  %v5979_v11 = vld [vmem:[#allocation8 + $0x1d4] ss:$8 sps:$4 sm:$0xff]  }
 0x14c   :  { %1993 = vmatpush2.bf16.msra.mxu0 %v5881_v12  ;;  %v392_v12 = vlaneseq }
 0x14d   :  { %2034 = vmatpush2.bf16.msra.mxu1 %v5884_v13  ;;  %1994 = vmatprep.subr.bf16.mxu0 %v5889_v14  ;;  %v5935_v13 = vld [vmem:[#allocation8 + $0xb0] ss:$8 sps:$4 sm:$0xff]  }
 0x14e   :  { %2035 = vmatprep.subr.bf16.mxu1 %v5892_v15  ;;  %v5977_v14 = vld [vmem:[#allocation8 + $0x1d0] ss:$8 sps:$4 sm:$0xff]   ;;  %v5940_v15 = vld [vmem:[#allocation8 + $0xa4] ss:$8 sps:$4 sm:$0xff]  }
 0x150   :  { %1995 = vmatpush2.bf16.msra.mxu0 %v5887_v18  ;;  %v5982_v18 = vld [vmem:[#allocation8 + $0x1c4] ss:$8 sps:$4 sm:$0xff]  }
 0x151   :  { %2036 = vmatpush2.bf16.msra.mxu1 %v5890_v19  ;;  %1996 = vmatprep.subr.bf16.mxu0 %v5895_v20  ;;  %v6428_v19 = vshrl.u32 %v392_v12, 7  ;;  %v5938_v20 = vld [vmem:[#allocation8 + $0xa0] ss:$8 sps:$4 sm:$0xff]  }
 0x152   :  { %2037 = vmatprep.subr.bf16.mxu1 %v5898_v21  ;;  %v5980_v21 = vld [vmem:[#allocation8 + $0x1c0] ss:$8 sps:$4 sm:$0xff]  }
 0x154   :  { %1997 = vmatpush2.bf16.msra.mxu0 %v5893_v22  ;;  %v5943_v22 = vld [vmem:[#allocation8 + $0x94] ss:$8 sps:$4 sm:$0xff]  }
 0x155   :  { %2038 = vmatpush2.bf16.msra.mxu1 %v5896_v23  ;;  %2452 = vmatprep.subr.bf16.mxu0 %v5901_v24  ;;  %v5985_v23 = vld [vmem:[#allocation8 + $0x1b4] ss:$8 sps:$4 sm:$0xff]   ;;  %v6431_v24 = vsub.s32 0, %v6428_v19 }
 0x157   :  { %v6418_v27 = vpop.f32.mrf.mxu0  ;;  %1999 = vmatmul.mubr.bf16.vlgmr.msra.gmra.mxu0 %v6404_v16  ;;  %v5949_v16 = vld [vmem:[#allocation8 + $0x174] ss:$8 sps:$4 sm:$0xff]  }
 0x158   :  { %v6420_v28 = vpop.f32.mrf.mxu1  ;;  %2040 = vmatmul.mubr.bf16.vlgmr.msra.gmra.mxu1 %v6408_v17  ;;  %2453 = vmatpush1.bf16.msra.mxu0 %v5899_v25  ;;  %v5908_v17 = vld [vmem:[#allocation8 + $0x40] ss:$8 sps:$4 sm:$0xff]   ;;  %v6436_v25 = vld [vmem:[%s6531_s3] sm:$0xf] }
 0x159   :  { %v6424_v30 = vpop.f32.mrf.mxu0  ;;  %2454 = vmatprep.subr.bf16.mxu0 %v5904_v26  ;;  %2493 = vmatprep.subr.bf16.mxu1 %v5949_v16  ;;  %v6439_v26 = vsub.s32 1, %v6428_v19 }
 0x15a   :  { %v6426_v31 = vpop.f32.mrf.mxu1  ;;  %2494 = vmatpush1.bf16.msra.mxu1 %v5947_v35  ;;  %v5988_v35 = vld [vmem:[#allocation8 + $0x1a4] ss:$8 sps:$4 sm:$0xff]  }
 0x15b   :  { %v1758_v33 = vpop.f32.mrf.mxu0  ;;  %2495 = vmatprep.subr.bf16.mxu1 %v5952_v38  ;;  %v5986_v38 = vld [vmem:[#allocation8 + $0x1a0] ss:$8 sps:$4 sm:$0xff]  }
 0x15c   :  { %v1799_v34 = vpop.f32.mrf.mxu1  ;;  %2455 = vmatpush1.bf16.msra.mxu0 %v5902_v29  ;;  %v5941_v29 = vld [vmem:[#allocation8 + $0x90] ss:$8 sps:$4 sm:$0xff]   ;;  %v5946_v33 = vld [vmem:[#allocation8 + $0x84] ss:$8 sps:$4 sm:$0xff]  }
 0x15d   :  { %v1759_v47 = vpop.f32.mrf.mxu0  ;;  %2456 = vmatprep.subr.bf16.mxu0 %v5907_v32  ;;  %v5983_v32 = vld [vmem:[#allocation8 + $0x1b0] ss:$8 sps:$4 sm:$0xff]   ;;  %v395_v34 = vrot.slane %v6436_v25, %v6431_v24 }
 0x15e   :  { %v1800_v7 = vpop.f32.mrf.mxu1  ;;  %2496 = vmatpush1.bf16.msra.mxu1 %v5950_v39  ;;  %v5944_v47 = vld [vmem:[#allocation8 + $0x80] ss:$8 sps:$4 sm:$0xff]  }
 0x15f   :  { %2497 = vmatprep.subr.bf16.mxu1 %v5955_v36  ;;  %v1755_v7 = vadd.f32 %v6418_v27, %v395_v34  ;;  %v5989_v27 = vld [vmem:[#allocation8 + $0x190] ss:$8 sps:$4 sm:$0xff]  }
 0x160   :  { %2457 = vmatpush1.bf16.msra.mxu0 %v5905_v6  ;;  %v399_v6 = vrot.slane %v6436_v25, %v6439_v26 }
 0x161   :  { %2458 = vmatprep.subr.bf16.mxu0 %v5910_v51  ;;  %v1796_v16 = vadd.f32 %v6420_v28, %v1755_v7 }
 0x162   :  { %2498 = vmatpush1.bf16.msra.mxu1 %v5953_v41  ;;  %v1757_v51 = vadd.f32 %v6424_v30, %v399_v6 }
 0x163   :  { %2499 = vmatprep.subr.bf16.mxu1 %v5958_v43 }
 0x164   :  { %2459 = vmatpush1.bf16.msra.mxu0 %v5908_v17 }
 0x165   :  { %2460 = vmatprep.subr.bf16.mxu0 %v5913_v40  ;;  %v1798_v40 = vadd.f32 %v6426_v31, %v1757_v51  ;;  %v6003_v51 = vld [vmem:[#allocation11 + $0xc4] ss:$16 sps:$4 sm:$0xff]  }
 0x166   :  { %2500 = vmatpush1.bf16.msra.mxu1 %v5956_v45 }
 0x167   :  { %2501 = vmatprep.subr.bf16.mxu1 %v5961_v48 }
 0x168   :  { %2461 = vmatpush1.bf16.msra.mxu0 %v5911_v37 }
 0x169   :  { %2462 = vmatprep.subr.bf16.mxu0 %v5916_v42  ;;  %v5991_v42 = vld [vmem:[#allocation8 + $0x194] ss:$8 sps:$4 sm:$0xff]  }
 0x16a   :  { %2502 = vmatpush1.bf16.msra.mxu1 %v5959_v50  ;;  %v5994_v50 = vld [vmem:[#allocation8 + $0x184] ss:$8 sps:$4 sm:$0xff]  }
 0x16b   :  { %2503 = vmatprep.subr.bf16.mxu1 %v5964_v53  ;;  %v5992_v53 = vld [vmem:[#allocation8 + $0x180] ss:$8 sps:$4 sm:$0xff]  }
 0x16c   :  { %2463 = vmatpush1.bf16.msra.mxu0 %v5914_v44 }
 0x16d   :  { %2464 = vmatprep.subr.bf16.mxu0 %v5919_v46 }
 0x16e   :  { %2504 = vmatpush1.bf16.msra.mxu1 %v5962_v55 }
 0x16f   :  { %2505 = vmatprep.subr.bf16.mxu1 %v5967_v57 }
 0x170   :  { %2465 = vmatpush1.bf16.msra.mxu0 %v5917_v49 }
 0x171   :  { %2466 = vmatprep.subr.bf16.mxu0 %v5922_v52 }
 0x172   :  { %2506 = vmatpush1.bf16.msra.mxu1 %v5965_v59 }
 0x173   :  { %2507 = vmatprep.subr.bf16.mxu1 %v5970_v61 }
 0x174   :  { %2467 = vmatpush1.bf16.msra.mxu0 %v5920_v54 }
 0x175   :  { %2468 = vmatprep.subr.bf16.mxu0 %v5925_v56 }
 0x176   :  { %2508 = vmatpush1.bf16.msra.mxu1 %v5968_v63  ;;  %v5995_v63 = vld [vmem:[#allocation11 + $0xe0] ss:$16 sps:$4 sm:$0xff]  }
 0x177   :  { %2509 = vmatprep.subr.bf16.mxu1 %v5973_v1  ;;  %v6000_v1 = vld [vmem:[#allocation11 + $0xec] ss:$16 sps:$4 sm:$0xff]  }
 0x178   :  { %2469 = vmatpush2.bf16.msra.mxu0 %v5923_v58 }
 0x179   :  { %2470 = vmatprep.subr.bf16.mxu0 %v5928_v60 }
 0x17a   :  { %2510 = vmatpush2.bf16.msra.mxu1 %v5971_v3  ;;  %v6453_v3 = vsub.s32 3, %v6428_v19 }
 0x17b   :  { %2511 = vmatprep.subr.bf16.mxu1 %v5976_v5 }
 0x17c   :  { %2471 = vmatpush2.bf16.msra.mxu0 %v5926_v62  ;;  %v407_v5 = vrot.slane %v6436_v25, %v6453_v3 }
 0x17d   :  { %2472 = vmatprep.subr.bf16.mxu0 %v5931_v0  ;;  %v5997_v0 = vld [vmem:[#allocation11 + $0xe4] ss:$16 sps:$4 sm:$0xff]  }
 0x17e   :  { %2512 = vmatpush2.bf16.msra.mxu1 %v5974_v9 }
 0x17f   :  { %2513 = vmatprep.subr.bf16.mxu1 %v5979_v11 }
 0x180   :  { %2473 = vmatpush2.bf16.msra.mxu0 %v5929_v2  ;;  %v6450_v2 = vsub.s32 2, %v6428_v19 }
 0x181   :  { %2474 = vmatprep.subr.bf16.mxu0 %v5934_v4 }
 0x182   :  { %2514 = vmatpush2.bf16.msra.mxu1 %v5977_v14  ;;  %v403_v4 = vrot.slane %v6436_v25, %v6450_v2  ;;  %v5998_v25 = vld [vmem:[#allocation11 + $0xe8] ss:$16 sps:$4 sm:$0xff]  }
 0x183   :  { %2515 = vmatprep.subr.bf16.mxu1 %v5982_v18 }
 0x184   :  { %2475 = vmatpush2.bf16.msra.mxu0 %v5932_v8 }
 0x185   :  { %2476 = vmatprep.subr.bf16.mxu0 %v5937_v10 }
 0x186   :  { %2516 = vmatpush2.bf16.msra.mxu1 %v5980_v21 }
 0x187   :  { %2517 = vmatprep.subr.bf16.mxu1 %v5985_v23 }
 0x188   :  { %2477 = vmatpush2.bf16.msra.mxu0 %v5935_v13 }
 0x189   :  { %2478 = vmatprep.subr.bf16.mxu0 %v5940_v15 }
 0x18a   :  { %2518 = vmatpush2.bf16.msra.mxu1 %v5983_v32 }
 0x18b   :  { %2519 = vmatprep.subr.bf16.mxu1 %v5988_v35  ;;  %v6006_v35 = vld [vmem:[#allocation11 + $0xcc] ss:$16 sps:$4 sm:$0xff]  }
 0x18c   :  { %2479 = vmatpush2.bf16.msra.mxu0 %v5938_v20 }
 0x18d   :  { %2480 = vmatprep.subr.bf16.mxu0 %v5943_v22 }
 0x18e   :  { %2520 = vmatpush2.bf16.msra.mxu1 %v5986_v38  ;;  %v6001_v38 = vld [vmem:[#allocation11 + $0xc0] ss:$16 sps:$4 sm:$0xff]  }
 0x18f   :  { %2521 = vmatprep.subr.bf16.mxu1 %v5991_v42  ;;  %v6010_v42 = vld [vmem:[#allocation11 + $0xa8] ss:$16 sps:$4 sm:$0xff]  }
 0x190   :  { %2481 = vmatpush2.bf16.msra.mxu0 %v5941_v29 }
 0x191   :  { %2482 = vmatprep.subr.bf16.mxu0 %v5946_v33 }
 0x192   :  { %2522 = vmatpush2.bf16.msra.mxu1 %v5989_v27  ;;  %v6018_v27 = vld [vmem:[#allocation11 + $0x8c] ss:$16 sps:$4 sm:$0xff]  }
 0x193   :  { %2523 = vmatprep.subr.bf16.mxu1 %v5994_v50  ;;  %v6027_v50 = vld [vmem:[#allocation11 + $0x44] ss:$16 sps:$4 sm:$0xff]  }
 0x194   :  { %2483 = vmatpush2.bf16.msra.mxu0 %v5944_v47 }
 0x195   :  { %2755 = vmatprep.subr.bf16.mxu0 %v5997_v0  ;;  %v2905_v0 = vld [vmem:[#allocation13 + $0x1e0] sm:$0xff] }
 0x196   :  { %2524 = vmatpush2.bf16.msra.mxu1 %v5992_v53  ;;  %v6025_v53 = vld [vmem:[#allocation11 + $0x40] ss:$16 sps:$4 sm:$0xff]  }
 0x197   :  { %v1836_v17 = vpop.f32.mrf.mxu0  ;;  %2796 = vmatprep.subr.bf16.mxu1 %v6000_v1  ;;  %v3029_v1 = vld [vmem:[#allocation13 + $0x5c0] sm:$0xff] }
 0x198   :  { %v1877_v39 = vpop.f32.mrf.mxu1  ;;  %v1837_v36 = vadd.f32 %v1836_v17, %v1796_v16  ;;  %v6004_v17 = vld [vmem:[#allocation11 + $0xc8] ss:$16 sps:$4 sm:$0xff]  }
 0x199   :  { %v1838_v37 = vpop.f32.mrf.mxu0 }
 0x19a   :  { %v1879_v41 = vpop.f32.mrf.mxu1  ;;  %v1878_v43 = vadd.f32 %v1877_v39, %v1837_v36  ;;  %v1839_v44 = vadd.f32 %v1838_v37, %v1798_v40  ;;  %v6009_v40 = vld [vmem:[#allocation11 + $0xa4] ss:$16 sps:$4 sm:$0xff]   ;;  %v6012_v36 = vld [vmem:[#allocation11 + $0xac] ss:$16 sps:$4 sm:$0xff]  }
 0x19b   :  { %v1840_v45 = vpop.f32.mrf.mxu0 }
 0x19c   :  { %v1881_v30 = vpop.f32.mrf.mxu1  ;;  %v1880_v46 = vadd.f32 %v1879_v41, %v1839_v44  ;;  %v2048_v28 = vmax.f32 %v1878_v43, 0.0  ;;  %v6007_v41 = vld [vmem:[#allocation11 + $0xa0] ss:$16 sps:$4 sm:$0xff]   ;;  %v6015_v44 = vld [vmem:[#allocation11 + $0x84] ss:$16 sps:$4 sm:$0xff]  }
 0x19d   :  { %v1841_v48 = vpop.f32.mrf.mxu0  ;;  %v6013_v45 = vld [vmem:[#allocation11 + $0x80] ss:$16 sps:$4 sm:$0xff]   ;;  %v6016_v30 = vld [vmem:[#allocation11 + $0x88] ss:$16 sps:$4 sm:$0xff]  }
 0x19e   :  { %v1882_v49 = vpop.f32.mrf.mxu1  ;;  %v2049_v52 = vmax.f32 %v1880_v46, 0.0  ;;  %v2052_v54 = vpack.c.bf16 %v2048_v28, %v2048_v28  ;;  %v6021_v46 = vld [vmem:[#allocation11 + $0x64] ss:$16 sps:$4 sm:$0xff]   ;;  %v6019_v28 = vld [vmem:[#allocation11 + $0x60] ss:$16 sps:$4 sm:$0xff]  }
 0x19f   :  { %v6022_v48 = vld [vmem:[#allocation11 + $0x68] ss:$16 sps:$4 sm:$0xff]   ;;  %v6024_v49 = vld [vmem:[#allocation11 + $0x6c] ss:$16 sps:$4 sm:$0xff]  }
 0x1a0   :  { %v2053_v31 = vpack.c.bf16 %v2049_v52, %v2049_v52  ;;  %v6030_v52 = vld [vmem:[#allocation11 + $0x4c] ss:$16 sps:$4 sm:$0xff]  }
 0x1a2   :  { %2484 = vmatprep.mubr.bf16.mxu0 %v2053_v31  ;;  %v6028_v31 = vld [vmem:[#allocation11 + $0x48] ss:$16 sps:$4 sm:$0xff]  }
 0x1a3   :  { %2485 = vmatmul.mubr.bf16.vlgmr.msra.gmra.mxu0 %v2052_v54  ;;  %v6033_v54 = vld [vmem:[#allocation11 + $0x24] ss:$16 sps:$4 sm:$0xff]  }
 0x1a4   :  { %2756 = vmatpush1.bf16.msra.mxu0 %v5995_v63  ;;  %v2901_v63 = vld [vmem:[#allocation13 + $0x1c0] sm:$0xff] }
 0x1a5   :  { %2757 = vmatprep.subr.bf16.mxu0 %v6003_v51  ;;  %v3021_v51 = vld [vmem:[#allocation13 + $0x580] sm:$0xff] }
 0x1a8   :  { %2758 = vmatpush1.bf16.msra.mxu0 %v6001_v38 }
 0x1a9   :  { %2759 = vmatprep.subr.bf16.mxu0 %v6009_v40  ;;  %v2885_v40 = vld [vmem:[#allocation13 + $0x140] sm:$0xff] }
 0x1ac   :  { %2760 = vmatpush1.bf16.msra.mxu0 %v6007_v41  ;;  %v3017_v41 = vld [vmem:[#allocation13 + $0x560] sm:$0xff] }
 0x1ad   :  { %2761 = vmatprep.subr.bf16.mxu0 %v6015_v44 }
 0x1b0   :  { %2762 = vmatpush1.bf16.msra.mxu0 %v6013_v45  ;;  %v2877_v45 = vld [vmem:[#allocation13 + $0x100] sm:$0xff] }
 0x1b1   :  { %2763 = vmatprep.subr.bf16.mxu0 %v6021_v46  ;;  %v3005_v46 = vld [vmem:[#allocation13 + $0x500] sm:$0xff] }
 0x1b4   :  { %2764 = vmatpush1.bf16.msra.mxu0 %v6019_v28  ;;  %v3009_v28 = vld [vmem:[#allocation13 + $0x520] sm:$0xff] }
 0x1b5   :  { %2765 = vmatprep.subr.bf16.mxu0 %v6027_v50 }
 0x1b8   :  { %2766 = vmatpush1.bf16.msra.mxu0 %v6025_v53  ;;  %v2869_v53 = vld [vmem:[#allocation13 + $0xc0] sm:$0xff] }
 0x1b9   :  { %2767 = vmatprep.subr.bf16.mxu0 %v6033_v54  ;;  %v2997_v54 = vld [vmem:[#allocation13 + $0x4c0] sm:$0xff] }
 0x1d7   :  { %v1918_v55 = vpop.f32.mrf.mxu0 }
 0x1d8   :  { %v1959_v56 = vpop.f32.mrf.mxu1  ;;  %v1919_v8 = vadd.f32 %v1918_v55, %v403_v4  ;;  %v6036_v55 = vld [vmem:[#allocation11 + $0x2c] ss:$16 sps:$4 sm:$0xff]   ;;  %v5282_v4 = vcombine.low %v2901_v63, %v2905_v0 }
 0x1d9   :  { %v1920_v57 = vpop.f32.mrf.mxu0 }
 0x1da   :  { %v1961_v58 = vpop.f32.mrf.mxu1  ;;  %v1921_v9 = vadd.f32 %v1920_v57, %v407_v5  ;;  %v1960_v10 = vadd.f32 %v1959_v56, %v1919_v8  ;;  %v6286_v56 = vmov 0   ;;  %v6031_v57 = vld [vmem:[#allocation11 + $0x20] ss:$16 sps:$4 sm:$0xff]   ;;  %v5283_v5 = vcombine.high %v2901_v63, %v2905_v0 }
 0x1db   :  { %v1922_v59 = vpop.f32.mrf.mxu0  ;;  %2787 = vmatprep.mubr.bf16.mxu0 %v6286_v56  ;;  %2768 = vmatpush1.bf16.msra.mxu0 %v6031_v57  ;;  %v3033_v8 = vld [vmem:[#allocation13 + $0x5e0] sm:$0xff]  ;;  %v5386_v57 = vcombine.low %v3005_v46, %v3009_v28 }
 0x1dc   :  { %v1963_v60 = vpop.f32.mrf.mxu1  ;;  %v1962_v13 = vadd.f32 %v1961_v58, %v1921_v9  ;;  %v6034_v58 = vld [vmem:[#allocation11 + $0x28] ss:$16 sps:$4 sm:$0xff]   ;;  %v6039_v59 = vld [vmem:[#allocation11 + $0x4] ss:$16 sps:$4 sm:$0xff]   ;;  %v5410_v9 = vcombine.low %v3029_v1, %v3033_v8 }
 0x1dd   :  { %v1923_v61 = vpop.f32.mrf.mxu0  ;;  %v6042_v60 = vld [vmem:[#allocation11 + $0xc] ss:$16 sps:$4 sm:$0xff]   ;;  %2769 = vmatprep.subr.bf16.mxu0 %v6039_v59  ;;  %v2993_v63 = vld [vmem:[#allocation13 + $0x4a0] sm:$0xff] }
 0x1de   :  { %v1964_v62 = vpop.f32.mrf.mxu1  ;;  %v6037_v61 = vld [vmem:[#allocation11] ss:$16 sps:$4 sm:$0xff]  }
 0x1df   :  { %v6040_v62 = vld [vmem:[#allocation11 + $0x8] ss:$16 sps:$4 sm:$0xff]   ;;  %2770 = vmatpush1.bf16.msra.mxu0 %v6037_v61  ;;  %v2865_v61 = vld [vmem:[#allocation13 + $0xa0] sm:$0xff] }
 0x1e0   :  { %4423 = vmatprep.subr.bf16.mxu0 %v5283_v5 }
 0x217   :  { %v2000_v11 = vpop.f32.mrf.mxu0 }
 0x218   :  { %v2041_v12 = vpop.f32.mrf.mxu1  ;;  %v2001_v14 = vadd.f32 %v2000_v11, %v1960_v10  ;;  %v5411_v10 = vcombine.high %v3029_v1, %v3033_v8  ;;  %v2120_v11 = vld [vmem:[#allocation10] sm:$0x3]  ;;  %v2853_v8 = vld [vmem:[#allocation13 + $0x40] sm:$0xff] }
 0x219   :  { %v2002_v15 = vpop.f32.mrf.mxu0 }
 0x21a   :  { %v2043_v18 = vpop.f32.mrf.mxu1  ;;  %v2042_v20 = vadd.f32 %v2041_v12, %v2001_v14  ;;  %v2003_v21 = vadd.f32 %v2002_v15, %v1962_v13  ;;  %v2125_v12 = vrot.slane %v2120_v11, %v6431_v24  ;;  %v2129_v13 = vrot.slane %v2120_v11, %v6439_v26  ;;  %v2985_v11 = vld [vmem:[#allocation13 + $0x460] sm:$0xff] }
 0x21b   :  { %v2004_v22 = vpop.f32.mrf.mxu0 }
 0x21c   :  { %v2045_v23 = vpop.f32.mrf.mxu1  ;;  %v2044_v29 = vadd.f32 %v2043_v18, %v2003_v21  ;;  %v2050_v32 = vmax.f32 %v2042_v20, 0.0 }
 0x21d   :  { %v2005_v33 = vpop.f32.mrf.mxu0 }
 0x21e   :  { %v2046_v34 = vpop.f32.mrf.mxu1  ;;  %v2051_v6 = vmax.f32 %v2044_v29, 0.0  ;;  %v2054_v7 = vpack.c.bf16 %v2050_v32, %v2050_v32 }
 0x21f   :  { %v2537_v34 = vld [vmem:[#allocation5] sm:$0xff] }
 0x220   :  { %v2055_v47 = vpack.c.bf16 %v2051_v6, %v2051_v6 }
 0x222   :  { %2525 = vmatprep.mubr.bf16.mxu1 %v2055_v47 }
 0x223   :  { %2526 = vmatmul.mubr.bf16.vlgmr.msra.gmra.mxu1 %v2054_v7  ;;  %v2897_v7 = vld [vmem:[#allocation13 + $0x1a0] sm:$0xff] }
 0x224   :  { %2797 = vmatpush1.bf16.msra.mxu1 %v5998_v25  ;;  %2828 = vmatprep.mubr.bf16.mxu1 %v6286_v56  ;;  %v2893_v25 = vld [vmem:[#allocation13 + $0x180] sm:$0xff] }
 0x225   :  { %2798 = vmatprep.subr.bf16.mxu1 %v6006_v35  ;;  %v3025_v35 = vld [vmem:[#allocation13 + $0x5a0] sm:$0xff] }
 0x228   :  { %2799 = vmatpush1.bf16.msra.mxu1 %v6004_v17  ;;  %v5275_v17 = vcombine.high %v2893_v25, %v2897_v7 }
 0x229   :  { %2800 = vmatprep.subr.bf16.mxu1 %v6012_v36  ;;  %v2889_v36 = vld [vmem:[#allocation13 + $0x160] sm:$0xff] }
 0x22a   :  { %v5267_v44 = vcombine.high %v2885_v40, %v2889_v36 }
 0x22c   :  { %2801 = vmatpush1.bf16.msra.mxu1 %v6010_v42  ;;  %v5274_v42 = vcombine.low %v2893_v25, %v2897_v7  ;;  %v3097_v25 = vld [vmem:[#allocation13 + $0x7e0] sm:$0xff] }
 0x22d   :  { %2802 = vmatprep.subr.bf16.mxu1 %v6018_v27 }
 0x230   :  { %2803 = vmatpush1.bf16.msra.mxu1 %v6016_v30  ;;  %v2881_v30 = vld [vmem:[#allocation13 + $0x120] sm:$0xff] }
 0x231   :  { %2804 = vmatprep.subr.bf16.mxu1 %v6024_v49  ;;  %v5259_v50 = vcombine.high %v2877_v45, %v2881_v30  ;;  %v5258_v56 = vcombine.low %v2877_v45, %v2881_v30  ;;  %v3081_v45 = vld [vmem:[#allocation13 + $0x760] sm:$0xff] }
 0x234   :  { %2805 = vmatpush1.bf16.msra.mxu1 %v6022_v48  ;;  %v5266_v48 = vcombine.low %v2885_v40, %v2889_v36  ;;  %v3089_v40 = vld [vmem:[#allocation13 + $0x7a0] sm:$0xff] }
 0x235   :  { %2806 = vmatprep.subr.bf16.mxu1 %v6030_v52  ;;  %v5387_v52 = vcombine.high %v3005_v46, %v3009_v28 }
 0x238   :  { %2807 = vmatpush1.bf16.msra.mxu1 %v6028_v31  ;;  %v2873_v31 = vld [vmem:[#allocation13 + $0xe0] sm:$0xff] }
 0x239   :  { %2808 = vmatprep.subr.bf16.mxu1 %v6036_v55  ;;  %v3001_v55 = vld [vmem:[#allocation13 + $0x4e0] sm:$0xff]  ;;  %v5250_v0 = vcombine.low %v2869_v53, %v2873_v31 }
 0x23a   :  { %v5379_v59 = vcombine.high %v2997_v54, %v3001_v55  ;;  %v5378_v1 = vcombine.low %v2997_v54, %v3001_v55 }
 0x23c   :  { %2809 = vmatpush1.bf16.msra.mxu1 %v6034_v58  ;;  %v5251_v58 = vcombine.high %v2869_v53, %v2873_v31  ;;  %v3073_v53 = vld [vmem:[#allocation13 + $0x720] sm:$0xff] }
 0x23d   :  { %2810 = vmatprep.subr.bf16.mxu1 %v6042_v60  ;;  %v2861_v60 = vld [vmem:[#allocation13 + $0x80] sm:$0xff] }
 0x240   :  { %2811 = vmatpush1.bf16.msra.mxu1 %v6040_v62  ;;  %v2989_v62 = vld [vmem:[#allocation13 + $0x480] sm:$0xff] }
 0x241   :  { %4464 = vmatprep.subr.bf16.mxu1 %v5411_v10  ;;  %v5371_v5 = vcombine.high %v2989_v62, %v2993_v63  ;;  %v2981_v10 = vld [vmem:[#allocation13 + $0x440] sm:$0xff] }
 0x263   :  { %v6459_v16 = vpop.f32.mrf.mxu0 }
 0x264   :  { %v2487_v14 = vadd.f32 %v6459_v16, %v2125_v12  ;;  %v5242_v12 = vcombine.low %v2861_v60, %v2865_v61 }
 0x265   :  { %v6461_v39 = vpop.f32.mrf.mxu0 }
 0x266   :  { %v2489_v18 = vadd.f32 %v6461_v39, %v2129_v13  ;;  %v5403_v39 = vcombine.high %v3021_v51, %v3025_v35  ;;  %v5370_v13 = vcombine.low %v2989_v62, %v2993_v63 }
 0x267   :  { %v2490_v37 = vpop.f32.mrf.mxu0 }
 0x268   :  { %v3013_v37 = vld [vmem:[#allocation13 + $0x540] sm:$0xff] }
 0x269   :  { %v2491_v43 = vpop.f32.mrf.mxu0  ;;  %v5395_v27 = vcombine.high %v3013_v37, %v3017_v41  ;;  %v5394_v49 = vcombine.low %v3013_v37, %v3017_v41 }
 0x26a   :  { %v5402_v43 = vcombine.low %v3021_v51, %v3025_v35 }
 0x2e3   :  { %v2527_v15 = vpop.f32.mrf.mxu1 }
 0x2e4   :  { %v2528_v20 = vadd.f32 %v2527_v15, %v2487_v14  ;;  %v5363_v15 = vcombine.high %v2981_v10, %v2985_v11 }
 0x2e5   :  { %v2529_v21 = vpop.f32.mrf.mxu1 }
 0x2e6   :  { %4819 = vst [vmem:[#allocation15] sm:$0xff] %v2528_v20  ;;  %v2530_v22 = vadd.f32 %v2529_v21, %v2489_v18  ;;  %v2845_v18 = vld [vmem:[#allocation13] sm:$0xff] }
 0x2e7   :  { %v2531_v23 = vpop.f32.mrf.mxu1  ;;  %v2973_v21 = vld [vmem:[#allocation13 + $0x400] sm:$0xff] }
 0x2e8   :  { %v2534_v29 = vmul.f32 0.5, %v2530_v22  ;;  %4820 = vst [vmem:[#allocation17] sm:$0xff] %v2530_v22  ;;  %v2977_v22 = vld [vmem:[#allocation13 + $0x420] sm:$0xff] }
 0x2e9   :  { %v2532_v32 = vpop.f32.mrf.mxu1  ;;  %v5354_v51 = vcombine.low %v2973_v21, %v2977_v22 }
 0x2ea   :  { %v2535_v33 = vmul.f32 1.442695, %v2534_v29  ;;  %v5362_v29 = vcombine.low %v2981_v10, %v2985_v11 }
 0x2ec   :  { %6043 = vpow2.f32 %v2535_v33  ;;  %v5355_v33 = vcombine.high %v2973_v21, %v2977_v22  ;;  %v3049_v22 = vld [vmem:[#allocation13 + $0x660] sm:$0xff] }
 0x2f9   :  { %v6044_v6 = vpop.eup %6043 }
 0x2fa   :  { %v2538_v47 = vmul.f32 %v6044_v6, %v2537_v34  ;;  %v2965_v34 = vld [vmem:[#allocation13 + $0x3c0] sm:$0xff] }
 0x2fb   :  { %v2969_v6 = vld [vmem:[#allocation13 + $0x3e0] sm:$0xff] }
 0x2fc   :  { %v2539_v16 = vadd.f32 %v2538_v47, %v2528_v20  ;;  %v2849_v20 = vld [vmem:[#allocation13 + $0x20] sm:$0xff]  ;;  %v5347_v35 = vcombine.high %v2965_v34, %v2969_v6  ;;  %v5346_v36 = vcombine.low %v2965_v34, %v2969_v6 }
 0x2fd   :  { %v5227_v32 = vcombine.high %v2845_v18, %v2849_v20  ;;  %v3093_v47 = vld [vmem:[#allocation13 + $0x7c0] sm:$0xff]  ;;  %v5226_v7 = vcombine.low %v2845_v18, %v2849_v20 }
 0x2fe   :  { %v2540_v38 = vpack.c.bf16 %v2539_v16, %v2539_v16  ;;  %v5475_v16 = vcombine.high %v3093_v47, %v3097_v25  ;;  %v5474_v37 = vcombine.low %v3093_v47, %v3097_v25  ;;  %v2921_v18 = vld [vmem:[#allocation13 + $0x260] sm:$0xff] }
 0x2ff   :  { %v3045_v20 = vld [vmem:[#allocation13 + $0x640] sm:$0xff] }
 0x300   :  { %2788 = vmatmul.mubr.bf16.vlgmr.msra.gmra.mxu0 %v2540_v38  ;;  %2829 = vmatmul.mubr.bf16.vlgmr.msra.gmra.mxu1 %v2540_v38  ;;  %v2957_v38 = vld [vmem:[#allocation13 + $0x380] sm:$0xff] }
 0x301   :  { %4424 = vmatpush1.bf16.msra.mxu0 %v5282_v4  ;;  %4465 = vmatpush1.bf16.msra.mxu1 %v5410_v9  ;;  %v5243_v4 = vcombine.high %v2861_v60, %v2865_v61  ;;  %v2857_v9 = vld [vmem:[#allocation13 + $0x60] sm:$0xff] }
 0x302   :  { %4425 = vmatprep.subr.bf16.mxu0 %v5275_v17  ;;  %4466 = vmatprep.subr.bf16.mxu1 %v5403_v39  ;;  %v5235_v14 = vcombine.high %v2853_v8, %v2857_v9  ;;  %v5234_v23 = vcombine.low %v2853_v8, %v2857_v9  ;;  %v2961_v17 = vld [vmem:[#allocation13 + $0x3a0] sm:$0xff] }
 0x303   :  { %v3085_v39 = vld [vmem:[#allocation13 + $0x780] sm:$0xff]  ;;  %v5339_v41 = vcombine.high %v2957_v38, %v2961_v17  ;;  %v5338_v30 = vcombine.low %v2957_v38, %v2961_v17  ;;  %v2906_v38 = vld [vmem:[#allocation13 + $0x1e8] sm:$0xff] }
 0x304   :  { %v5466_v46 = vcombine.low %v3085_v39, %v3089_v40  ;;  %v3065_v60 = vld [vmem:[#allocation13 + $0x6e0] sm:$0xff]  ;;  %v3030_v17 = vld [vmem:[#allocation13 + $0x5c8] sm:$0xff] }
 0x305   :  { %4426 = vmatpush1.bf16.msra.mxu0 %v5274_v42  ;;  %4467 = vmatpush1.bf16.msra.mxu1 %v5402_v43  ;;  %v5467_v42 = vcombine.high %v3085_v39, %v3089_v40  ;;  %v2949_v43 = vld [vmem:[#allocation13 + $0x340] sm:$0xff]  ;;  %v3034_v40 = vld [vmem:[#allocation13 + $0x5e8] sm:$0xff] }
 0x306   :  { %4427 = vmatprep.subr.bf16.mxu0 %v5267_v44  ;;  %4468 = vmatprep.subr.bf16.mxu1 %v5395_v27  ;;  %v2953_v44 = vld [vmem:[#allocation13 + $0x360] sm:$0xff] }
 0x307   :  { %v3077_v27 = vld [vmem:[#allocation13 + $0x740] sm:$0xff]  ;;  %v5331_v28 = vcombine.high %v2949_v43, %v2953_v44  ;;  %v5330_v31 = vcombine.low %v2949_v43, %v2953_v44 }
 0x308   :  { %v5458_v54 = vcombine.low %v3077_v27, %v3081_v45  ;;  %v3057_v8 = vld [vmem:[#allocation13 + $0x6a0] sm:$0xff] }
 0x309   :  { %4428 = vmatpush1.bf16.msra.mxu0 %v5266_v48  ;;  %4469 = vmatpush1.bf16.msra.mxu1 %v5394_v49  ;;  %v5459_v48 = vcombine.high %v3077_v27, %v3081_v45  ;;  %v2941_v49 = vld [vmem:[#allocation13 + $0x300] sm:$0xff] }
 0x30a   :  { %4429 = vmatprep.subr.bf16.mxu0 %v5259_v50  ;;  %4470 = vmatprep.subr.bf16.mxu1 %v5387_v52  ;;  %v2945_v50 = vld [vmem:[#allocation13 + $0x320] sm:$0xff] }
 0x30b   :  { %v3069_v52 = vld [vmem:[#allocation13 + $0x700] sm:$0xff]  ;;  %v5323_v55 = vcombine.high %v2941_v49, %v2945_v50  ;;  %v5322_v61 = vcombine.low %v2941_v49, %v2945_v50 }
 0x30c   :  { %v5450_v62 = vcombine.low %v3069_v52, %v3073_v53  ;;  %v2913_v34 = vld [vmem:[#allocation13 + $0x220] sm:$0xff] }
 0x30d   :  { %4430 = vmatpush1.bf16.msra.mxu0 %v5258_v56  ;;  %4471 = vmatpush1.bf16.msra.mxu1 %v5386_v57  ;;  %v5451_v56 = vcombine.high %v3069_v52, %v3073_v53  ;;  %v2933_v57 = vld [vmem:[#allocation13 + $0x2c0] sm:$0xff] }
 0x30e   :  { %4431 = vmatprep.subr.bf16.mxu0 %v5251_v58  ;;  %4472 = vmatprep.subr.bf16.mxu1 %v5379_v59  ;;  %v2937_v58 = vld [vmem:[#allocation13 + $0x2e0] sm:$0xff] }
 0x30f   :  { %v3061_v59 = vld [vmem:[#allocation13 + $0x6c0] sm:$0xff]  ;;  %v5315_v63 = vcombine.high %v2933_v57, %v2937_v58  ;;  %v5314_v9 = vcombine.low %v2933_v57, %v2937_v58 }
 0x310   :  { %v5442_v10 = vcombine.low %v3061_v59, %v3065_v60  ;;  %v3037_v6 = vld [vmem:[#allocation13 + $0x600] sm:$0xff] }
 0x311   :  { %4432 = vmatpush1.bf16.msra.mxu0 %v5250_v0  ;;  %4473 = vmatpush1.bf16.msra.mxu1 %v5378_v1  ;;  %v5443_v0 = vcombine.high %v3061_v59, %v3065_v60  ;;  %v2925_v1 = vld [vmem:[#allocation13 + $0x280] sm:$0xff]  ;;  %v2894_v59 = vld [vmem:[#allocation13 + $0x188] sm:$0xff] }
 0x312   :  { %4433 = vmatprep.subr.bf16.mxu0 %v5243_v4  ;;  %4474 = vmatprep.subr.bf16.mxu1 %v5371_v5  ;;  %v2929_v4 = vld [vmem:[#allocation13 + $0x2a0] sm:$0xff] }
 0x313   :  { %v3053_v5 = vld [vmem:[#allocation13 + $0x680] sm:$0xff]  ;;  %v5307_v11 = vcombine.high %v2925_v1, %v2929_v4 }
 0x314   :  { %v3041_v25 = vld [vmem:[#allocation13 + $0x620] sm:$0xff] }
 0x315   :  { %4434 = vmatpush1.bf16.msra.mxu0 %v5242_v12  ;;  %4475 = vmatpush1.bf16.msra.mxu1 %v5370_v13  ;;  %v5435_v12 = vcombine.high %v3053_v5, %v3057_v8  ;;  %v5306_v13 = vcombine.low %v2925_v1, %v2929_v4 }
 0x316   :  { %4435 = vmatprep.subr.bf16.mxu0 %v5235_v14  ;;  %4476 = vmatprep.subr.bf16.mxu1 %v5363_v15  ;;  %v5434_v14 = vcombine.low %v3053_v5, %v3057_v8  ;;  %v2917_v15 = vld [vmem:[#allocation13 + $0x240] sm:$0xff] }
 0x317   :  { %v5299_v21 = vcombine.high %v2917_v15, %v2921_v18 }
 0x319   :  { %4436 = vmatpush1.bf16.msra.mxu0 %v5234_v23  ;;  %4477 = vmatpush1.bf16.msra.mxu1 %v5362_v29  ;;  %v5298_v23 = vcombine.low %v2917_v15, %v2921_v18  ;;  %v5426_v29 = vcombine.low %v3045_v20, %v3049_v22 }
 0x31a   :  { %4437 = vmatprep.subr.bf16.mxu0 %v5227_v32  ;;  %4478 = vmatprep.subr.bf16.mxu1 %v5355_v33  ;;  %v5427_v32 = vcombine.high %v3045_v20, %v3049_v22  ;;  %v2909_v33 = vld [vmem:[#allocation13 + $0x200] sm:$0xff]  ;;  %v2878_v22 = vld [vmem:[#allocation13 + $0x108] sm:$0xff] }
 0x31b   :  { %v5291_v47 = vcombine.high %v2909_v33, %v2913_v34 }
 0x31d   :  { %4438 = vmatpush1.bf16.msra.mxu0 %v5226_v7  ;;  %4479 = vmatpush1.bf16.msra.mxu1 %v5354_v51  ;;  %v5290_v7 = vcombine.low %v2909_v33, %v2913_v34  ;;  %v5418_v51 = vcombine.low %v3037_v6, %v3041_v25 }
 0x31e   :  { %4439 = vmatprep.subr.bf16.mxu0 %v5347_v35  ;;  %4480 = vmatprep.subr.bf16.mxu1 %v5475_v16  ;;  %v5419_v35 = vcombine.high %v3037_v6, %v3041_v25  ;;  %v2902_v16 = vld [vmem:[#allocation13 + $0x1c8] sm:$0xff] }
 0x31f   :  { %v5285_v39 = vcombine.high %v2902_v16, %v2906_v38  ;;  %v2870_v25 = vld [vmem:[#allocation13 + $0xc8] sm:$0xff] }
 0x321   :  { %4440 = vmatpush2.bf16.msra.mxu0 %v5346_v36  ;;  %4481 = vmatpush2.bf16.msra.mxu1 %v5474_v37  ;;  %v5284_v36 = vcombine.low %v2902_v16, %v2906_v38  ;;  %v5412_v37 = vcombine.low %v3030_v17, %v3034_v40 }
 0x322   :  { %4441 = vmatprep.subr.bf16.mxu0 %v5339_v41  ;;  %4482 = vmatprep.subr.bf16.mxu1 %v5467_v42  ;;  %v5413_v41 = vcombine.high %v3030_v17, %v3034_v40  ;;  %v2573_v42 = vld [vmem:[%s6535_s7] sm:$0xf]  ;;  %v2862_v40 = vld [vmem:[#allocation13 + $0x88] sm:$0xff] }
 0x323   :  { %v2578_v43 = vrot.slane %v2573_v42, %v6431_v24  ;;  %v2586_v44 = vrot.slane %v2573_v42, %v6450_v2  ;;  %v2582_v27 = vrot.slane %v2573_v42, %v6439_v26  ;;  %v2590_v45 = vrot.slane %v2573_v42, %v6453_v3 }
 0x325   :  { %4442 = vmatpush2.bf16.msra.mxu0 %v5338_v30  ;;  %4483 = vmatpush2.bf16.msra.mxu1 %v5466_v46 }
 0x326   :  { %4443 = vmatprep.subr.bf16.mxu0 %v5331_v28  ;;  %4484 = vmatprep.subr.bf16.mxu1 %v5459_v48 }
 0x329   :  { %4444 = vmatpush2.bf16.msra.mxu0 %v5330_v31  ;;  %4485 = vmatpush2.bf16.msra.mxu1 %v5458_v54 }
 0x32a   :  { %4445 = vmatprep.subr.bf16.mxu0 %v5323_v55  ;;  %4486 = vmatprep.subr.bf16.mxu1 %v5451_v56 }
 0x32d   :  { %4446 = vmatpush2.bf16.msra.mxu0 %v5322_v61  ;;  %4487 = vmatpush2.bf16.msra.mxu1 %v5450_v62  ;;  %v2898_v62 = vld [vmem:[#allocation13 + $0x1a8] sm:$0xff] }
 0x32e   :  { %4447 = vmatprep.subr.bf16.mxu0 %v5315_v63  ;;  %4488 = vmatprep.subr.bf16.mxu1 %v5443_v0  ;;  %v3022_v63 = vld [vmem:[#allocation13 + $0x588] sm:$0xff]  ;;  %v5276_v15 = vcombine.low %v2894_v59, %v2898_v62 }
 0x32f   :  { %v3026_v0 = vld [vmem:[#allocation13 + $0x5a8] sm:$0xff] }
 0x330   :  { %v5404_v18 = vcombine.low %v3022_v63, %v3026_v0 }
 0x331   :  { %4448 = vmatpush2.bf16.msra.mxu0 %v5314_v9  ;;  %4489 = vmatpush2.bf16.msra.mxu1 %v5442_v10  ;;  %v2886_v9 = vld [vmem:[#allocation13 + $0x148] sm:$0xff]  ;;  %v5277_v10 = vcombine.high %v2894_v59, %v2898_v62 }
 0x332   :  { %4449 = vmatprep.subr.bf16.mxu0 %v5307_v11  ;;  %4490 = vmatprep.subr.bf16.mxu1 %v5435_v12  ;;  %v5405_v11 = vcombine.high %v3022_v63, %v3026_v0  ;;  %v2890_v12 = vld [vmem:[#allocation13 + $0x168] sm:$0xff] }
 0x333   :  { %v5269_v20 = vcombine.high %v2886_v9, %v2890_v12  ;;  %v5268_v33 = vcombine.low %v2886_v9, %v2890_v12  ;;  %v3094_v62 = vld [vmem:[#allocation13 + $0x7c8] sm:$0xff] }
 0x334   :  { %v3098_v63 = vld [vmem:[#allocation13 + $0x7e8] sm:$0xff] }
 0x335   :  { %4450 = vmatpush2.bf16.msra.mxu0 %v5306_v13  ;;  %4491 = vmatpush2.bf16.msra.mxu1 %v5434_v14  ;;  %v3014_v13 = vld [vmem:[#allocation13 + $0x548] sm:$0xff] }
 0x336   :  { %4451 = vmatprep.subr.bf16.mxu0 %v5299_v21  ;;  %4492 = vmatprep.subr.bf16.mxu1 %v5427_v32  ;;  %v3018_v14 = vld [vmem:[#allocation13 + $0x568] sm:$0xff] }
 0x337   :  { %v5397_v21 = vcombine.high %v3014_v13, %v3018_v14  ;;  %v3010_v32 = vld [vmem:[#allocation13 + $0x528] sm:$0xff]  ;;  %v5396_v34 = vcombine.low %v3014_v13, %v3018_v14 }
 0x338   :  { %v2958_v12 = vld [vmem:[#allocation13 + $0x388] sm:$0xff] }
 0x339   :  { %4452 = vmatpush2.bf16.msra.mxu0 %v5298_v23  ;;  %4493 = vmatpush2.bf16.msra.mxu1 %v5426_v29  ;;  %v2882_v23 = vld [vmem:[#allocation13 + $0x128] sm:$0xff] }
 0x33a   :  { %4453 = vmatprep.subr.bf16.mxu0 %v5291_v47  ;;  %4494 = vmatprep.subr.bf16.mxu1 %v5419_v35  ;;  %v3006_v29 = vld [vmem:[#allocation13 + $0x508] sm:$0xff]  ;;  %v5261_v6 = vcombine.high %v2878_v22, %v2882_v23  ;;  %v5260_v16 = vcombine.low %v2878_v22, %v2882_v23 }
 0x33b   :  { %v5389_v47 = vcombine.high %v3006_v29, %v3010_v32  ;;  %v3002_v35 = vld [vmem:[#allocation13 + $0x4e8] sm:$0xff]  ;;  %v5388_v38 = vcombine.low %v3006_v29, %v3010_v32 }
 0x33c   :  { %v2962_v13 = vld [vmem:[#allocation13 + $0x3a8] sm:$0xff] }
 0x33d   :  { %4454 = vmatpush2.bf16.msra.mxu0 %v5290_v7  ;;  %4495 = vmatpush2.bf16.msra.mxu1 %v5418_v51  ;;  %v2874_v7 = vld [vmem:[#allocation13 + $0xe8] sm:$0xff] }
 0x33e   :  { %4505 = vmatprep.subr.bf16.mxu0 %v5285_v39  ;;  %4546 = vmatprep.subr.bf16.mxu1 %v5413_v41  ;;  %v2998_v51 = vld [vmem:[#allocation13 + $0x4c8] sm:$0xff]  ;;  %v5253_v17 = vcombine.high %v2870_v25, %v2874_v7  ;;  %v5252_v42 = vcombine.low %v2870_v25, %v2874_v7 }
 0x33f   :  { %v5381_v39 = vcombine.high %v2998_v51, %v3002_v35  ;;  %v2994_v41 = vld [vmem:[#allocation13 + $0x4a8] sm:$0xff] }
 0x340   :  { %v3086_v14 = vld [vmem:[#allocation13 + $0x788] sm:$0xff] }
 0x341   :  { %v2950_v23 = vld [vmem:[#allocation13 + $0x348] sm:$0xff] }
 0x342   :  { %v2954_v29 = vld [vmem:[#allocation13 + $0x368] sm:$0xff] }
 0x343   :  { %v3078_v32 = vld [vmem:[#allocation13 + $0x748] sm:$0xff] }
 0x344   :  { %v2942_v7 = vld [vmem:[#allocation13 + $0x308] sm:$0xff] }
 0x3c0   :  { %v2789_v30 = vpop.f32.mrf.mxu0  ;;  %v2830_v46 = vpop.f32.mrf.mxu1 }
 0x3c1   :  { %v2790_v28 = vadd.f32 %v2789_v30, %v2578_v43  ;;  %v2831_v48 = vadd.f32 %v2830_v46, %v2586_v44  ;;  %v5380_v43 = vcombine.low %v2998_v51, %v3002_v35  ;;  %v2858_v30 = vld [vmem:[#allocation13 + $0x68] sm:$0xff] }
 0x3c2   :  { %v2791_v49 = vpop.f32.mrf.mxu0  ;;  %v2832_v50 = vpop.f32.mrf.mxu1  ;;  %v2982_v46 = vld [vmem:[#allocation13 + $0x448] sm:$0xff] }
 0x3c3   :  { %v2792_v52 = vadd.f32 %v2791_v49, %v2582_v27  ;;  %v2833_v53 = vadd.f32 %v2832_v50, %v2590_v45  ;;  %v2837_v31 = vmax.f32 %v2790_v28, 0.0  ;;  %v2839_v54 = vmax.f32 %v2831_v48, 0.0  ;;  %v2854_v45 = vld [vmem:[#allocation13 + $0x48] sm:$0xff] }
 0x3c4   :  { %v2793_v55 = vpop.f32.mrf.mxu0  ;;  %v2834_v56 = vpop.f32.mrf.mxu1  ;;  %v2986_v28 = vld [vmem:[#allocation13 + $0x468] sm:$0xff]  ;;  %v5237_v50 = vcombine.high %v2854_v45, %v2858_v30 }
 0x3c5   :  { %v2838_v57 = vmax.f32 %v2792_v52, 0.0  ;;  %v2840_v58 = vmax.f32 %v2833_v53, 0.0  ;;  %v6478_v5 = vpack.c.bf16 %v2837_v31, %v2837_v31  ;;  %v6480_v8 = vpack.c.bf16 %v2839_v54, %v2839_v54  ;;  %v2846_v53 = vld [vmem:[#allocation13 + $0x8] sm:$0xff] }
 0x3c6   :  { %v2794_v60 = vpop.f32.mrf.mxu0  ;;  %v2835_v61 = vpop.f32.mrf.mxu1  ;;  %v5365_v52 = vcombine.high %v2982_v46, %v2986_v28  ;;  %v2850_v31 = vld [vmem:[#allocation13 + $0x28] sm:$0xff]  ;;  %v5236_v56 = vcombine.low %v2854_v45, %v2858_v30 }
 0x3c7   :  { %v6474_v1 = vpack.c.bf16 %v2838_v57, %v2838_v57  ;;  %v6476_v4 = vpack.c.bf16 %v2840_v58, %v2840_v58  ;;  %v2974_v54 = vld [vmem:[#allocation13 + $0x408] sm:$0xff]  ;;  %v5364_v57 = vcombine.low %v2982_v46, %v2986_v28  ;;  %v5229_v58 = vcombine.high %v2846_v53, %v2850_v31 }
 0x3c8   :  { %v2978_v55 = vld [vmem:[#allocation13 + $0x428] sm:$0xff]  ;;  %v5228_v0 = vcombine.low %v2846_v53, %v2850_v31 }
 0x3c9   :  { %4455 = vmatprep.mubr.bf16.mxu0 %v6474_v1  ;;  %4496 = vmatprep.mubr.bf16.mxu1 %v6476_v4  ;;  %v5357_v59 = vcombine.high %v2974_v54, %v2978_v55  ;;  %v2966_v60 = vld [vmem:[#allocation13 + $0x3c8] sm:$0xff]  ;;  %v5356_v9 = vcombine.low %v2974_v54, %v2978_v55 }
 0x3ca   :  { %4456 = vmatmul.mubr.bf16.vlgmr.msra.gmra.mxu0 %v6478_v5  ;;  %4497 = vmatmul.mubr.bf16.vlgmr.msra.gmra.mxu1 %v6480_v8  ;;  %v2970_v61 = vld [vmem:[#allocation13 + $0x3e8] sm:$0xff] }
 0x3cb   :  { %4506 = vmatpush1.bf16.msra.mxu0 %v5284_v36  ;;  %4547 = vmatpush1.bf16.msra.mxu1 %v5412_v37  ;;  %v2866_v36 = vld [vmem:[#allocation13 + $0xa8] sm:$0xff] }
 0x3cc   :  { %4537 = vmatprep.mubr.bf16.mxu0 %v6474_v1  ;;  %4578 = vmatprep.mubr.bf16.mxu1 %v6476_v4  ;;  %v2990_v37 = vld [vmem:[#allocation13 + $0x488] sm:$0xff]  ;;  %v5245_v44 = vcombine.high %v2862_v40, %v2866_v36  ;;  %v5244_v48 = vcombine.low %v2862_v40, %v2866_v36 }
 0x3cd   :  { %4507 = vmatprep.subr.bf16.mxu0 %v5277_v10  ;;  %4548 = vmatprep.subr.bf16.mxu1 %v5405_v11  ;;  %v5373_v27 = vcombine.high %v2990_v37, %v2994_v41  ;;  %v5372_v49 = vcombine.low %v2990_v37, %v2994_v41  ;;  %v5349_v10 = vcombine.high %v2966_v60, %v2970_v61  ;;  %v2946_v51 = vld [vmem:[#allocation13 + $0x328] sm:$0xff] }
 0x3ce   :  { %v5477_v11 = vcombine.high %v3094_v62, %v3098_v63  ;;  %v3070_v35 = vld [vmem:[#allocation13 + $0x708] sm:$0xff] }
 0x3cf   :  { %4508 = vmatpush1.bf16.msra.mxu0 %v5276_v15  ;;  %4549 = vmatpush1.bf16.msra.mxu1 %v5404_v18  ;;  %v3090_v15 = vld [vmem:[#allocation13 + $0x7a8] sm:$0xff]  ;;  %v5348_v18 = vcombine.low %v2966_v60, %v2970_v61 }
 0x3d0   :  { %4509 = vmatprep.subr.bf16.mxu0 %v5269_v20  ;;  %4550 = vmatprep.subr.bf16.mxu1 %v5397_v21  ;;  %v5476_v20 = vcombine.low %v3094_v62, %v3098_v63  ;;  %v5341_v21 = vcombine.high %v2958_v12, %v2962_v13  ;;  %v5469_v22 = vcombine.high %v3086_v14, %v3090_v15  ;;  %v2934_v36 = vld [vmem:[#allocation13 + $0x2c8] sm:$0xff] }
 0x3d1   :  { %v2938_v37 = vld [vmem:[#allocation13 + $0x2e8] sm:$0xff] }
 0x3d2   :  { %v3062_v41 = vld [vmem:[#allocation13 + $0x6c8] sm:$0xff] }
 0x3d3   :  { %4510 = vmatpush1.bf16.msra.mxu0 %v5268_v33  ;;  %4551 = vmatpush1.bf16.msra.mxu1 %v5396_v34  ;;  %v3082_v33 = vld [vmem:[#allocation13 + $0x768] sm:$0xff]  ;;  %v5340_v34 = vcombine.low %v2958_v12, %v2962_v13  ;;  %v2903_v13 = vld [vmem:[#allocation13 + $0x1d0] sm:$0xff] }
 0x3d4   :  { %4511 = vmatprep.subr.bf16.mxu0 %v5261_v6  ;;  %4552 = vmatprep.subr.bf16.mxu1 %v5389_v47  ;;  %v5468_v6 = vcombine.low %v3086_v14, %v3090_v15  ;;  %v5333_v47 = vcombine.high %v2950_v23, %v2954_v29  ;;  %v5461_v25 = vcombine.high %v3078_v32, %v3082_v33  ;;  %v2926_v30 = vld [vmem:[#allocation13 + $0x288] sm:$0xff]  ;;  %v2907_v14 = vld [vmem:[#allocation13 + $0x1f0] sm:$0xff] }
 0x3d5   :  { %v2930_v46 = vld [vmem:[#allocation13 + $0x2a8] sm:$0xff]  ;;  %v3031_v15 = vld [vmem:[#allocation13 + $0x5d0] sm:$0xff] }
 0x3d6   :  { %v3054_v28 = vld [vmem:[#allocation13 + $0x688] sm:$0xff] }
 0x3d7   :  { %4512 = vmatpush1.bf16.msra.mxu0 %v5260_v16  ;;  %4553 = vmatpush1.bf16.msra.mxu1 %v5388_v38  ;;  %v3074_v16 = vld [vmem:[#allocation13 + $0x728] sm:$0xff]  ;;  %v5332_v38 = vcombine.low %v2950_v23, %v2954_v29  ;;  %v2895_v29 = vld [vmem:[#allocation13 + $0x190] sm:$0xff] }
 0x3d8   :  { %4513 = vmatprep.subr.bf16.mxu0 %v5253_v17  ;;  %4554 = vmatprep.subr.bf16.mxu1 %v5381_v39  ;;  %v5460_v17 = vcombine.low %v3078_v32, %v3082_v33  ;;  %v5325_v39 = vcombine.high %v2942_v7, %v2946_v51  ;;  %v5453_v40 = vcombine.high %v3070_v35, %v3074_v16  ;;  %v2918_v31 = vld [vmem:[#allocation13 + $0x248] sm:$0xff]  ;;  %v2899_v32 = vld [vmem:[#allocation13 + $0x1b0] sm:$0xff] }
 0x3d9   :  { %v2922_v54 = vld [vmem:[#allocation13 + $0x268] sm:$0xff]  ;;  %v3023_v33 = vld [vmem:[#allocation13 + $0x590] sm:$0xff] }
 0x3da   :  { %v3046_v55 = vld [vmem:[#allocation13 + $0x648] sm:$0xff] }
 0x3db   :  { %4514 = vmatpush1.bf16.msra.mxu0 %v5252_v42  ;;  %4555 = vmatpush1.bf16.msra.mxu1 %v5380_v43  ;;  %v3066_v42 = vld [vmem:[#allocation13 + $0x6e8] sm:$0xff]  ;;  %v5324_v43 = vcombine.low %v2942_v7, %v2946_v51  ;;  %v2887_v51 = vld [vmem:[#allocation13 + $0x150] sm:$0xff] }
 0x3dc   :  { %4515 = vmatprep.subr.bf16.mxu0 %v5245_v44  ;;  %4556 = vmatprep.subr.bf16.mxu1 %v5373_v27  ;;  %v5452_v44 = vcombine.low %v3070_v35, %v3074_v16  ;;  %v5317_v27 = vcombine.high %v2934_v36, %v2938_v37  ;;  %v5445_v45 = vcombine.high %v3062_v41, %v3066_v42  ;;  %v2910_v61 = vld [vmem:[#allocation13 + $0x208] sm:$0xff]  ;;  %v2891_v35 = vld [vmem:[#allocation13 + $0x170] sm:$0xff] }
 0x3dd   :  { %v2914_v62 = vld [vmem:[#allocation13 + $0x228] sm:$0xff]  ;;  %v3015_v16 = vld [vmem:[#allocation13 + $0x550] sm:$0xff] }
 0x3de   :  { %v3038_v63 = vld [vmem:[#allocation13 + $0x608] sm:$0xff] }
 0x3df   :  { %4516 = vmatpush1.bf16.msra.mxu0 %v5244_v48  ;;  %4557 = vmatpush1.bf16.msra.mxu1 %v5372_v49  ;;  %v3058_v48 = vld [vmem:[#allocation13 + $0x6a8] sm:$0xff]  ;;  %v5316_v49 = vcombine.low %v2934_v36, %v2938_v37  ;;  %v2879_v37 = vld [vmem:[#allocation13 + $0x110] sm:$0xff] }
 0x3e0   :  { %4517 = vmatprep.subr.bf16.mxu0 %v5237_v50  ;;  %4558 = vmatprep.subr.bf16.mxu1 %v5365_v52  ;;  %v5444_v50 = vcombine.low %v3062_v41, %v3066_v42  ;;  %v5309_v52 = vcombine.high %v2926_v30, %v2930_v46  ;;  %v5437_v53 = vcombine.high %v3054_v28, %v3058_v48  ;;  %v2883_v41 = vld [vmem:[#allocation13 + $0x130] sm:$0xff] }
 0x3e1   :  { %v3007_v42 = vld [vmem:[#allocation13 + $0x510] sm:$0xff] }
 0x3e3   :  { %4518 = vmatpush1.bf16.msra.mxu0 %v5236_v56  ;;  %4559 = vmatpush1.bf16.msra.mxu1 %v5364_v57  ;;  %v3050_v56 = vld [vmem:[#allocation13 + $0x668] sm:$0xff]  ;;  %v5308_v57 = vcombine.low %v2926_v30, %v2930_v46  ;;  %v2871_v46 = vld [vmem:[#allocation13 + $0xd0] sm:$0xff] }
 0x3e4   :  { %4519 = vmatprep.subr.bf16.mxu0 %v5229_v58  ;;  %4560 = vmatprep.subr.bf16.mxu1 %v5357_v59  ;;  %v5436_v58 = vcombine.low %v3054_v28, %v3058_v48  ;;  %v5301_v59 = vcombine.high %v2918_v31, %v2922_v54  ;;  %v5429_v60 = vcombine.high %v3046_v55, %v3050_v56  ;;  %v2875_v28 = vld [vmem:[#allocation13 + $0xf0] sm:$0xff] }
 0x3e5   :  { %v2999_v48 = vld [vmem:[#allocation13 + $0x4d0] sm:$0xff] }
 0x3e7   :  { %4520 = vmatpush1.bf16.msra.mxu0 %v5228_v0  ;;  %4561 = vmatpush1.bf16.msra.mxu1 %v5356_v9  ;;  %v3042_v0 = vld [vmem:[#allocation13 + $0x628] sm:$0xff]  ;;  %v5300_v9 = vcombine.low %v2918_v31, %v2922_v54  ;;  %v2863_v54 = vld [vmem:[#allocation13 + $0x90] sm:$0xff] }
 0x3e8   :  { %4521 = vmatprep.subr.bf16.mxu0 %v5349_v10  ;;  %4562 = vmatprep.subr.bf16.mxu1 %v5477_v11  ;;  %v5428_v10 = vcombine.low %v3046_v55, %v3050_v56  ;;  %v5293_v11 = vcombine.high %v2910_v61, %v2914_v62  ;;  %v5421_v12 = vcombine.high %v3038_v63, %v3042_v0  ;;  %v2867_v55 = vld [vmem:[#allocation13 + $0xb0] sm:$0xff] }
 0x3e9   :  { %v2991_v56 = vld [vmem:[#allocation13 + $0x490] sm:$0xff] }
 0x3eb   :  { %4522 = vmatpush2.bf16.msra.mxu0 %v5348_v18  ;;  %4563 = vmatpush2.bf16.msra.mxu1 %v5476_v20  ;;  %v3035_v18 = vld [vmem:[#allocation13 + $0x5f0] sm:$0xff]  ;;  %v5292_v20 = vcombine.low %v2910_v61, %v2914_v62 }
 0x3ec   :  { %4523 = vmatprep.subr.bf16.mxu0 %v5341_v21  ;;  %4564 = vmatprep.subr.bf16.mxu1 %v5469_v22  ;;  %v5420_v21 = vcombine.low %v3038_v63, %v3042_v0  ;;  %v5287_v22 = vcombine.high %v2903_v13, %v2907_v14  ;;  %v5415_v23 = vcombine.high %v3031_v15, %v3035_v18  ;;  %v2855_v62 = vld [vmem:[#allocation13 + $0x50] sm:$0xff] }
 0x3ed   :  { %v2859_v63 = vld [vmem:[#allocation13 + $0x70] sm:$0xff] }
 0x3ee   :  { %v2983_v0 = vld [vmem:[#allocation13 + $0x450] sm:$0xff] }
 0x3ef   :  { %4524 = vmatpush2.bf16.msra.mxu0 %v5340_v34  ;;  %4565 = vmatpush2.bf16.msra.mxu1 %v5468_v6  ;;  %v3027_v34 = vld [vmem:[#allocation13 + $0x5b0] sm:$0xff]  ;;  %v5286_v6 = vcombine.low %v2903_v13, %v2907_v14 }
 0x3f0   :  { %4525 = vmatprep.subr.bf16.mxu0 %v5333_v47  ;;  %4566 = vmatprep.subr.bf16.mxu1 %v5461_v25  ;;  %v5414_v47 = vcombine.low %v3031_v15, %v3035_v18  ;;  %v5279_v25 = vcombine.high %v2895_v29, %v2899_v32  ;;  %v5407_v7 = vcombine.high %v3023_v33, %v3027_v34  ;;  %v2847_v14 = vld [vmem:[#allocation13 + $0x10] sm:$0xff] }
 0x3f1   :  { %v2851_v15 = vld [vmem:[#allocation13 + $0x30] sm:$0xff] }
 0x3f2   :  { %v2975_v18 = vld [vmem:[#allocation13 + $0x410] sm:$0xff] }
 0x3f3   :  { %4526 = vmatpush2.bf16.msra.mxu0 %v5332_v38  ;;  %4567 = vmatpush2.bf16.msra.mxu1 %v5460_v17  ;;  %v3019_v38 = vld [vmem:[#allocation13 + $0x570] sm:$0xff]  ;;  %v5278_v17 = vcombine.low %v2895_v29, %v2899_v32 }
 0x3f4   :  { %4527 = vmatprep.subr.bf16.mxu0 %v5325_v39  ;;  %4568 = vmatprep.subr.bf16.mxu1 %v5453_v40  ;;  %v5406_v39 = vcombine.low %v3023_v33, %v3027_v34  ;;  %v5271_v40 = vcombine.high %v2887_v51, %v2891_v35  ;;  %v5399_v36 = vcombine.high %v3015_v16, %v3019_v38  ;;  %v2967_v32 = vld [vmem:[#allocation13 + $0x3d0] sm:$0xff] }
 0x3f5   :  { %v2971_v33 = vld [vmem:[#allocation13 + $0x3f0] sm:$0xff] }
 0x3f6   :  { %v3095_v34 = vld [vmem:[#allocation13 + $0x7d0] sm:$0xff] }
 0x3f7   :  { %4528 = vmatpush2.bf16.msra.mxu0 %v5324_v43  ;;  %4569 = vmatpush2.bf16.msra.mxu1 %v5452_v44  ;;  %v3011_v43 = vld [vmem:[#allocation13 + $0x530] sm:$0xff]  ;;  %v5270_v44 = vcombine.low %v2887_v51, %v2891_v35 }
 0x3f8   :  { %4529 = vmatprep.subr.bf16.mxu0 %v5317_v27  ;;  %4570 = vmatprep.subr.bf16.mxu1 %v5445_v45  ;;  %v5398_v27 = vcombine.low %v3015_v16, %v3019_v38  ;;  %v5263_v45 = vcombine.high %v2879_v37, %v2883_v41  ;;  %v5391_v30 = vcombine.high %v3007_v42, %v3011_v43  ;;  %v2959_v35 = vld [vmem:[#allocation13 + $0x390] sm:$0xff] }
 0x3f9   :  { %v2963_v16 = vld [vmem:[#allocation13 + $0x3b0] sm:$0xff] }
 0x3fa   :  { %v3087_v38 = vld [vmem:[#allocation13 + $0x790] sm:$0xff] }
 0x3fb   :  { %4530 = vmatpush2.bf16.msra.mxu0 %v5316_v49  ;;  %4571 = vmatpush2.bf16.msra.mxu1 %v5444_v50  ;;  %v3003_v49 = vld [vmem:[#allocation13 + $0x4f0] sm:$0xff]  ;;  %v5262_v50 = vcombine.low %v2879_v37, %v2883_v41 }
 0x3fc   :  { %4531 = vmatprep.subr.bf16.mxu0 %v5309_v52  ;;  %4572 = vmatprep.subr.bf16.mxu1 %v5437_v53  ;;  %v5390_v52 = vcombine.low %v3007_v42, %v3011_v43  ;;  %v5255_v53 = vcombine.high %v2871_v46, %v2875_v28  ;;  %v5383_v31 = vcombine.high %v2999_v48, %v3003_v49  ;;  %v2951_v41 = vld [vmem:[#allocation13 + $0x350] sm:$0xff] }
 0x3fd   :  { %v2955_v42 = vld [vmem:[#allocation13 + $0x370] sm:$0xff] }
 0x3fe   :  { %v3079_v43 = vld [vmem:[#allocation13 + $0x750] sm:$0xff] }
 0x3ff   :  { %4532 = vmatpush2.bf16.msra.mxu0 %v5308_v57  ;;  %4573 = vmatpush2.bf16.msra.mxu1 %v5436_v58  ;;  %v2995_v57 = vld [vmem:[#allocation13 + $0x4b0] sm:$0xff]  ;;  %v5254_v58 = vcombine.low %v2871_v46, %v2875_v28 }
 0x400   :  { %4533 = vmatprep.subr.bf16.mxu0 %v5301_v59  ;;  %4574 = vmatprep.subr.bf16.mxu1 %v5429_v60  ;;  %v5382_v59 = vcombine.low %v2999_v48, %v3003_v49  ;;  %v5247_v60 = vcombine.high %v2863_v54, %v2867_v55  ;;  %v5375_v61 = vcombine.high %v2991_v56, %v2995_v57  ;;  %v2943_v28 = vld [vmem:[#allocation13 + $0x310] sm:$0xff] }
 0x401   :  { %v2947_v48 = vld [vmem:[#allocation13 + $0x330] sm:$0xff] }
 0x402   :  { %v3071_v49 = vld [vmem:[#allocation13 + $0x710] sm:$0xff] }
 0x403   :  { %4534 = vmatpush2.bf16.msra.mxu0 %v5300_v9  ;;  %4575 = vmatpush2.bf16.msra.mxu1 %v5428_v10  ;;  %v2987_v9 = vld [vmem:[#allocation13 + $0x470] sm:$0xff]  ;;  %v5246_v10 = vcombine.low %v2863_v54, %v2867_v55 }
 0x404   :  { %4535 = vmatprep.subr.bf16.mxu0 %v5293_v11  ;;  %4576 = vmatprep.subr.bf16.mxu1 %v5421_v12  ;;  %v5374_v11 = vcombine.low %v2991_v56, %v2995_v57  ;;  %v5239_v12 = vcombine.high %v2855_v62, %v2859_v63  ;;  %v5367_v13 = vcombine.high %v2983_v0, %v2987_v9  ;;  %v2935_v55 = vld [vmem:[#allocation13 + $0x2d0] sm:$0xff] }
 0x405   :  { %v2939_v56 = vld [vmem:[#allocation13 + $0x2f0] sm:$0xff] }
 0x406   :  { %v3063_v57 = vld [vmem:[#allocation13 + $0x6d0] sm:$0xff] }
 0x407   :  { %4536 = vmatpush2.bf16.msra.mxu0 %v5292_v20  ;;  %4577 = vmatpush2.bf16.msra.mxu1 %v5420_v21  ;;  %v2979_v20 = vld [vmem:[#allocation13 + $0x430] sm:$0xff]  ;;  %v5238_v21 = vcombine.low %v2855_v62, %v2859_v63 }
 0x408   :  { %4587 = vmatprep.subr.bf16.mxu0 %v5287_v22  ;;  %4628 = vmatprep.subr.bf16.mxu1 %v5415_v23  ;;  %v5366_v22 = vcombine.low %v2983_v0, %v2987_v9  ;;  %v5231_v23 = vcombine.high %v2847_v14, %v2851_v15  ;;  %v5359_v29 = vcombine.high %v2975_v18, %v2979_v20  ;;  %v2927_v63 = vld [vmem:[#allocation13 + $0x290] sm:$0xff] }
 0x409   :  { %v2931_v0 = vld [vmem:[#allocation13 + $0x2b0] sm:$0xff] }
 0x40a   :  { %4538 = vmatmul.mubr.bf16.vlgmr.msra.gmra.mxu0 %v6478_v5  ;;  %4579 = vmatmul.mubr.bf16.vlgmr.msra.gmra.mxu1 %v6480_v8  ;;  %v3055_v9 = vld [vmem:[#allocation13 + $0x690] sm:$0xff] }
 0x40b   :  { %4588 = vmatpush1.bf16.msra.mxu0 %v5286_v6  ;;  %4619 = vmatprep.mubr.bf16.mxu0 %v6474_v1  ;;  %v3099_v6 = vld [vmem:[#allocation13 + $0x7f0] sm:$0xff] }
 0x40c   :  { %4629 = vmatpush1.bf16.msra.mxu1 %v5414_v47  ;;  %4660 = vmatprep.mubr.bf16.mxu1 %v6476_v4  ;;  %v5230_v47 = vcombine.low %v2847_v14, %v2851_v15  ;;  %v5479_v51 = vcombine.high %v3095_v34, %v3099_v6  ;;  %v2919_v15 = vld [vmem:[#allocation13 + $0x250] sm:$0xff] }
 0x40d   :  { %4589 = vmatprep.subr.bf16.mxu0 %v5279_v25  ;;  %4630 = vmatprep.subr.bf16.mxu1 %v5407_v7  ;;  %v5358_v25 = vcombine.low %v2975_v18, %v2979_v20  ;;  %v5351_v7 = vcombine.high %v2967_v32, %v2971_v33  ;;  %v2923_v18 = vld [vmem:[#allocation13 + $0x270] sm:$0xff] }
 0x40e   :  { %v3047_v20 = vld [vmem:[#allocation13 + $0x650] sm:$0xff] }
 0x40f   :  { %4590 = vmatpush1.bf16.msra.mxu0 %v5278_v17  ;;  %v3091_v17 = vld [vmem:[#allocation13 + $0x7b0] sm:$0xff] }
 0x410   :  { %4631 = vmatpush1.bf16.msra.mxu1 %v5406_v39  ;;  %4591 = vmatprep.subr.bf16.mxu0 %v5271_v40  ;;  %v5350_v39 = vcombine.low %v2967_v32, %v2971_v33  ;;  %v5478_v40 = vcombine.low %v3095_v34, %v3099_v6  ;;  %v5471_v37 = vcombine.high %v3087_v38, %v3091_v17  ;;  %v2911_v33 = vld [vmem:[#allocation13 + $0x210] sm:$0xff] }
 0x411   :  { %4632 = vmatprep.subr.bf16.mxu1 %v5399_v36  ;;  %v5343_v36 = vcombine.high %v2959_v35, %v2963_v16  ;;  %v2915_v34 = vld [vmem:[#allocation13 + $0x230] sm:$0xff] }
 0x412   :  { %v3039_v6 = vld [vmem:[#allocation13 + $0x610] sm:$0xff] }
 0x413   :  { %4592 = vmatpush1.bf16.msra.mxu0 %v5270_v44  ;;  %v3083_v44 = vld [vmem:[#allocation13 + $0x770] sm:$0xff] }
 0x414   :  { %4633 = vmatpush1.bf16.msra.mxu1 %v5398_v27  ;;  %4593 = vmatprep.subr.bf16.mxu0 %v5263_v45  ;;  %v5342_v27 = vcombine.low %v2959_v35, %v2963_v16  ;;  %v5470_v45 = vcombine.low %v3087_v38, %v3091_v17  ;;  %v5463_v46 = vcombine.high %v3079_v43, %v3083_v44  ;;  %v2904_v16 = vld [vmem:[#allocation13 + $0x1d8] sm:$0xff] }
 0x415   :  { %4634 = vmatprep.subr.bf16.mxu1 %v5391_v30  ;;  %v5335_v30 = vcombine.high %v2951_v41, %v2955_v42  ;;  %v2908_v38 = vld [vmem:[#allocation13 + $0x1f8] sm:$0xff] }
 0x416   :  { %v3032_v17 = vld [vmem:[#allocation13 + $0x5d8] sm:$0xff] }
 0x417   :  { %4594 = vmatpush1.bf16.msra.mxu0 %v5262_v50  ;;  %v3075_v50 = vld [vmem:[#allocation13 + $0x730] sm:$0xff] }
 0x418   :  { %4635 = vmatpush1.bf16.msra.mxu1 %v5390_v52  ;;  %4595 = vmatprep.subr.bf16.mxu0 %v5255_v53  ;;  %v5334_v52 = vcombine.low %v2951_v41, %v2955_v42  ;;  %v5462_v53 = vcombine.low %v3079_v43, %v3083_v44  ;;  %v5455_v54 = vcombine.high %v3071_v49, %v3075_v50  ;;  %v2896_v42 = vld [vmem:[#allocation13 + $0x198] sm:$0xff] }
 0x419   :  { %4636 = vmatprep.subr.bf16.mxu1 %v5383_v31  ;;  %v5327_v31 = vcombine.high %v2943_v28, %v2947_v48  ;;  %v2900_v43 = vld [vmem:[#allocation13 + $0x1b8] sm:$0xff]  ;;  %v5288_v44 = vcombine.low %v2904_v16, %v2908_v38 }
 0x41b   :  { %4596 = vmatpush1.bf16.msra.mxu0 %v5254_v58  ;;  %v3067_v58 = vld [vmem:[#allocation13 + $0x6f0] sm:$0xff] }
 0x41c   :  { %4637 = vmatpush1.bf16.msra.mxu1 %v5382_v59  ;;  %4597 = vmatprep.subr.bf16.mxu0 %v5247_v60  ;;  %v5326_v59 = vcombine.low %v2943_v28, %v2947_v48  ;;  %v5454_v60 = vcombine.low %v3071_v49, %v3075_v50  ;;  %v5447_v62 = vcombine.high %v3063_v57, %v3067_v58  ;;  %v2888_v28 = vld [vmem:[#allocation13 + $0x158] sm:$0xff] }
 0x41d   :  { %4638 = vmatprep.subr.bf16.mxu1 %v5375_v61  ;;  %v5319_v61 = vcombine.high %v2935_v55, %v2939_v56  ;;  %v2892_v48 = vld [vmem:[#allocation13 + $0x178] sm:$0xff] }
 0x41e   :  { %v3016_v50 = vld [vmem:[#allocation13 + $0x558] sm:$0xff] }
 0x41f   :  { %4598 = vmatpush1.bf16.msra.mxu0 %v5246_v10  ;;  %v3059_v10 = vld [vmem:[#allocation13 + $0x6b0] sm:$0xff] }
 0x420   :  { %4639 = vmatpush1.bf16.msra.mxu1 %v5374_v11  ;;  %4599 = vmatprep.subr.bf16.mxu0 %v5239_v12  ;;  %v5318_v11 = vcombine.low %v2935_v55, %v2939_v56  ;;  %v5446_v12 = vcombine.low %v3063_v57, %v3067_v58  ;;  %v5439_v14 = vcombine.high %v3055_v9, %v3059_v10  ;;  %v2880_v56 = vld [vmem:[#allocation13 + $0x118] sm:$0xff] }
 0x421   :  { %4640 = vmatprep.subr.bf16.mxu1 %v5367_v13  ;;  %v5311_v13 = vcombine.high %v2927_v63, %v2931_v0  ;;  %v2884_v57 = vld [vmem:[#allocation13 + $0x138] sm:$0xff] }
 0x422   :  { %v3008_v58 = vld [vmem:[#allocation13 + $0x518] sm:$0xff] }
 0x423   :  { %4600 = vmatpush1.bf16.msra.mxu0 %v5238_v21  ;;  %v3051_v21 = vld [vmem:[#allocation13 + $0x670] sm:$0xff] }
 0x424   :  { %4641 = vmatpush1.bf16.msra.mxu1 %v5366_v22  ;;  %4601 = vmatprep.subr.bf16.mxu0 %v5231_v23  ;;  %v5310_v22 = vcombine.low %v2927_v63, %v2931_v0  ;;  %v5438_v23 = vcombine.low %v3055_v9, %v3059_v10  ;;  %v5431_v32 = vcombine.high %v3047_v20, %v3051_v21  ;;  %v2872_v63 = vld [vmem:[#allocation13 + $0xd8] sm:$0xff] }
 0x425   :  { %4642 = vmatprep.subr.bf16.mxu1 %v5359_v29  ;;  %v5303_v29 = vcombine.high %v2919_v15, %v2923_v18  ;;  %v2876_v0 = vld [vmem:[#allocation13 + $0xf8] sm:$0xff] }
 0x426   :  { %v3000_v9 = vld [vmem:[#allocation13 + $0x4d8] sm:$0xff] }
 0x427   :  { %4602 = vmatpush1.bf16.msra.mxu0 %v5230_v47  ;;  %v3043_v47 = vld [vmem:[#allocation13 + $0x630] sm:$0xff]  ;;  %v3004_v10 = vld [vmem:[#allocation13 + $0x4f8] sm:$0xff] }
 0x428   :  { %4643 = vmatpush1.bf16.msra.mxu1 %v5358_v25  ;;  %4603 = vmatprep.subr.bf16.mxu0 %v5351_v7  ;;  %v5302_v25 = vcombine.low %v2919_v15, %v2923_v18  ;;  %v5430_v7 = vcombine.low %v3047_v20, %v3051_v21  ;;  %v5423_v35 = vcombine.high %v3039_v6, %v3043_v47  ;;  %v2868_v15 = vld [vmem:[#allocation13 + $0xb8] sm:$0xff] }
 0x429   :  { %4644 = vmatprep.subr.bf16.mxu1 %v5479_v51  ;;  %v5295_v51 = vcombine.high %v2911_v33, %v2915_v34  ;;  %v2992_v18 = vld [vmem:[#allocation13 + $0x498] sm:$0xff]  ;;  %v5256_v21 = vcombine.low %v2872_v63, %v2876_v0 }
 0x42a   :  { %v2996_v20 = vld [vmem:[#allocation13 + $0x4b8] sm:$0xff] }
 0x42b   :  { %4604 = vmatpush2.bf16.msra.mxu0 %v5350_v39  ;;  %v3036_v39 = vld [vmem:[#allocation13 + $0x5f8] sm:$0xff] }
 0x42c   :  { %4645 = vmatpush2.bf16.msra.mxu1 %v5478_v40  ;;  %4605 = vmatprep.subr.bf16.mxu0 %v5343_v36  ;;  %v5294_v40 = vcombine.low %v2911_v33, %v2915_v34  ;;  %v5422_v36 = vcombine.low %v3039_v6, %v3043_v47  ;;  %v5417_v41 = vcombine.high %v3032_v17, %v3036_v39  ;;  %v2860_v33 = vld [vmem:[#allocation13 + $0x78] sm:$0xff] }
 0x42d   :  { %4646 = vmatprep.subr.bf16.mxu1 %v5471_v37  ;;  %v5289_v37 = vcombine.high %v2904_v16, %v2908_v38  ;;  %v2984_v34 = vld [vmem:[#allocation13 + $0x458] sm:$0xff] }
 0x42e   :  { %v2988_v6 = vld [vmem:[#allocation13 + $0x478] sm:$0xff] }
 0x42f   :  { %4606 = vmatpush2.bf16.msra.mxu0 %v5342_v27  ;;  %v3024_v27 = vld [vmem:[#allocation13 + $0x598] sm:$0xff] }
 0x430   :  { %4647 = vmatpush2.bf16.msra.mxu1 %v5470_v45  ;;  %4607 = vmatprep.subr.bf16.mxu0 %v5335_v30  ;;  %v3028_v45 = vld [vmem:[#allocation13 + $0x5b8] sm:$0xff]  ;;  %v5416_v30 = vcombine.low %v3032_v17, %v3036_v39 }
 0x431   :  { %4648 = vmatprep.subr.bf16.mxu1 %v5463_v46  ;;  %v5281_v46 = vcombine.high %v2896_v42, %v2900_v43  ;;  %v5409_v49 = vcombine.high %v3024_v27, %v3028_v45  ;;  %v2852_v16 = vld [vmem:[#allocation13 + $0x38] sm:$0xff] }
 0x432   :  { %v2976_v38 = vld [vmem:[#allocation13 + $0x418] sm:$0xff] }
 0x433   :  { %4608 = vmatpush2.bf16.msra.mxu0 %v5334_v52  ;;  %v3020_v52 = vld [vmem:[#allocation13 + $0x578] sm:$0xff] }
 0x434   :  { %4649 = vmatpush2.bf16.msra.mxu1 %v5462_v53  ;;  %4609 = vmatprep.subr.bf16.mxu0 %v5327_v31  ;;  %v5280_v53 = vcombine.low %v2896_v42, %v2900_v43  ;;  %v5408_v31 = vcombine.low %v3024_v27, %v3028_v45  ;;  %v5401_v55 = vcombine.high %v3016_v50, %v3020_v52  ;;  %v2980_v17 = vld [vmem:[#allocation13 + $0x438] sm:$0xff] }
 0x435   :  { %4650 = vmatprep.subr.bf16.mxu1 %v5455_v54  ;;  %v5273_v54 = vcombine.high %v2888_v28, %v2892_v48  ;;  %v2972_v42 = vld [vmem:[#allocation13 + $0x3f8] sm:$0xff]  ;;  %v5360_v45 = vcombine.low %v2976_v38, %v2980_v17 }
 0x436   :  { %v3096_v43 = vld [vmem:[#allocation13 + $0x7d8] sm:$0xff] }
 0x437   :  { %4610 = vmatpush2.bf16.msra.mxu0 %v5326_v59  ;;  %v3012_v59 = vld [vmem:[#allocation13 + $0x538] sm:$0xff] }
 0x438   :  { %4651 = vmatpush2.bf16.msra.mxu1 %v5454_v60  ;;  %4611 = vmatprep.subr.bf16.mxu0 %v5319_v61  ;;  %v5272_v60 = vcombine.low %v2888_v28, %v2892_v48  ;;  %v5400_v61 = vcombine.low %v3016_v50, %v3020_v52  ;;  %v2960_v28 = vld [vmem:[#allocation13 + $0x398] sm:$0xff] }
 0x439   :  { %4652 = vmatprep.subr.bf16.mxu1 %v5447_v62  ;;  %v5265_v62 = vcombine.high %v2880_v56, %v2884_v57  ;;  %v2964_v48 = vld [vmem:[#allocation13 + $0x3b8] sm:$0xff] }
 0x43a   :  { %v3092_v50 = vld [vmem:[#allocation13 + $0x7b8] sm:$0xff] }
 0x43b   :  { %4612 = vmatpush2.bf16.msra.mxu0 %v5318_v11  ;;  %v5392_v11 = vcombine.low %v3008_v58, %v3012_v59 }
 0x43c   :  { %4653 = vmatpush2.bf16.msra.mxu1 %v5446_v12  ;;  %4613 = vmatprep.subr.bf16.mxu0 %v5311_v13  ;;  %v5257_v12 = vcombine.high %v2872_v63, %v2876_v0  ;;  %v5385_v13 = vcombine.high %v3000_v9, %v3004_v10  ;;  %v2948_v63 = vld [vmem:[#allocation13 + $0x338] sm:$0xff] }
 0x43d   :  { %4654 = vmatprep.subr.bf16.mxu1 %v5439_v14  ;;  %v2864_v14 = vld [vmem:[#allocation13 + $0x98] sm:$0xff] }
 0x43e   :  { %v5248_v47 = vcombine.low %v2864_v14, %v2868_v15  ;;  %v3072_v0 = vld [vmem:[#allocation13 + $0x718] sm:$0xff] }
 0x43f   :  { %4614 = vmatpush2.bf16.msra.mxu0 %v5310_v22  ;;  %v5384_v22 = vcombine.low %v3000_v9, %v3004_v10  ;;  %v3076_v9 = vld [vmem:[#allocation13 + $0x738] sm:$0xff] }
 0x440   :  { %4655 = vmatpush2.bf16.msra.mxu1 %v5438_v23  ;;  %4615 = vmatprep.subr.bf16.mxu0 %v5303_v29  ;;  %v5249_v23 = vcombine.high %v2864_v14, %v2868_v15  ;;  %v5377_v29 = vcombine.high %v2992_v18, %v2996_v20  ;;  %v2940_v14 = vld [vmem:[#allocation13 + $0x2f8] sm:$0xff] }
 0x441   :  { %4656 = vmatprep.subr.bf16.mxu1 %v5431_v32  ;;  %v2856_v32 = vld [vmem:[#allocation13 + $0x58] sm:$0xff] }
 0x442   :  { %v5240_v39 = vcombine.low %v2856_v32, %v2860_v33  ;;  %v3064_v15 = vld [vmem:[#allocation13 + $0x6d8] sm:$0xff] }
 0x443   :  { %4616 = vmatpush2.bf16.msra.mxu0 %v5302_v25  ;;  %v5376_v25 = vcombine.low %v2992_v18, %v2996_v20  ;;  %v3068_v18 = vld [vmem:[#allocation13 + $0x6f8] sm:$0xff] }
 0x444   :  { %4657 = vmatpush2.bf16.msra.mxu1 %v5430_v7  ;;  %4617 = vmatprep.subr.bf16.mxu0 %v5295_v51  ;;  %v5241_v7 = vcombine.high %v2856_v32, %v2860_v33  ;;  %v5369_v51 = vcombine.high %v2984_v34, %v2988_v6  ;;  %v2932_v32 = vld [vmem:[#allocation13 + $0x2b8] sm:$0xff] }
 0x445   :  { %4658 = vmatprep.subr.bf16.mxu1 %v5423_v35  ;;  %v2848_v35 = vld [vmem:[#allocation13 + $0x18] sm:$0xff] }
 0x446   :  { %v5232_v27 = vcombine.low %v2848_v35, %v2852_v16  ;;  %v3056_v33 = vld [vmem:[#allocation13 + $0x698] sm:$0xff] }
 0x447   :  { %4618 = vmatpush2.bf16.msra.mxu0 %v5294_v40  ;;  %v5368_v40 = vcombine.low %v2984_v34, %v2988_v6  ;;  %v3060_v34 = vld [vmem:[#allocation13 + $0x6b8] sm:$0xff] }
 0x448   :  { %4659 = vmatpush2.bf16.msra.mxu1 %v5422_v36  ;;  %4669 = vmatprep.subr.bf16.mxu0 %v5289_v37  ;;  %v5233_v36 = vcombine.high %v2848_v35, %v2852_v16  ;;  %v5361_v37 = vcombine.high %v2976_v38, %v2980_v17  ;;  %v2924_v35 = vld [vmem:[#allocation13 + $0x278] sm:$0xff] }
 0x449   :  { %4710 = vmatprep.subr.bf16.mxu1 %v5417_v41  ;;  %v2968_v41 = vld [vmem:[#allocation13 + $0x3d8] sm:$0xff] }
 0x44a   :  { %4620 = vmatmul.mubr.bf16.vlgmr.msra.gmra.mxu0 %v6478_v5  ;;  %v5352_v52 = vcombine.low %v2968_v41, %v2972_v42  ;;  %v3048_v16 = vld [vmem:[#allocation13 + $0x658] sm:$0xff] }
 0x44b   :  { %4661 = vmatmul.mubr.bf16.vlgmr.msra.gmra.mxu1 %v6480_v8  ;;  %4670 = vmatpush1.bf16.msra.mxu0 %v5288_v44  ;;  %v3100_v44 = vld [vmem:[#allocation13 + $0x7f8] sm:$0xff] }
 0x44c   :  { %4701 = vmatprep.mubr.bf16.mxu0 %v6474_v1  ;;  %4711 = vmatpush1.bf16.msra.mxu1 %v5416_v30  ;;  %v5393_v1 = vcombine.high %v3008_v58, %v3012_v59  ;;  %v5353_v30 = vcombine.high %v2968_v41, %v2972_v42  ;;  %v3084_v58 = vld [vmem:[#allocation13 + $0x778] sm:$0xff]  ;;  %v5344_v59 = vcombine.low %v2960_v28, %v2964_v48 }
 0x44d   :  { %4742 = vmatprep.mubr.bf16.mxu1 %v6476_v4  ;;  %4671 = vmatprep.subr.bf16.mxu0 %v5281_v46  ;;  %v5264_v4 = vcombine.low %v2880_v56, %v2884_v57  ;;  %v5481_v46 = vcombine.high %v3096_v43, %v3100_v44  ;;  %v2956_v56 = vld [vmem:[#allocation13 + $0x378] sm:$0xff] }
 0x44e   :  { %4712 = vmatprep.subr.bf16.mxu1 %v5409_v49  ;;  %v3088_v49 = vld [vmem:[#allocation13 + $0x798] sm:$0xff] }
 0x44f   :  { %4672 = vmatpush1.bf16.msra.mxu0 %v5280_v53  ;;  %v5480_v53 = vcombine.low %v3096_v43, %v3100_v44  ;;  %v3080_v57 = vld [vmem:[#allocation13 + $0x758] sm:$0xff] }
 0x450   :  { %4713 = vmatpush1.bf16.msra.mxu1 %v5408_v31  ;;  %4673 = vmatprep.subr.bf16.mxu0 %v5273_v54  ;;  %v5345_v31 = vcombine.high %v2960_v28, %v2964_v48  ;;  %v5473_v54 = vcombine.high %v3088_v49, %v3092_v50  ;;  %v3052_v38 = vld [vmem:[#allocation13 + $0x678] sm:$0xff] }
 0x451   :  { %4714 = vmatprep.subr.bf16.mxu1 %v5401_v55  ;;  %v2952_v55 = vld [vmem:[#allocation13 + $0x358] sm:$0xff] }
 0x452   :  { %v5336_v10 = vcombine.low %v2952_v55, %v2956_v56  ;;  %v2916_v41 = vld [vmem:[#allocation13 + $0x238] sm:$0xff] }
 0x453   :  { %4674 = vmatpush1.bf16.msra.mxu0 %v5272_v60  ;;  %v5472_v60 = vcombine.low %v3088_v49, %v3092_v50  ;;  %v3040_v42 = vld [vmem:[#allocation13 + $0x618] sm:$0xff] }
 0x454   :  { %4715 = vmatpush1.bf16.msra.mxu1 %v5400_v61  ;;  %4675 = vmatprep.subr.bf16.mxu0 %v5265_v62  ;;  %v5337_v61 = vcombine.high %v2952_v55, %v2956_v56  ;;  %v5465_v62 = vcombine.high %v3080_v57, %v3084_v58  ;;  %v3044_v43 = vld [vmem:[#allocation13 + $0x638] sm:$0xff] }
 0x455   :  { %4716 = vmatprep.subr.bf16.mxu1 %v5393_v1  ;;  %v2944_v1 = vld [vmem:[#allocation13 + $0x318] sm:$0xff]  ;;  %v5424_v28 = vcombine.low %v3040_v42, %v3044_v43 }
 0x456   :  { %v5328_v20 = vcombine.low %v2944_v1, %v2948_v63  ;;  %v6499_v48 = vld [vmem:[%s6537_s9] sm:$0xff]  ;;  %s6287_s9 = smov [#allocation15]  }
 0x457   :  { %4676 = vmatpush1.bf16.msra.mxu0 %v5264_v4  ;;  %v5464_v4 = vcombine.low %v3080_v57, %v3084_v58  ;;  %v3106_v49 = vrot.slane %v6499_v48, %v6431_v24  ;;  %v3110_v50 = vrot.slane %v6499_v48, %v6439_v26  ;;  %s4837_s22 = sshll.u32 %s6287_s9, 4  ;;  %s4838_s22 = int_to_ptr.vmem [resolvable:$true] %s4837_s22 }
 0x458   :  { %4717 = vmatpush1.bf16.msra.mxu1 %v5392_v11  ;;  %4677 = vmatprep.subr.bf16.mxu0 %v5257_v12  ;;  %v5329_v11 = vcombine.high %v2944_v1, %v2948_v63  ;;  %v5457_v12 = vcombine.high %v3072_v0, %v3076_v9  ;;  %s6201_s4 = scalar_lea.vmem %s4838_s22, 128  ;;  %p6206_p8 = scmp.lt.s32.totalorder %s4838_s22, %s4838_s22 }
 0x459   :  { %4718 = vmatprep.subr.bf16.mxu1 %v5385_v13  ;;  %v2936_v13 = vld [vmem:[#allocation13 + $0x2d8] sm:$0xff]  ;;  %p6202_p7 = scmp.ne.s32.totalorder %s4838_s22, %s6201_s4  ;;  %p6207_p9 = scmp.lt.s32.totalorder %s6201_s4, %s6201_s4 }
 0x45a   :  { %v5320_v6 = vcombine.low %v2936_v13, %v2940_v14 }
 0x45b   :  { %4678 = vmatpush1.bf16.msra.mxu0 %v5256_v21  ;;  %v5456_v21 = vcombine.low %v3072_v0, %v3076_v9  ;;  %p6208_p10 = por %p6207_p9, %p6206_p8 }
 0x45c   :  { %4719 = vmatpush1.bf16.msra.mxu1 %v5384_v22  ;;  %4679 = vmatprep.subr.bf16.mxu0 %v5249_v23  ;;  %v5321_v22 = vcombine.high %v2936_v13, %v2940_v14  ;;  %v5449_v23 = vcombine.high %v3064_v15, %v3068_v18 }
 0x45d   :  { %4720 = vmatprep.subr.bf16.mxu1 %v5377_v29  ;;  %v2928_v29 = vld [vmem:[#allocation13 + $0x298] sm:$0xff]  ;;  %p6209_p11 = pnand %p6208_p10, %p6202_p7 }
 0x45e   :  { %v5312_v17 = vcombine.low %v2928_v29, %v2932_v32 }
 0x45f   :  { %4680 = vmatpush1.bf16.msra.mxu0 %v5248_v47  ;;  %v5448_v47 = vcombine.low %v3064_v15, %v3068_v18 }
 0x460   :  { %4721 = vmatpush1.bf16.msra.mxu1 %v5376_v25  ;;  %4681 = vmatprep.subr.bf16.mxu0 %v5241_v7  ;;  %v5313_v25 = vcombine.high %v2928_v29, %v2932_v32  ;;  %v5441_v7 = vcombine.high %v3056_v33, %v3060_v34 }
 0x461   :  { %4722 = vmatprep.subr.bf16.mxu1 %v5369_v51  ;;  %v2920_v51 = vld [vmem:[#allocation13 + $0x258] sm:$0xff] }
 0x462   :  { %v5304_v44 = vcombine.low %v2920_v51, %v2924_v35 }
 0x463   :  { %4682 = vmatpush1.bf16.msra.mxu0 %v5240_v39  ;;  %v5440_v39 = vcombine.low %v3056_v33, %v3060_v34 }
 0x464   :  { %4723 = vmatpush1.bf16.msra.mxu1 %v5368_v40  ;;  %4683 = vmatprep.subr.bf16.mxu0 %v5233_v36  ;;  %v5305_v40 = vcombine.high %v2920_v51, %v2924_v35  ;;  %v5433_v36 = vcombine.high %v3048_v16, %v3052_v38 }
 0x465   :  { %4724 = vmatprep.subr.bf16.mxu1 %v5361_v37  ;;  %v2912_v37 = vld [vmem:[#allocation13 + $0x218] sm:$0xff] }
 0x467   :  { %4684 = vmatpush1.bf16.msra.mxu0 %v5232_v27  ;;  %v5432_v27 = vcombine.low %v3048_v16, %v3052_v38 }
 0x468   :  { %4725 = vmatpush1.bf16.msra.mxu1 %v5360_v45  ;;  %4685 = vmatprep.subr.bf16.mxu0 %v5353_v30  ;;  %v5297_v45 = vcombine.high %v2912_v37, %v2916_v41  ;;  %v5425_v30 = vcombine.high %v3040_v42, %v3044_v43 }
 0x469   :  { %4726 = vmatprep.subr.bf16.mxu1 %v5481_v46  ;;  %v5296_v46 = vcombine.low %v2912_v37, %v2916_v41 }
 0x46b   :  { %4686 = vmatpush2.bf16.msra.mxu0 %v5352_v52 }
 0x46c   :  { %4727 = vmatpush2.bf16.msra.mxu1 %v5480_v53  ;;  %4687 = vmatprep.subr.bf16.mxu0 %v5345_v31 }
 0x46d   :  { %4728 = vmatprep.subr.bf16.mxu1 %v5473_v54 }
 0x46f   :  { %4688 = vmatpush2.bf16.msra.mxu0 %v5344_v59 }
 0x470   :  { %4729 = vmatpush2.bf16.msra.mxu1 %v5472_v60  ;;  %4689 = vmatprep.subr.bf16.mxu0 %v5337_v61 }
 0x471   :  { %4730 = vmatprep.subr.bf16.mxu1 %v5465_v62 }
 0x473   :  { %4690 = vmatpush2.bf16.msra.mxu0 %v5336_v10 }
 0x474   :  { %4731 = vmatpush2.bf16.msra.mxu1 %v5464_v4  ;;  %4691 = vmatprep.subr.bf16.mxu0 %v5329_v11  ;;  %v3114_v4 = vrot.slane %v6499_v48, %v6450_v2  ;;  %v3118_v11 = vrot.slane %v6499_v48, %v6453_v3 }
 0x475   :  { %4732 = vmatprep.subr.bf16.mxu1 %v5457_v12 }
 0x477   :  { %4692 = vmatpush2.bf16.msra.mxu0 %v5328_v20 }
 0x478   :  { %4733 = vmatpush2.bf16.msra.mxu1 %v5456_v21  ;;  %4693 = vmatprep.subr.bf16.mxu0 %v5321_v22 }
 0x479   :  { %4734 = vmatprep.subr.bf16.mxu1 %v5449_v23 }
 0x47b   :  { %4694 = vmatpush2.bf16.msra.mxu0 %v5320_v6 }
 0x47c   :  { %4735 = vmatpush2.bf16.msra.mxu1 %v5448_v47  ;;  %4695 = vmatprep.subr.bf16.mxu0 %v5313_v25 }
 0x47d   :  { %4736 = vmatprep.subr.bf16.mxu1 %v5441_v7 }
 0x47f   :  { %4696 = vmatpush2.bf16.msra.mxu0 %v5312_v17 }
 0x480   :  { %4737 = vmatpush2.bf16.msra.mxu1 %v5440_v39  ;;  %4697 = vmatprep.subr.bf16.mxu0 %v5305_v40 }
 0x481   :  { %4738 = vmatprep.subr.bf16.mxu1 %v5433_v36 }
 0x483   :  { %4698 = vmatpush2.bf16.msra.mxu0 %v5304_v44 }
 0x484   :  { %4739 = vmatpush2.bf16.msra.mxu1 %v5432_v27  ;;  %4699 = vmatprep.subr.bf16.mxu0 %v5297_v45 }
 0x485   :  { %4740 = vmatprep.subr.bf16.mxu1 %v5425_v30 }
 0x487   :  { %4700 = vmatpush2.bf16.msra.mxu0 %v5296_v46 }
 0x488   :  { %4741 = vmatpush2.bf16.msra.mxu1 %v5424_v28 }
 0x48a   :  { %4702 = vmatmul.mubr.bf16.vlgmr.msra.gmra.mxu0 %v6478_v5  ;;  %v4457_v52 = vpop.f32.mrf.mxu0  ;;  %v4498_v53 = vpop.f32.mrf.mxu1 }
 0x48b   :  { %4743 = vmatmul.mubr.bf16.vlgmr.msra.gmra.mxu1 %v6480_v8  ;;  %v4458_v31 = vadd.f32 %v4457_v52, %v3106_v49 }
 0x48c   :  { %v4459_v54 = vpop.f32.mrf.mxu0  ;;  %v4500_v55 = vpop.f32.mrf.mxu1 }
 0x48d   :  { %v4499_v56 = vadd.f32 %v4498_v53, %v4458_v31  ;;  %v4460_v57 = vadd.f32 %v4459_v54, %v3110_v50 }
 0x48e   :  { %v4461_v58 = vpop.f32.mrf.mxu0  ;;  %v4502_v59 = vpop.f32.mrf.mxu1 }
 0x48f   :  { %v4751_v60 = vmul.f32 0.5, %v4499_v56  ;;  %v4501_v61 = vadd.f32 %v4500_v55, %v4460_v57 }
 0x490   :  { %v4462_v24 = vpop.f32.mrf.mxu0  ;;  %v4503_v62 = vpop.f32.mrf.mxu1 }
 0x491   :  { %6045 = vtanh.f32 %v4751_v60  ;;  %v4752_v1 = vmul.f32 0.5, %v4501_v61 }
 0x493   :  { %6047 = vtanh.f32 %v4752_v1 }
 0x49e   :  { %v6046_v26 = vpop.eup %6045 }
 0x49f   :  { %v4767_v5 = vadd.f32 1.0, %v6046_v26 }
 0x4a0   :  { %v6048_v63 = vpop.eup %6047 }
 0x4a1   :  { %v4768_v0 = vadd.f32 1.0, %v6048_v63  ;;  %v4775_v9 = vmul.f32 0.5, %v4767_v5 }
 0x4a3   :  { %v4776_v8 = vmul.f32 0.5, %v4768_v0 }
 0x4a5   :  { %v5486_v10 = vpack.c.bf16 %v4776_v8, %v4775_v9 }
 0x4a7   :  { %4815 = vst [vmem:[#allocation14] sm:$0xff] %v5486_v10 }
 0x4ca   :  { %v4539_v12 = vpop.f32.mrf.mxu0  ;;  %v4580_v13 = vpop.f32.mrf.mxu1 }
 0x4cb   :  { %v4540_v14 = vadd.f32 %v4539_v12, %v3114_v4 }
 0x4cc   :  { %v4541_v15 = vpop.f32.mrf.mxu0  ;;  %v4582_v18 = vpop.f32.mrf.mxu1 }
 0x4cd   :  { %v4581_v20 = vadd.f32 %v4580_v13, %v4540_v14  ;;  %v4542_v21 = vadd.f32 %v4541_v15, %v3118_v11 }
 0x4ce   :  { %v4543_v22 = vpop.f32.mrf.mxu0  ;;  %v4584_v23 = vpop.f32.mrf.mxu1 }
 0x4cf   :  { %v4753_v29 = vmul.f32 0.5, %v4581_v20  ;;  %v4583_v32 = vadd.f32 %v4582_v18, %v4542_v21 }
 0x4d0   :  { %v4544_v33 = vpop.f32.mrf.mxu0  ;;  %v4585_v34 = vpop.f32.mrf.mxu1 }
 0x4d1   :  { %6049 = vtanh.f32 %v4753_v29  ;;  %v4754_v6 = vmul.f32 0.5, %v4583_v32 }
 0x4d3   :  { %6051 = vtanh.f32 %v4754_v6 }
 0x4de   :  { %v6050_v2 = vpop.eup %6049 }
 0x4df   :  { %v4769_v47 = vadd.f32 1.0, %v6050_v2 }
 0x4e0   :  { %v6052_v25 = vpop.eup %6051 }
 0x4e1   :  { %v4770_v3 = vadd.f32 1.0, %v6052_v25  ;;  %v4777_v7 = vmul.f32 0.5, %v4769_v47 }
 0x4e3   :  { %v4778_v51 = vmul.f32 0.5, %v4770_v3 }
 0x4e5   :  { %v5487_v35 = vpack.c.bf16 %v4778_v51, %v4777_v7 }
 0x4e7   :  { %4816 = vst [vmem:[#allocation14 + $0x8] sm:$0xff] %v5487_v35 }
 0x4e8   :  { %6212 = shalt.err (!%p6209_p11)
}
 0x4e9   :  { %4840 = dma.vmem_to_hbm [thread:$0]  %s4838_s22, 128, %s6539_s11, [#allocation16]  }
 0x4ea   :  { %s6288_s25 = smov [#allocation17]  }
 0x4eb   :  { %s4847_s26 = sshll.u32 %s6288_s25, 4  ;;  %s4848_s26 = int_to_ptr.vmem [resolvable:$true] %s4847_s26 }
 0x4ec   :  { %s6221_s27 = scalar_lea.vmem %s4848_s26, 128  ;;  %p6226_p13 = scmp.lt.s32.totalorder %s4848_s26, %s4848_s26 }
 0x4ed   :  { %p6222_p12 = scmp.ne.s32.totalorder %s4848_s26, %s6221_s27  ;;  %p6227_p0 = scmp.lt.s32.totalorder %s6221_s27, %s6221_s27 }
 0x4ef   :  { %p6228_p1 = por %p6227_p0, %p6226_p13 }
 0x4f1   :  { %p6229_p2 = pnand %p6228_p1, %p6222_p12 }
 0x4f3   :  { %6232 = shalt.err (!%p6229_p2)
}
 0x4f4   :  { %4850 = dma.vmem_to_hbm [thread:$0]  %s4848_s26, 128, %s6540_s12, [#allocation16]   ;;  %v3121_v16 = vsub.s32 4, %v6428_v19  ;;  %v3125_v38 = vsub.s32 5, %v6428_v19  ;;  %v3129_v58 = vsub.s32 6, %v6428_v19  ;;  %v3133_v59 = vsub.s32 7, %v6428_v19 }
 0x4f5   :  { %s6289_s11 = smov [#allocation14]  }
 0x4f6   :  { %v3122_v17 = vrot.slane %v6499_v48, %v3121_v16  ;;  %v3126_v39 = vrot.slane %v6499_v48, %v3125_v38  ;;  %v3130_v60 = vrot.slane %v6499_v48, %v3129_v58  ;;  %v3134_v61 = vrot.slane %v6499_v48, %v3133_v59  ;;  %s4827_s12 = sshll.u32 %s6289_s11, 4  ;;  %s4828_s12 = int_to_ptr.vmem [resolvable:$true] %s4827_s12 }
 0x4f7   :  { %s6241_s6 = scalar_lea.vmem %s4828_s12, 512  ;;  %p6246_p4 = scmp.lt.s32.totalorder %s4828_s12, %s4828_s12 }
 0x4f8   :  { %p6242_p3 = scmp.ne.s32.totalorder %s4828_s12, %s6241_s6  ;;  %p6247_p5 = scmp.lt.s32.totalorder %s6241_s6, %s6241_s6 }
 0x4fa   :  { %p6248_p6 = por %p6247_p5, %p6246_p4 }
 0x4fc   :  { %p6249_p7 = pnand %p6248_p6, %p6242_p3 }
 0x50a   :  { %v4621_v40 = vpop.f32.mrf.mxu0 }
 0x50b   :  { %v4622_v36 = vadd.f32 %v4621_v40, %v3122_v17  ;;  %v4662_v37 = vpop.f32.mrf.mxu1 }
 0x50c   :  { %v4623_v41 = vpop.f32.mrf.mxu0 }
 0x50d   :  { %v4663_v42 = vadd.f32 %v4662_v37, %v4622_v36  ;;  %v4624_v43 = vadd.f32 %v4623_v41, %v3126_v39  ;;  %v4664_v44 = vpop.f32.mrf.mxu1 }
 0x50e   :  { %v4625_v27 = vpop.f32.mrf.mxu0 }
 0x50f   :  { %v4755_v45 = vmul.f32 0.5, %v4663_v42  ;;  %v4665_v30 = vadd.f32 %v4664_v44, %v4624_v43  ;;  %v4666_v46 = vpop.f32.mrf.mxu1 }
 0x510   :  { %v4626_v28 = vpop.f32.mrf.mxu0 }
 0x511   :  { %6053 = vtanh.f32 %v4755_v45  ;;  %v4756_v49 = vmul.f32 0.5, %v4665_v30  ;;  %v4667_v50 = vpop.f32.mrf.mxu1 }
 0x513   :  { %6055 = vtanh.f32 %v4756_v49 }
 0x51e   :  { %v6054_v52 = vpop.eup %6053 }
 0x51f   :  { %v4771_v53 = vadd.f32 1.0, %v6054_v52 }
 0x520   :  { %v6056_v31 = vpop.eup %6055 }
 0x521   :  { %v4772_v54 = vadd.f32 1.0, %v6056_v31  ;;  %v4779_v55 = vmul.f32 0.5, %v4771_v53 }
 0x523   :  { %v4780_v56 = vmul.f32 0.5, %v4772_v54 }
 0x525   :  { %v5488_v57 = vpack.c.bf16 %v4780_v56, %v4779_v55 }
 0x527   :  { %4817 = vst [vmem:[#allocation14 + $0x10] sm:$0xff] %v5488_v57 }
 0x54a   :  { %v4703_v24 = vpop.f32.mrf.mxu0 }
 0x54b   :  { %v4704_v62 = vadd.f32 %v4703_v24, %v3130_v60  ;;  %v4744_v1 = vpop.f32.mrf.mxu1 }
 0x54c   :  { %v4705_v26 = vpop.f32.mrf.mxu0 }
 0x54d   :  { %v4745_v5 = vadd.f32 %v4744_v1, %v4704_v62  ;;  %v4706_v63 = vadd.f32 %v4705_v26, %v3134_v61  ;;  %v4746_v0 = vpop.f32.mrf.mxu1 }
 0x54e   :  { %v4707_v9 = vpop.f32.mrf.mxu0 }
 0x54f   :  { %v4757_v8 = vmul.f32 0.5, %v4745_v5  ;;  %v4747_v10 = vadd.f32 %v4746_v0, %v4706_v63  ;;  %v4748_v4 = vpop.f32.mrf.mxu1 }
 0x550   :  { %v4708_v11 = vpop.f32.mrf.mxu0 }
 0x551   :  { %6057 = vtanh.f32 %v4757_v8  ;;  %v4758_v12 = vmul.f32 0.5, %v4747_v10  ;;  %v4749_v13 = vpop.f32.mrf.mxu1 }
 0x553   :  { %6059 = vtanh.f32 %v4758_v12 }
 0x55e   :  { %v6058_v19 = vpop.eup %6057 }
 0x55f   :  { %v4773_v14 = vadd.f32 1.0, %v6058_v19 }
 0x560   :  { %v6060_v15 = vpop.eup %6059 }
 0x561   :  { %v4774_v48 = vadd.f32 1.0, %v6060_v15  ;;  %v4781_v18 = vmul.f32 0.5, %v4773_v14 }
 0x563   :  { %v4782_v20 = vmul.f32 0.5, %v4774_v48 }
 0x565   :  { %v5489_v21 = vpack.c.bf16 %v4782_v20, %v4781_v18 }
 0x567   :  { %4818 = vst [vmem:[#allocation14 + $0x18] sm:$0xff] %v5489_v21 }
 0x568   :  { %6252 = shalt.err (!%p6249_p7)
}
 0x569   :  { %4830 = dma.vmem_to_hbm [thread:$0]  %s4828_s12, 512, %s6538_s10, [#allocation4]  }
 0x56a   :  { %6269 = dma.done.wait [#allocation4], 512  }
 0x56b   :  { %6270 = vsyncadd [#allocation4], 4294966784 }
 0x56c   :  { %6271 = dma.done.wait [#allocation16], 256  }
 0x56d   :  { %6272 = vsyncadd [#allocation16], 4294967040 }
 0x56e   :  { %4860 = vsyncpa [#allocation3], 1 }
 0x56f   :  { %4861 = vsyncpa [#allocation6], 1 }
 0x570   :  { %4862 = vsyncpa [#allocation9], 1 }
 0x571   :  { %4863 = vsyncpa [#allocation12], 1 }
 0x572   :  { %4864 = vsyncpa [#allocation4], 1 }
 0x573   :  { %4865 = vsyncpa [#allocation16], 1 }

</bundles_post_ra>
